<compile_context>
chip_gen: v5e
topology: v5e:2x2
jax: 0.10.0
libtpu: 0.0.40
codegen_flags: <defaults>
</compile_context>

<pallas_src>
import jax
import jax.numpy as jnp
from jax.experimental import pallas as pl
from jax.experimental.pallas import tpu as pltpu

EPS = 1e-5


def _matmul_rows(s_ref, w_ref, H, W, C):
    """3 deep-K MXU matmuls over the dx-concatenated staging buffer.

    s_ref : (1, H+2, W, 3*C) bf16 staging, s[:, r, j, dx*C:(dx+1)*C] = src[r, j+dx].
    w_ref : (3, 3*C, C) bf16 deep-K weights (ky, kx*Cin, Cout).
    Returns (H*W, C) f32 conv output.
    """
    acc = jnp.zeros((H * W, C), jnp.float32)
    for dy in range(3):
        # H-offset slice: major-dim slice of the staging buffer (no lane/sublane
        # relayout), reshaped to a deep-K LHS.
        lhs = s_ref[:, dy:dy + H, :, :].reshape(H * W, 3 * C)
        acc = acc + jnp.dot(lhs, w_ref[dy], preferred_element_type=jnp.float32)
    return acc


def _partial_stats(acc, st_ref, C):
    # Per-tile partial BN statistics (sum, sum of squares).  Reduced globally in
    # the wrapper so batch-stat semantics hold under the grid.  (The M x C
    # acc*acc temporary is small relative to the staging buffer.)
    st_ref[...] = jnp.concatenate(
        [jnp.sum(acc, axis=0, keepdims=True),
         jnp.sum(acc * acc, axis=0, keepdims=True)], axis=0).reshape(1, 2, C)


def _conv1_stats_kernel(xpad_ref, w1_ref, z1_ref, st_ref, s_ref):
    # Pass 1: conv1 on the spatially pre-padded bf16 input + partial BN1 stats.
    _, Hp, Wp, C = xpad_ref.shape
    H, W = Hp - 2, Wp - 2
    # Hoisted dx shifts: 3 width-shifted copies into the staging buffer
    # (vs 9 shifted slices when done inside the ky loop).  Halo rows/cols are
    # already zero from the wrapper's spatial pad.
    for dx in range(3):
        s_ref[:, :, :, dx * C:(dx + 1) * C] = xpad_ref[:, :, dx:dx + W, :]
    acc = _matmul_rows(s_ref, w1_ref, H, W, C)
    _partial_stats(acc, st_ref, C)
    z1_ref[...] = acc.reshape(1, H, W, C).astype(z1_ref.dtype)


def _bn1_relu_conv2_stats_kernel(z1_ref, w2_ref, sc1_ref, sh1_ref,
                                 z2_ref, st_ref, s_ref):
    # Pass 2: apply folded BN1 + ReLU, write h straight into conv2's
    # dx-concatenated staging (no hpad store/reload round trip), conv2,
    # partial BN2 stats.
    _, H, W, C = z1_ref.shape
    Hp = H + 2
    h = jnp.maximum(
        z1_ref[...].astype(jnp.float32) * sc1_ref[...] + sh1_ref[...], 0.0)
    hb = h.astype(jnp.bfloat16)

    zrow = jnp.zeros((1, 1, W, 3 * C), jnp.bfloat16)
    zcol = jnp.zeros((1, H, 1, C), jnp.bfloat16)
    s_ref[:, 0:1, :, :] = zrow                                  # top halo row
    s_ref[:, Hp - 1:Hp, :, :] = zrow                            # bottom halo row
    s_ref[:, 1:1 + H, 0:1, 0:C] = zcol                          # left tap, col 0
    s_ref[:, 1:1 + H, 1:W, 0:C] = hb[:, :, 0:W - 1, :]          # left tap
    s_ref[:, 1:1 + H, :, C:2 * C] = hb                          # centre tap
    s_ref[:, 1:1 + H, 0:W - 1, 2 * C:3 * C] = hb[:, :, 1:W, :]  # right tap
    s_ref[:, 1:1 + H, W - 1:W, 2 * C:3 * C] = zcol              # right tap, col W-1

    acc = _matmul_rows(s_ref, w2_ref, H, W, C)
    _partial_stats(acc, st_ref, C)
    z2_ref[...] = acc.reshape(1, H, W, C).astype(z2_ref.dtype)


def _bn2_residual_relu_kernel(z2_ref, xpad_ref, sc2_ref, sh2_ref, out_ref):
    # Pass 3: folded BN2 + residual (taken from the bf16 xpad interior; no
    # separate f32 residual input) + ReLU.
    _, H, W, C = z2_ref.shape
    residual = xpad_ref[:, 1:1 + H, 1:1 + W, :].astype(jnp.float32)
    out_ref[...] = jnp.maximum(
        z2_ref[...].astype(jnp.float32) * sc2_ref[...] + sh2_ref[...] + residual,
        0.0)


def residual_block(x_nchw, params):
    N, C, H, W = x_nchw.shape
    CPAD = max(128, ((C + 127) // 128) * 128)      # lane-dense channel count
    Hp, Wp = H + 2, W + 2
    M = N * H * W                                  # GLOBAL count for BN stats

    # NCHW -> NHWC, zero-pad channels, add 1-pixel spatial halo.  This single
    # bf16 array feeds conv1's taps AND the skip connection.
    x = jnp.transpose(x_nchw, (0, 2, 3, 1)).astype(jnp.float32)
    x = jnp.pad(x, ((0, 0), (0, 0), (0, 0), (0, CPAD - C)))
    xpad = jnp.pad(x, ((0, 0), (1, 1), (1, 1), (0, 0))).astype(jnp.bfloat16)

    def w_deepk(w_oihw):
        # OIHW -> HWIO -> pad channels -> (ky, kx*Cin_pad, Cout_pad), bf16.
        w = jnp.transpose(w_oihw, (2, 3, 1, 0)).astype(jnp.float32)
        w = jnp.pad(w, ((0, 0), (0, 0), (0, CPAD - C), (0, CPAD - C)))
        return w.reshape(3, 3 * CPAD, CPAD).astype(jnp.bfloat16)

    def row(v):
        # NOTE: gamma/beta are ZERO-padded -> padded lanes get scale=shift=0,
        # keeping all padded channels exactly zero through both BNs.
        return jnp.pad(v.astype(jnp.float32), (0, CPAD - C)).reshape(1, CPAD)

    w1, w2 = w_deepk(params["w1"]), w_deepk(params["w2"])
    g1, be1 = row(params["g1"]), row(params["be1"])
    g2, be2 = row(params["g2"]), row(params["be2"])

    # Conv biases b1/b2 are intentionally not used: a per-channel constant shift
    # before training-mode BN cancels exactly.

    # BlockSpecs.  Weights / per-channel vectors use constant index_maps so they
    # stay resident in VMEM across grid steps (no per-step re-fetch).
    xpad_spec = pl.BlockSpec((1, Hp, Wp, CPAD), lambda n: (n, 0, 0, 0))
    img_spec = pl.BlockSpec((1, H, W, CPAD), lambda n: (n, 0, 0, 0))
    st_spec = pl.BlockSpec((1, 2, CPAD), lambda n: (n, 0, 0))
    w_spec = pl.BlockSpec((3, 3 * CPAD, CPAD), lambda n: (0, 0, 0))
    vec_spec = pl.BlockSpec((1, CPAD), lambda n: (0, 0))
    stage = pltpu.VMEM((1, Hp, W, 3 * CPAD), jnp.bfloat16)

    # 32 MiB scoped VMEM is safe on all generations for these tile sizes; on
    # v5e/v6e (128 MiB physical) raise it and grow the per-step tile once
    # H-row tiling is added, keep ~32 MiB-sized tiles on v7x (64 MiB physical).
    cp = pltpu.CompilerParams(
        dimension_semantics=("parallel",),          # megacore sharding on v7x
        vmem_limit_bytes=32 * 1024 * 1024)

    # ---- pass 1: conv1 + partial BN1 stats (grid over batch, pipelined) ----
    z1, st1 = pl.pallas_call(
        _conv1_stats_kernel,
        grid=(N,),
        in_specs=[xpad_spec, w_spec],
        out_specs=[img_spec, st_spec],
        out_shape=[jax.ShapeDtypeStruct((N, H, W, CPAD), jnp.bfloat16),
                   jax.ShapeDtypeStruct((N, 2, CPAD), jnp.float32)],
        scratch_shapes=[stage],
        compiler_params=cp,
    )(xpad, w1)

    def fold_bn(st, g, be):
        # Global (whole-batch) one-pass stats, gamma folded into scale/shift.
        s = jnp.sum(st, axis=0)                     # (2, CPAD)
        mean = s[0:1] / M
        var = s[1:2] / M - mean * mean              # biased training-mode var
        scale = g * jax.lax.rsqrt(var + EPS)
        return scale, be - mean * scale

    sc1, sh1 = fold_bn(st1, g1, be1)

    # ---- pass 2: BN1+ReLU fused into conv2's staging + partial BN2 stats ----
    z2, st2 = pl.pallas_call(
        _bn1_relu_conv2_stats_kernel,
        grid=(N,),
        in_specs=[img_spec, w_spec, vec_spec, vec_spec],
        out_specs=[img_spec, st_spec],
        out_shape=[jax.ShapeDtypeStruct((N, H, W, CPAD), jnp.float32),
                   jax.ShapeDtypeStruct((N, 2, CPAD), jnp.float32)],
        scratch_shapes=[stage],
        compiler_params=cp,
    )(z1, w2, sc1, sh1)

    sc2, sh2 = fold_bn(st2, g2, be2)

    # ---- pass 3: BN2 + residual (bf16 skip from xpad interior) + ReLU ----
    out_nhwc = pl.pallas_call(
        _bn2_residual_relu_kernel,
        grid=(N,),
        in_specs=[img_spec, xpad_spec, vec_spec, vec_spec],
        out_specs=img_spec,
        out_shape=jax.ShapeDtypeStruct((N, H, W, CPAD), jnp.float32),
        compiler_params=cp,
    )(z2, xpad, sc2, sh2)

    # Channel un-pad + NHWC->NCHW in the wrapper (could be elided if the
    # surrounding network consumes lane-dense NHWC).
    return jnp.transpose(out_nhwc[..., :C], (0, 3, 1, 2))


def residual_block_ref(x_nchw, p):
    """Pure-JAX reference with PyTorch training-mode semantics (incl. biases)."""
    x = jnp.transpose(x_nchw, (0, 2, 3, 1)).astype(jnp.float32)

    def conv(h, w_oihw, b):
        w = jnp.transpose(w_oihw, (2, 3, 1, 0))
        y = jax.lax.conv_general_dilated(
            h, w, window_strides=(1, 1), padding="SAME",
            dimension_numbers=("NHWC", "HWIO", "NHWC"))
        return y + b

    def bn(z, g, be):
        mean = jnp.mean(z, axis=(0, 1, 2))
        var = jnp.mean((z - mean) ** 2, axis=(0, 1, 2))
        return (z - mean) * jax.lax.rsqrt(var + EPS) * g + be

    h = jax.nn.relu(bn(conv(x, p["w1"], p["b1"]), p["g1"], p["be1"]))
    z = bn(conv(h, p["w2"], p["b2"]), p["g2"], p["be2"])
    return jnp.transpose(jax.nn.relu(z + x), (0, 3, 1, 2))


def make_params(key, channels):
    ks = jax.random.split(key, 8)
    wshape = (channels, channels, 3, 3)   # PyTorch OIHW
    return {
        "w1": 0.1 * jax.random.normal(ks[0], wshape, jnp.float32),
        "b1": 0.1 * jax.random.normal(ks[1], (channels,), jnp.float32),
        "g1": 1.0 + 0.1 * jax.random.normal(ks[2], (channels,), jnp.float32),
        "be1": 0.1 * jax.random.normal(ks[3], (channels,), jnp.float32),
        "w2": 0.1 * jax.random.normal(ks[4], wshape, jnp.float32),
        "b2": 0.1 * jax.random.normal(ks[5], (channels,), jnp.float32),
        "g2": 1.0 + 0.1 * jax.random.normal(ks[6], (channels,), jnp.float32),
        "be2": 0.1 * jax.random.normal(ks[7], (channels,), jnp.float32),
    }


if __name__ == "__main__":
    key = jax.random.PRNGKey(0)
    kx, kp = jax.random.split(key)
    N, C, H, W = 2, 4, 16, 16
    x = jax.random.normal(kx, (N, C, H, W), jnp.float32)
    params = make_params(kp, C)

    out = jax.block_until_ready(residual_block(x, params))
    ref = jax.block_until_ready(residual_block_ref(x, params))

    assert out.shape == (N, C, H, W)
    # Conv operands, the inter-pass activation (z1) and the skip path are bf16
    # (f32 accumulation / BN math), so the tolerance reflects that bf16 floor
    # against the full-f32 reference.
    err = float(jnp.max(jnp.abs(out - ref)))
    if err > 5e-2:
        raise AssertionError(f"kernel/reference mismatch: max abs err = {err}")
    print("KERNEL_OK")
</pallas_src>

<mosaic_0001>
module attributes {stable_mosaic.version = 11 : i64} {
  func.func @_conv1_stats_kernel(%arg0: i32, %arg1: memref<1x18x18x128xbf16, #tpu.memory_space<vmem>>, %arg2: memref<3x384x128xbf16, #tpu.memory_space<vmem>>, %arg3: memref<1x16x16x128xbf16, #tpu.memory_space<vmem>>, %arg4: memref<1x2x128xf32, #tpu.memory_space<vmem>>, %arg5: memref<1x18x16x384xbf16, #tpu.memory_space<vmem>>) attributes {dimension_semantics = [#tpu.dimension_semantics<parallel>], iteration_bounds = array<i64: 2>, scalar_prefetch = 0 : i64, scratch_operands = 1 : i64, tpu.core_type = #tpu.core_type<tc>, window_params = [{transform_indices = @transform_0, window_bounds = array<i64: 1, 18, 18, 128>}, {pipeline_mode = #tpu.pipeline_mode<synchronous>, transform_indices = @transform_1, window_bounds = array<i64: 3, 384, 128>}, {transform_indices = @transform_2, window_bounds = array<i64: 1, 16, 16, 128>}, {transform_indices = @transform_3, window_bounds = array<i64: 1, 2, 128>}]} {
    %c0 = arith.constant 0 : index
    %c0_0 = arith.constant 0 : index
    %c0_1 = arith.constant 0 : index
    %c0_2 = arith.constant 0 : index
    %0 = vector.load %arg1[%c0, %c0_0, %c0_1, %c0_2] : memref<1x18x18x128xbf16, #tpu.memory_space<vmem>>, vector<1x18x16x128xbf16>
    %c0_3 = arith.constant 0 : index
    %c0_4 = arith.constant 0 : index
    %c0_5 = arith.constant 0 : index
    %c0_6 = arith.constant 0 : index
    %1 = vector.load %arg5[%c0_3, %c0_4, %c0_5, %c0_6] : memref<1x18x16x384xbf16, #tpu.memory_space<vmem>>, vector<1x18x16x128xbf16>
    tpu.vector_store %arg5[%c0_3, %c0_4, %c0_5, %c0_6], %0 {strides = array<i32>} : memref<1x18x16x384xbf16, #tpu.memory_space<vmem>>, vector<1x18x16x128xbf16>,
    %c0_7 = arith.constant 0 : index
    %c0_8 = arith.constant 0 : index
    %c1 = arith.constant 1 : index
    %c0_9 = arith.constant 0 : index
    %2 = vector.load %arg1[%c0_7, %c0_8, %c1, %c0_9] : memref<1x18x18x128xbf16, #tpu.memory_space<vmem>>, vector<1x18x16x128xbf16>
    %c0_10 = arith.constant 0 : index
    %c0_11 = arith.constant 0 : index
    %c0_12 = arith.constant 0 : index
    %c128 = arith.constant 128 : index
    %3 = vector.load %arg5[%c0_10, %c0_11, %c0_12, %c128] : memref<1x18x16x384xbf16, #tpu.memory_space<vmem>>, vector<1x18x16x128xbf16>
    tpu.vector_store %arg5[%c0_10, %c0_11, %c0_12, %c128], %2 {strides = array<i32>} : memref<1x18x16x384xbf16, #tpu.memory_space<vmem>>, vector<1x18x16x128xbf16>,
    %c0_13 = arith.constant 0 : index
    %c0_14 = arith.constant 0 : index
    %c2 = arith.constant 2 : index
    %c0_15 = arith.constant 0 : index
    %4 = vector.load %arg1[%c0_13, %c0_14, %c2, %c0_15] : memref<1x18x18x128xbf16, #tpu.memory_space<vmem>>, vector<1x18x16x128xbf16>
    %c0_16 = arith.constant 0 : index
    %c0_17 = arith.constant 0 : index
    %c0_18 = arith.constant 0 : index
    %c256 = arith.constant 256 : index
    %5 = vector.load %arg5[%c0_16, %c0_17, %c0_18, %c256] : memref<1x18x16x384xbf16, #tpu.memory_space<vmem>>, vector<1x18x16x128xbf16>
    tpu.vector_store %arg5[%c0_16, %c0_17, %c0_18, %c256], %4 {strides = array<i32>} : memref<1x18x16x384xbf16, #tpu.memory_space<vmem>>, vector<1x18x16x128xbf16>,
    %cst = arith.constant 0.000000e+00 : f32
    %6 = vector.broadcast %cst : f32 to vector<256x128xf32>
    %c0_19 = arith.constant 0 : index
    %c0_20 = arith.constant 0 : index
    %c0_21 = arith.constant 0 : index
    %c0_22 = arith.constant 0 : index
    %7 = vector.load %arg5[%c0_19, %c0_20, %c0_21, %c0_22] : memref<1x18x16x384xbf16, #tpu.memory_space<vmem>>, vector<1x16x16x384xbf16>
    %8 = vector.shape_cast %7 : vector<1x16x16x384xbf16> to vector<256x384xbf16>
    %c0_23 = arith.constant 0 : index
    %c0_24 = arith.constant 0 : index
    %c0_25 = arith.constant 0 : index
    %9 = vector.load %arg2[%c0_23, %c0_24, %c0_25] : memref<3x384x128xbf16, #tpu.memory_space<vmem>>, vector<1x384x128xbf16>
    %10 = vector.shape_cast %9 : vector<1x384x128xbf16> to vector<384x128xbf16>
    %cst_26 = arith.constant dense<0.000000e+00> : vector<256x128xf32>
    %11 = tpu.matmul %8, %10, %cst_26 {dimension_numbers = #tpu.dot_dimension_numbers<[1], [0], [0], [1], [0, 0, 1, 1], [], []>} : vector<256x384xbf16>, vector<384x128xbf16>, vector<256x128xf32> -> vector<256x128xf32>
    %12 = arith.addf %6, %11 : vector<256x128xf32>
    %c0_27 = arith.constant 0 : index
    %c1_28 = arith.constant 1 : index
    %c0_29 = arith.constant 0 : index
    %c0_30 = arith.constant 0 : index
    %13 = vector.load %arg5[%c0_27, %c1_28, %c0_29, %c0_30] : memref<1x18x16x384xbf16, #tpu.memory_space<vmem>>, vector<1x16x16x384xbf16>
    %14 = vector.shape_cast %13 : vector<1x16x16x384xbf16> to vector<256x384xbf16>
    %c1_31 = arith.constant 1 : index
    %c0_32 = arith.constant 0 : index
    %c0_33 = arith.constant 0 : index
    %15 = vector.load %arg2[%c1_31, %c0_32, %c0_33] : memref<3x384x128xbf16, #tpu.memory_space<vmem>>, vector<1x384x128xbf16>
    %16 = vector.shape_cast %15 : vector<1x384x128xbf16> to vector<384x128xbf16>
    %cst_34 = arith.constant dense<0.000000e+00> : vector<256x128xf32>
    %17 = tpu.matmul %14, %16, %cst_34 {dimension_numbers = #tpu.dot_dimension_numbers<[1], [0], [0], [1], [0, 0, 1, 1], [], []>} : vector<256x384xbf16>, vector<384x128xbf16>, vector<256x128xf32> -> vector<256x128xf32>
    %18 = arith.addf %12, %17 : vector<256x128xf32>
    %c0_35 = arith.constant 0 : index
    %c2_36 = arith.constant 2 : index
    %c0_37 = arith.constant 0 : index
    %c0_38 = arith.constant 0 : index
    %19 = vector.load %arg5[%c0_35, %c2_36, %c0_37, %c0_38] : memref<1x18x16x384xbf16, #tpu.memory_space<vmem>>, vector<1x16x16x384xbf16>
    %20 = vector.shape_cast %19 : vector<1x16x16x384xbf16> to vector<256x384xbf16>
    %c2_39 = arith.constant 2 : index
    %c0_40 = arith.constant 0 : index
    %c0_41 = arith.constant 0 : index
    %21 = vector.load %arg2[%c2_39, %c0_40, %c0_41] : memref<3x384x128xbf16, #tpu.memory_space<vmem>>, vector<1x384x128xbf16>
    %22 = vector.shape_cast %21 : vector<1x384x128xbf16> to vector<384x128xbf16>
    %cst_42 = arith.constant dense<0.000000e+00> : vector<256x128xf32>
    %23 = tpu.matmul %20, %22, %cst_42 {dimension_numbers = #tpu.dot_dimension_numbers<[1], [0], [0], [1], [0, 0, 1, 1], [], []>} : vector<256x384xbf16>, vector<384x128xbf16>, vector<256x128xf32> -> vector<256x128xf32>
    %24 = arith.addf %18, %23 : vector<256x128xf32>
    %cst_43 = arith.constant dense<0.000000e+00> : vector<128xf32>
    %25 = vector.multi_reduction <add>, %24, %cst_43 [0] : vector<256x128xf32> to vector<128xf32>
    %26 = vector.shape_cast %25 : vector<128xf32> to vector<1x128xf32>
    %27 = arith.mulf %24, %24 : vector<256x128xf32>
    %cst_44 = arith.constant dense<0.000000e+00> : vector<128xf32>
    %28 = vector.multi_reduction <add>, %27, %cst_44 [0] : vector<256x128xf32> to vector<128xf32>
    %29 = vector.shape_cast %28 : vector<128xf32> to vector<1x128xf32>
    %30 = tpu.concatenate %26, %29 in 0 : vector<1x128xf32>, vector<1x128xf32> -> vector<2x128xf32>
    %31 = vector.shape_cast %30 : vector<2x128xf32> to vector<1x2x128xf32>
    %c0_45 = arith.constant 0 : index
    %c0_46 = arith.constant 0 : index
    %c0_47 = arith.constant 0 : index
    %32 = vector.load %arg4[%c0_45, %c0_46, %c0_47] : memref<1x2x128xf32, #tpu.memory_space<vmem>>, vector<1x2x128xf32>
    tpu.vector_store %arg4[%c0_45, %c0_46, %c0_47], %31 {strides = array<i32>} : memref<1x2x128xf32, #tpu.memory_space<vmem>>, vector<1x2x128xf32>,
    %33 = vector.shape_cast %24 : vector<256x128xf32> to vector<1x16x16x128xf32>
    %34 = arith.truncf %33 : vector<1x16x16x128xf32> to vector<1x16x16x128xbf16>
    %c0_48 = arith.constant 0 : index
    %c0_49 = arith.constant 0 : index
    %c0_50 = arith.constant 0 : index
    %c0_51 = arith.constant 0 : index
    %35 = vector.load %arg3[%c0_48, %c0_49, %c0_50, %c0_51] : memref<1x16x16x128xbf16, #tpu.memory_space<vmem>>, vector<1x16x16x128xbf16>
    tpu.vector_store %arg3[%c0_48, %c0_49, %c0_50, %c0_51], %34 {strides = array<i32>} : memref<1x16x16x128xbf16, #tpu.memory_space<vmem>>, vector<1x16x16x128xbf16>,
    return
  }
  func.func @transform_0(%arg0: i32) -> (i32, i32, i32, i32) {
    %c0_i32 = arith.constant 0 : i32
    %c0_i32_0 = arith.constant 0 : i32
    %c0_i32_1 = arith.constant 0 : i32
    %c0_i32_2 = arith.constant 0 : i32
    return %arg0, %c0_i32, %c0_i32_0, %c0_i32_1 : i32, i32, i32, i32
  }
  func.func @transform_1(%arg0: i32) -> (i32, i32, i32) {
    %c0_i32 = arith.constant 0 : i32
    %c0_i32_0 = arith.constant 0 : i32
    %c0_i32_1 = arith.constant 0 : i32
    %c0_i32_2 = arith.constant 0 : i32
    return %c0_i32, %c0_i32_0, %c0_i32_1 : i32, i32, i32
  }
  func.func @transform_2(%arg0: i32) -> (i32, i32, i32, i32) {
    %c0_i32 = arith.constant 0 : i32
    %c0_i32_0 = arith.constant 0 : i32
    %c0_i32_1 = arith.constant 0 : i32
    %c0_i32_2 = arith.constant 0 : i32
    return %arg0, %c0_i32, %c0_i32_0, %c0_i32_1 : i32, i32, i32, i32
  }
  func.func @transform_3(%arg0: i32) -> (i32, i32, i32) {
    %c0_i32 = arith.constant 0 : i32
    %c0_i32_0 = arith.constant 0 : i32
    %c0_i32_1 = arith.constant 0 : i32
    return %arg0, %c0_i32, %c0_i32_0 : i32, i32, i32
  }
}

</mosaic_0001>

<bundles_post_ra>
// kernel: tpu_custom_call.1
= control target key start
LH: loop header
LB: loop body
LE: loop exit
PB: predicated region body
PF: predicated region fallthrough
CT: control target
= control target key end

     0   :  { %9 = vsyncpa [#allocation4], 0  ;;  %s6125_s0 = inlined_call_operand.vmem [shape: bf16[2,18,18,128], index: 0, kind: input, shape index: {}]   ;;  %s6126_s1 = inlined_call_operand.vmem [shape: bf16[3,384,128], index: 1, kind: input, shape index: {}]   ;;  %s6127_s2 = inlined_call_operand.hbm [shape: bf16[2,16,16,128], index: 2, kind: output, shape index: {0}]   ;;  %s6128_s3 = inlined_call_operand.hbm [shape: f32[2,2,128], index: 3, kind: output, shape index: {1}]  }
   0x1   :  { %11 = vsyncpa [#allocation4 + $0x1], 0 }
   0x2   :  { %12 = vsyncpa [#allocation6], 0 }
   0x3   :  { %14 = vsyncpa [#allocation6 + $0x1], 0  ;;  %s5291_s12 = smov 0   ;;  %s5293_s13 = smov 0  }
   0x4   :  { %s5295_s14 = smov 0   ;;  %s5297_s15 = smov 0  }
   0x5 LB: > { %s5312_s16 = sadd.s32 4294967295, %s5267_s15   ;;  %s3798_s17 = sadd.s32 4294967294, %s5267_s15   ;;  %s5267_s15 = sphi %s5297_s15, %s6138_s15   ;;  %s5263_s14 = sphi %s5295_s14, %s6137_s14   ;;  %s5259_s13 = sphi %s5293_s13, %s6136_s13   ;;  %s5255_s12 = sphi %s5291_s12, %s6135_s12  }
   0x6   : > { %s5316_s18 = sadd.s32 1, %s5267_s15   ;;  %s74_s19 = sadd.s32 1, %s5263_s14 }
   0x7   : > { %s71_s20 = ssub.s32 %s5267_s15, %s5316_s18  ;;  %p84_p0 = scmp.ne.s32.totalorder %s5263_s14, %s5259_s13 }
   0x8   : > { %p72_p1 = scmp.eq.s32.totalorder %s71_s20, 0  ;;  %p85_p2 = scmp.eq.s32.totalorder %s5312_s16, 1 }
   0x9   : > { %p90_p3 = scmp.ne.s32.totalorder %s5259_s13, %s5255_s12  ;;  %p91_p4 = scmp.eq.s32.totalorder %s3798_s17, 1 }
   0xa   : > { %s5327_s21 = scalar_select %p72_p1, %s5263_s14, %s74_s19  }
   0xb   : > { %p5329_p5 = por %p85_p2, %p84_p0  ;;  %p5333_p6 = por %p91_p4, %p90_p3 }
   0xc   : > { %p3801_p7 = scmp.ge.s32.totalorder %s5267_s15, 1  ;;  %p146_p8 = scmp.lt.s32.totalorder %s5267_s15, 3 }
   0xe   : > { %p147_p9 = pnand %p3801_p7, %p146_p8 }
   0xf   : > { %p175_p10 = scmp.lt.s32.totalorder (!%p147_p9), %s5312_s16, 1  ;;  %s6007_s10 = sand.u32 (!%p147_p9), 1, %s5259_s13  }
  0x10   : > { %150 = sbr.rel (%p147_p9) target bundleno = 781 (0x30d), region = 28  ;;  %s3802_s11 = sshll.u32 (!%p147_p9), %s6007_s10, 7 }
  0x11   : > { %s6012_s17 = scalar_lea.vmem (!%p147_p9), [#allocation3], %s3802_s11  ;;  %s3669_s27 = scalar_lea.sflag (!%p147_p9), [#allocation4], %s6007_s10 }
  0x12   : > { %s3686_s25 = sshll.u32 (!%p147_p9), %s6012_s17, 4  ;;  %s5193_s5 = scalar_lea.hbm (!%p147_p9), %s6127_s2, 256  ;;  %s3687_s25 = int_to_ptr.vmem [resolvable:$true] %s3686_s25 }
  0x15   : > { %v4917_v0 = vld [vmem:[%s6126_s1 + $0xf8] sm:$0xff]  ;;  %v4916_v1 = vld [vmem:[%s6126_s1 + $0xf0] sm:$0xff]  ;;  %s176_s28 = scalar_select %p175_p10, %s5312_s16, 1  ;;  %v4915_v2 = vld [vmem:[%s6126_s1 + $0xe8] sm:$0xff]  ;;  %vm306_vm0 = vsmask.f32 3328 }
  0x16   : > { %1748 = vmatpush.bf16.msra.mxu0 %v4917_v0  ;;  %5102 = vmatpush.bf16.msra.mxu1 %v4917_v0  ;;  %v4914_v8 = vld [vmem:[%s6126_s1 + $0xe0] sm:$0xff]  ;;  %v4913_v13 = vld [vmem:[%s6126_s1 + $0xd8] sm:$0xff]  ;;  %v4912_v18 = vld [vmem:[%s6126_s1 + $0xd0] sm:$0xff]  ;;  %vm307_vm1 = vsmask.f32 7440  ;;  %vm921_vm2 = vcmask 1042432  }
  0x17   : > { %5103 = vmatpush.bf16.msra.mxu2 %v4917_v0  ;;  %5104 = vmatpush.bf16.msra.mxu3 %v4917_v0  ;;  %s5126_s29 = smul.u32 216, %s176_s28  ;;  %v4911_v22 = vld [vmem:[%s6126_s1 + $0xc8] sm:$0xff]  ;;  %v4910_v25 = vld [vmem:[%s6126_s1 + $0xc0] sm:$0xff]  ;;  %v4933_v38 = vld [vmem:[%s6126_s1 + $0x178] sm:$0xff]  ;;  %vm922_vm3 = vcmask 1046532  }
  0x18   : > { %v4845_v39 = vld [vmem:[%s6126_s1 + $0x38] sm:$0xff]  ;;  %v4932_v48 = vld [vmem:[%s6126_s1 + $0x170] sm:$0xff]  ;;  %v4931_v52 = vld [vmem:[%s6126_s1 + $0x168] sm:$0xff] }
  0x19   : > { %s5353_s7 = scalar_lea.vmem %s6125_s0, %s5126_s29  ;;  %v4925_v46 = vld [vmem:[%s6126_s1 + $0x138] sm:$0xff]  ;;  %v4844_v49 = vld [vmem:[%s6126_s1 + $0x30] sm:$0xff]  ;;  %v4843_v53 = vld [vmem:[%s6126_s1 + $0x28] sm:$0xff] }
  0x1a   : > { %1749 = vmatpush.bf16.msra.mxu0 %v4916_v1  ;;  %5105 = vmatpush.bf16.msra.mxu1 %v4916_v1  ;;  %v182_v3 = vld [vmem:[%s5353_s7 + $0xc] sm:$0xf]  ;;  %v183_v4 = vld [vmem:[%s5353_s7 + $0x10] sm:$0xf]  ;;  %v190_v5 = vld [vmem:[%s5353_s7 + $0x3c] sm:$0xf] }
  0x1b   : > { %5106 = vmatpush.bf16.msra.mxu2 %v4916_v1  ;;  %5107 = vmatpush.bf16.msra.mxu3 %v4916_v1  ;;  %218 = vst [vmem:[#allocation2 + $0x18] sm:$0xf] %v182_v3  ;;  %v191_v6 = vld [vmem:[%s5353_s7 + $0x40] sm:$0xf]  ;;  %v198_v7 = vld [vmem:[%s5353_s7 + $0x6c] sm:$0xf]  ;;  %vm5496_vm4 = vmor %vm306_vm0, %vm307_vm1 }
  0x1c   : > { %219 = vst [vmem:[#allocation2 + $0x24] sm:$0xf] %v183_v4  ;;  %v199_v9 = vld [vmem:[%s5353_s7 + $0x70] sm:$0xf]  ;;  %v206_v10 = vld [vmem:[%s5353_s7 + $0x9c] sm:$0xf]  ;;  %vm5510_vm5 = vmor %vm921_vm2, %vm922_vm3 }
  0x1d   : > { %226 = vst [vmem:[#allocation2 + $0x78] sm:$0xf] %v190_v5  ;;  %v207_v11 = vld [vmem:[%s5353_s7 + $0xa0] sm:$0xf]  ;;  %v184_v12 = vld [vmem:[%s5353_s7 + $0x18] sm:$0xf] }
  0x1e   : > { %1750 = vmatpush.bf16.msra.mxu0 %v4915_v2  ;;  %5108 = vmatpush.bf16.msra.mxu1 %v4915_v2  ;;  %227 = vst [vmem:[#allocation2 + $0x84] sm:$0xf] %v191_v6  ;;  %v185_v14 = vld [vmem:[%s5353_s7 + $0x1c] sm:$0xf]  ;;  %v192_v15 = vld [vmem:[%s5353_s7 + $0x48] sm:$0xf] }
  0x1f   : > { %5109 = vmatpush.bf16.msra.mxu2 %v4915_v2  ;;  %5110 = vmatpush.bf16.msra.mxu3 %v4915_v2  ;;  %234 = vst [vmem:[#allocation2 + $0xd8] sm:$0xf] %v198_v7  ;;  %v193_v16 = vld [vmem:[%s5353_s7 + $0x4c] sm:$0xf]  ;;  %v200_v17 = vld [vmem:[%s5353_s7 + $0x78] sm:$0xf] }
  0x20   : > { %235 = vst [vmem:[#allocation2 + $0xe4] sm:$0xf] %v199_v9  ;;  %v201_v19 = vld [vmem:[%s5353_s7 + $0x7c] sm:$0xf]  ;;  %v208_v20 = vld [vmem:[%s5353_s7 + $0xa8] sm:$0xf] }
  0x21   : > { %242 = vst [vmem:[#allocation2 + $0x138] sm:$0xf] %v206_v10  ;;  %v209_v21 = vld [vmem:[%s5353_s7 + $0xac] sm:$0xf]  ;;  %v186_v23 = vld [vmem:[%s5353_s7 + $0x24] sm:$0xf] }
  0x22   : > { %1751 = vmatpush.bf16.msra.mxu0 %v4914_v8  ;;  %5111 = vmatpush.bf16.msra.mxu1 %v4914_v8  ;;  %243 = vst [vmem:[#allocation2 + $0x144] sm:$0xf] %v207_v11  ;;  %v187_v24 = vld [vmem:[%s5353_s7 + $0x28] sm:$0xf]  ;;  %v3873_v26 = vld [vmem:[#allocation2 + $0x18] sm:$0xf] }
  0x23   : > { %5112 = vmatpush.bf16.msra.mxu2 %v4914_v8  ;;  %5113 = vmatpush.bf16.msra.mxu3 %v4914_v8  ;;  %220 = vst [vmem:[#allocation2 + $0x30] sm:$0xf] %v184_v12  ;;  %v4863_v27 = vld [vmem:[#allocation2 + $0x20] sm:$0xf0]  ;;  %v194_v30 = vld [vmem:[%s5353_s7 + $0x54] sm:$0xf] }
  0x24   : > { %221 = vst [vmem:[#allocation2 + $0x3c] sm:$0xf] %v185_v14  ;;  %v3921_v28 = vld [vmem:[#allocation2 + $0x78] sm:$0xf]  ;;  %v202_v35 = vld [vmem:[%s5353_s7 + $0x84] sm:$0xf]  ;;  %v3874_v41 = vor.u32 %v4863_v27, %v3873_v26 }
  0x25   : > { %228 = vst [vmem:[#allocation2 + $0x90] sm:$0xf] %v192_v15  ;;  %v4875_v29 = vld [vmem:[#allocation2 + $0x80] sm:$0xf0]  ;;  %v195_v33 = vld [vmem:[%s5353_s7 + $0x58] sm:$0xf] }
  0x26   : > { %1752 = vmatpush.bf16.msra.mxu0 %v4913_v13  ;;  %5114 = vmatpush.bf16.msra.mxu1 %v4913_v13  ;;  %229 = vst [vmem:[#allocation2 + $0x9c] sm:$0xf] %v193_v16  ;;  %v3969_v31 = vld [vmem:[#allocation2 + $0xd8] sm:$0xf]  ;;  %v203_v37 = vld [vmem:[%s5353_s7 + $0x88] sm:$0xf]  ;;  %v3922_v42 = vor.u32 %v4875_v29, %v3921_v28 }
  0x27   : > { %5115 = vmatpush.bf16.msra.mxu2 %v4913_v13  ;;  %5116 = vmatpush.bf16.msra.mxu3 %v4913_v13  ;;  %236 = vst [vmem:[#allocation2 + $0xf0] sm:$0xf] %v200_v17  ;;  %v4887_v32 = vld [vmem:[#allocation2 + $0xe0] sm:$0xf0]  ;;  %v210_v40 = vld [vmem:[%s5353_s7 + $0xb4] sm:$0xf] }
  0x28   : > { %237 = vst [vmem:[#allocation2 + $0xfc] sm:$0xf] %v201_v19  ;;  %v4017_v34 = vld [vmem:[#allocation2 + $0x138] sm:$0xf]  ;;  %v3970_v44 = vor.u32 %v4887_v32, %v3969_v31  ;;  %v4924_v50 = vld [vmem:[%s6126_s1 + $0x130] sm:$0xff]  ;;  %v4923_v54 = vld [vmem:[%s6126_s1 + $0x128] sm:$0xff] }
  0x29   : > { %244 = vst [vmem:[#allocation2 + $0x150] sm:$0xf] %v208_v20  ;;  %v4899_v36 = vld [vmem:[#allocation2 + $0x140] sm:$0xf0]  ;;  %v211_v43 = vld [vmem:[%s5353_s7 + $0xb8] sm:$0xf] }
  0x2a   : > { %1753 = vmatpush.bf16.msra.mxu0 %v4912_v18  ;;  %5117 = vmatpush.bf16.msra.mxu1 %v4912_v18  ;;  %245 = vst [vmem:[#allocation2 + $0x15c] sm:$0xf] %v209_v21  ;;  %v4018_v45 = vor.u32 %v4899_v36, %v4017_v34  ;;  %v4853_v47 = vld [vmem:[%s6126_s1 + $0x78] sm:$0xff]  ;;  %v4852_v51 = vld [vmem:[%s6126_s1 + $0x70] sm:$0xff]  ;;  %v4930_v55 = vld [vmem:[%s6126_s1 + $0x160] sm:$0xff] }
  0x2b   : > { %5118 = vmatpush.bf16.msra.mxu2 %v4912_v18  ;;  %5119 = vmatpush.bf16.msra.mxu3 %v4912_v18  ;;  %222 = vst [vmem:[#allocation2 + $0x48] sm:$0xf] %v186_v23  ;;  %v4842_v56 = vld [vmem:[%s6126_s1 + $0x20] sm:$0xff]  ;;  %v4851_v57 = vld [vmem:[%s6126_s1 + $0x68] sm:$0xff]  ;;  %v188_v58 = vld [vmem:[%s5353_s7 + $0x30] sm:$0xf] }
  0x2c   : > { %223 = vst [vmem:[#allocation2 + $0x54] sm:$0xf] %v187_v24  ;;  %v189_v59 = vld [vmem:[%s5353_s7 + $0x34] sm:$0xf]  ;;  %v196_v60 = vld [vmem:[%s5353_s7 + $0x60] sm:$0xf] }
  0x2d   : > { %230 = vst [vmem:[#allocation2 + $0xa8] sm:$0xf] %v194_v30  ;;  %v197_v61 = vld [vmem:[%s5353_s7 + $0x64] sm:$0xf]  ;;  %v3885_v62 = vld [vmem:[#allocation2 + $0x30] sm:$0xf] }
  0x2e   : > { %1754 = vmatpush.bf16.msra.mxu0 %v4911_v22  ;;  %5120 = vmatpush.bf16.msra.mxu1 %v4911_v22  ;;  %231 = vst [vmem:[#allocation2 + $0xb4] sm:$0xf] %v195_v33  ;;  %v4866_v63 = vld [vmem:[#allocation2 + $0x38] sm:$0xf0]  ;;  %v3933_v0 = vld [vmem:[#allocation2 + $0x90] sm:$0xf] }
  0x2f   : > { %5121 = vmatpush.bf16.msra.mxu2 %v4911_v22  ;;  %5122 = vmatpush.bf16.msra.mxu3 %v4911_v22  ;;  %238 = vst [vmem:[#allocation2 + $0x108] sm:$0xf] %v202_v35  ;;  %v4878_v1 = vld [vmem:[#allocation2 + $0x98] sm:$0xf0]  ;;  %v204_v2 = vld [vmem:[%s5353_s7 + $0x90] sm:$0xf]  ;;  %v3886_v14 = vor.u32 %v4866_v63, %v3885_v62 }
  0x30   : > { %239 = vst [vmem:[#allocation2 + $0x114] sm:$0xf] %v203_v37  ;;  %v3981_v3 = vld [vmem:[#allocation2 + $0xf0] sm:$0xf]  ;;  %v4890_v4 = vld [vmem:[#allocation2 + $0xf8] sm:$0xf0]  ;;  %v3934_v15 = vor.u32 %v4878_v1, %v3933_v0 }
  0x31   : > { %246 = vst [vmem:[#allocation2 + $0x168] sm:$0xf] %v210_v40  ;;  %v4029_v5 = vld [vmem:[#allocation2 + $0x150] sm:$0xf]  ;;  %v205_v6 = vld [vmem:[%s5353_s7 + $0x94] sm:$0xf]  ;;  %v3982_v16 = vor.u32 %v4890_v4, %v3981_v3 }
  0x32   : > { %1755 = vmatpush.bf16.msra.mxu0 %v4910_v25  ;;  %5123 = vmatpush.bf16.msra.mxu1 %v4910_v25  ;;  %247 = vst [vmem:[#allocation2 + $0x174] sm:$0xf] %v211_v43  ;;  %v4902_v7 = vld [vmem:[#allocation2 + $0x158] sm:$0xf0]  ;;  %v212_v8 = vld [vmem:[%s5353_s7 + $0xc0] sm:$0xf] }
  0x33   : > { %5124 = vmatpush.bf16.msra.mxu2 %v4910_v25  ;;  %5125 = vmatpush.bf16.msra.mxu3 %v4910_v25  ;;  %224 = vst [vmem:[#allocation2 + $0x60] sm:$0xf] %v188_v58  ;;  %v4922_v9 = vld [vmem:[%s6126_s1 + $0x120] sm:$0xff]  ;;  %v4929_v12 = vld [vmem:[%s6126_s1 + $0x158] sm:$0xff]  ;;  %v4030_v17 = vor.u32 %v4902_v7, %v4029_v5  ;;  %v255_v18 = vld [vmem:[%s5353_s7 + $0xc] sm:$0xf] }
  0x34   : > { %225 = vst [vmem:[#allocation2 + $0x6c] sm:$0xf] %v189_v59  ;;  %v4850_v10 = vld [vmem:[%s6126_s1 + $0x60] sm:$0xff]  ;;  %v4841_v13 = vld [vmem:[%s6126_s1 + $0x18] sm:$0xff]  ;;  %v256_v21 = vld [vmem:[%s5353_s7 + $0x10] sm:$0xf] }
  0x35   : > { %1756 = vmatmul.bf16.vlgmr.msra.gmra.mxu0 %v3874_v41  ;;  %1776 = vmatmul.bf16.vlgmr.msra.gmra.mxu1 %v3922_v42  ;;  %232 = vst [vmem:[#allocation2 + $0xc0] sm:$0xf] %v196_v60  ;;  %v213_v11 = vld [vmem:[%s5353_s7 + $0xc4] sm:$0xf]  ;;  %v4921_v19 = vld [vmem:[%s6126_s1 + $0x118] sm:$0xff]  ;;  %v334_v22 = vshrl.u32 %v255_v18, 16 }
  0x36   : > { %1796 = vmatmul.bf16.vlgmr.msra.gmra.mxu2 %v3970_v44  ;;  %1816 = vmatmul.bf16.vlgmr.msra.gmra.mxu3 %v4018_v45  ;;  %233 = vst [vmem:[#allocation2 + $0xcc] sm:$0xf] %v197_v61  ;;  %v4849_v20 = vld [vmem:[%s6126_s1 + $0x58] sm:$0xff]  ;;  %v337_v23 = vshll.u32 %v255_v18, 16  ;;  %v4928_v24 = vld [vmem:[%s6126_s1 + $0x150] sm:$0xff]  ;;  %v343_v26 = vshll.u32 %v256_v21, 16 }
  0x37   : > { %1926 = vmatpush.bf16.msrb.mxu2 %v4933_v38  ;;  %2415 = vmatpush.bf16.msrb.mxu3 %v4845_v39  ;;  %240 = vst [vmem:[#allocation2 + $0x120] sm:$0xf] %v204_v2  ;;  %v4840_v25 = vld [vmem:[%s6126_s1 + $0x10] sm:$0xff]  ;;  %v347_v27 = vshrl.u32 %v256_v21, 16  ;;  %v336_v28 = vrot.slane %v334_v22, 4  ;;  %v4927_v34 = vld [vmem:[%s6126_s1 + $0x148] sm:$0xff] }
  0x38   : > { %1837 = vmatpush.bf16.msrb.mxu1 %v4925_v46  ;;  %2504 = vmatpush.bf16.msrb.mxu0 %v4853_v47  ;;  %241 = vst [vmem:[#allocation2 + $0x12c] sm:$0xf] %v205_v6  ;;  %v339_v29 = vrot.slane %v337_v23, 5  ;;  %v4920_v30 = vld [vmem:[%s6126_s1 + $0x110] sm:$0xff]  ;;  %v252_v33 = vld [vmem:[%s5353_s7] sm:$0xf] }
  0x39   : > { %248 = vst [vmem:[#allocation2 + $0x180] sm:$0xf] %v212_v8  ;;  %v4848_v31 = vld [vmem:[%s6126_s1 + $0x50] sm:$0xff]  ;;  %v4839_v35 = vld [vmem:[%s6126_s1 + $0x8] sm:$0xff]  ;;  %v345_v36 = vrot.slane %v343_v26, 5  ;;  %v349_v37 = vrot.slane %v347_v27, 4 }
  0x3a   : > { %249 = vst [vmem:[#allocation2 + $0x18c] sm:$0xf] %v213_v11  ;;  %v340_v32 = vor.u32 %v339_v29, %v336_v28  ;;  %v4919_v38 = vld [vmem:[%s6126_s1 + $0x108] sm:$0xff]  ;;  %v4926_v40 = vld [vmem:[%s6126_s1 + $0x140] sm:$0xff]  ;;  %v257_v42 = vld [vmem:[%s5353_s7 + $0x14] sm:$0x1] }
  0x3b   : > { %1927 = vmatpush.bf16.msrb.mxu2 %v4932_v48  ;;  %2416 = vmatpush.bf16.msrb.mxu3 %v4844_v49  ;;  %v4847_v41 = vld [vmem:[%s6126_s1 + $0x48] sm:$0xff]  ;;  %v350_v43 = vor.u32 %v349_v37, %v345_v36  ;;  %v253_v44 = vld [vmem:[%s5353_s7 + $0x4] sm:$0xf]  ;;  %v310_v45 = vshrl.u32 %v252_v33, 16  ;;  %v353_v47 = vshll.u32 %v257_v42, 16 }
  0x3c   : > { %1838 = vmatpush.bf16.msrb.mxu1 %v4924_v50  ;;  %2505 = vmatpush.bf16.msrb.mxu0 %v4852_v51  ;;  %v341_v39 = vrot.slane %v340_v32, 4  ;;  %v816_v48 = vld [vmem:[%s5353_s7 + $0xc] sm:$0xe]  ;;  %v817_v49 = vld [vmem:[%s5353_s7 + $0x10] sm:$0xf]  ;;  %v313_v50 = vshll.u32 %v252_v33, 16 }
  0x3d   : > { %v3897_v51 = vld [vmem:[#allocation2 + $0x48] sm:$0xf]  ;;  %v818_v58 = vld [vmem:[%s5353_s7 + $0x14] sm:$0x1]  ;;  %v3806_v60 = vrot.slane %v816_v48, 9  ;;  %v933_v61 = vrot.slane %v817_v49, 5 }
  0x3e   : > { %v3993_v62 = vld [vmem:[#allocation2 + $0x108] sm:$0xf]  ;;  %v4893_v63 = vld [vmem:[#allocation2 + $0x110] sm:$0xf0]  ;;  %v4918_v2 = vld [vmem:[%s6126_s1 + $0x100] sm:$0xff]  ;;  %v355_v4 = vrot.slane %v353_v47, 5 }
  0x3f   : > { %1928 = vmatpush.bf16.msrb.mxu2 %v4931_v52  ;;  %2417 = vmatpush.bf16.msrb.mxu3 %v4843_v53  ;;  %v4869_v52 = vld [vmem:[#allocation2 + $0x50] sm:$0xf0]  ;;  %v3945_v53 = vld [vmem:[#allocation2 + $0xa8] sm:$0xf]  ;;  %v4846_v3 = vld [vmem:[%s6126_s1 + $0x40] sm:$0xff]  ;;  %v936_v5 = vrot.slane %v818_v58, 5  ;;  %v934_v7 = vsel %vm5510_vm5, %v3806_v60, %v933_v61  ;;  %v3994_v22 = vor.u32 %v4893_v63, %v3993_v62 }
  0x40   : > { %1839 = vmatpush.bf16.msrb.mxu1 %v4923_v54  ;;  %2506 = vmatpush.bf16.msrb.mxu0 %v4851_v57  ;;  %v4881_v54 = vld [vmem:[#allocation2 + $0xb0] sm:$0xf0]  ;;  %v351_v57 = vrot.slane %v350_v43, 4  ;;  %v4041_v0 = vld [vmem:[#allocation2 + $0x168] sm:$0xf]  ;;  %v935_v8 = vrot.slane %v933_v61, 4  ;;  %v3898_v18 = vor.u32 %v4869_v52, %v3897_v51 }
  0x41   : > { %v4905_v1 = vld [vmem:[#allocation2 + $0x170] sm:$0xf0]  ;;  %v180_v6 = vld [vmem:[%s5353_s7] sm:$0xf]  ;;  %1088 = vst [vmem:[#allocation2 + $0x20] sm:$0xf] %v934_v7 }
  0x42   : > { %216 = vst [vmem:[#allocation2] sm:$0xf] %v180_v6  ;;  %v356_v11 = vsel %vm5496_vm4, %v351_v57, %v355_v4  ;;  %v4042_v23 = vor.u32 %v4905_v1, %v4041_v0  ;;  %v259_v27 = vld [vmem:[%s5353_s7 + $0x1c] sm:$0xf]  ;;  %v260_v47 = vld [vmem:[%s5353_s7 + $0x20] sm:$0x1] }
  0x43   : > { %1929 = vmatpush.bf16.msrb.mxu2 %v4930_v55  ;;  %2418 = vmatpush.bf16.msrb.mxu3 %v4842_v56  ;;  %v4838_v55 = vld [vmem:[%s6126_s1] sm:$0xff]  ;;  %v346_v56 = vsel %vm5496_vm4, %v341_v39, %v345_v36  ;;  %780 = vst [vmem:[#allocation2 + $0x28] sm:$0xf] %v356_v11  ;;  %v367_v32 = vshll.u32 %v259_v27, 16  ;;  %v371_v33 = vshrl.u32 %v259_v27, 16  ;;  %v4997_v39 = vld [vmem:[%s6126_s1 + $0x1f8] sm:$0xff] }
  0x44   : > { %1840 = vmatpush.bf16.msrb.mxu1 %v4922_v9  ;;  %2507 = vmatpush.bf16.msrb.mxu0 %v4850_v10  ;;  %779 = vst [vmem:[#allocation2 + $0x1c] sm:$0xf] %v346_v56  ;;  %v181_v9 = vld [vmem:[%s5353_s7 + $0x4] sm:$0xf]  ;;  %v312_v10 = vrot.slane %v310_v45, 4  ;;  %v5005_v45 = vld [vmem:[%s6126_s1 + $0x238] sm:$0xff] }
  0x45   : > { %1761 = vmatmul.bf16.gmra.mxu0 %v3886_v14  ;;  %1781 = vmatmul.bf16.gmra.mxu1 %v3934_v15  ;;  %v319_v14 = vshll.u32 %v253_v44, 16  ;;  %v937_v15 = vsel %vm5510_vm5, %v935_v8, %v936_v5  ;;  %217 = vst [vmem:[#allocation2 + $0xc] sm:$0xf] %v181_v9  ;;  %v369_v42 = vrot.slane %v367_v32, 5  ;;  %v373_v43 = vrot.slane %v371_v33, 4 }
  0x46   : > { %1801 = vmatmul.bf16.gmra.mxu2 %v3982_v16  ;;  %1821 = vmatmul.bf16.gmra.mxu3 %v4030_v17  ;;  %v323_v16 = vshrl.u32 %v253_v44, 16  ;;  %1089 = vst [vmem:[#allocation2 + $0x2c] sm:$0xf] %v937_v15  ;;  %v819_v51 = vld [vmem:[%s5353_s7 + $0x18] sm:$0xe] }
  0x47   : > { %1930 = vmatpush.bf16.msrb.mxu2 %v4929_v12  ;;  %2419 = vmatpush.bf16.msrb.mxu3 %v4841_v13  ;;  %v254_v12 = vld [vmem:[%s5353_s7 + $0x8] sm:$0x1]  ;;  %v315_v13 = vrot.slane %v313_v50, 5  ;;  %v321_v21 = vrot.slane %v319_v14, 5  ;;  %v374_v49 = vor.u32 %v373_v43, %v369_v42  ;;  %v377_v50 = vshll.u32 %v260_v47, 16 }
  0x48   : > { %1841 = vmatpush.bf16.msrb.mxu1 %v4921_v19  ;;  %2508 = vmatpush.bf16.msrb.mxu0 %v4849_v20  ;;  %v329_v17 = vshll.u32 %v254_v12, 16  ;;  %v3946_v19 = vor.u32 %v4881_v54, %v3945_v53  ;;  %v820_v52 = vld [vmem:[%s5353_s7 + $0x1c] sm:$0xf]  ;;  %v821_v53 = vld [vmem:[%s5353_s7 + $0x20] sm:$0x1]  ;;  %v3807_v57 = vrot.slane %v819_v51, 9 }
  0x49   : > { %v316_v20 = vor.u32 %v315_v13, %v312_v10  ;;  %v379_v56 = vrot.slane %v377_v50, 5  ;;  %v3909_v58 = vld [vmem:[#allocation2 + $0x60] sm:$0xf]  ;;  %v4872_v60 = vld [vmem:[#allocation2 + $0x68] sm:$0xf0]  ;;  %v940_v61 = vrot.slane %v820_v52, 5 }
  0x4a   : > { %v943_v62 = vrot.slane %v821_v53, 5  ;;  %v3957_v63 = vld [vmem:[#allocation2 + $0xc0] sm:$0xf]  ;;  %v4884_v0 = vld [vmem:[#allocation2 + $0xc8] sm:$0xf0]  ;;  %v3910_v9 = vor.u32 %v4872_v60, %v3909_v58 }
  0x4b   : > { %1931 = vmatpush.bf16.msrb.mxu2 %v4928_v24  ;;  %2420 = vmatpush.bf16.msrb.mxu3 %v4840_v25  ;;  %v325_v24 = vrot.slane %v323_v16, 4  ;;  %v258_v25 = vld [vmem:[%s5353_s7 + $0x18] sm:$0xf]  ;;  %v317_v26 = vrot.slane %v316_v20, 4  ;;  %v4005_v1 = vld [vmem:[#allocation2 + $0x120] sm:$0xf]  ;;  %v941_v4 = vsel %vm5510_vm5, %v3807_v57, %v940_v61  ;;  %v3958_v10 = vor.u32 %v4884_v0, %v3957_v63 }
  0x4c   : > { %1842 = vmatpush.bf16.msrb.mxu1 %v4920_v30  ;;  %2509 = vmatpush.bf16.msrb.mxu0 %v4848_v31  ;;  %v358_v28 = vshrl.u32 %v258_v25, 16  ;;  %v361_v29 = vshll.u32 %v258_v25, 16  ;;  %v331_v31 = vrot.slane %v329_v17, 5  ;;  %v942_v5 = vrot.slane %v940_v61, 4  ;;  %v4053_v6 = vld [vmem:[#allocation2 + $0x180] sm:$0xf] }
  0x4d   : > { %v326_v30 = vor.u32 %v325_v24, %v321_v21  ;;  %v4908_v7 = vld [vmem:[#allocation2 + $0x188] sm:$0xf0]  ;;  %1090 = vst [vmem:[#allocation2 + $0x38] sm:$0xf] %v941_v4  ;;  %v261_v13 = vld [vmem:[%s5353_s7 + $0x24] sm:$0xf] }
  0x4e   : > { %v363_v36 = vrot.slane %v361_v29, 5  ;;  %v944_v8 = vsel %vm5510_vm5, %v942_v5, %v943_v62  ;;  %v4054_v12 = vor.u32 %v4908_v7, %v4053_v6  ;;  %v262_v14 = vld [vmem:[%s5353_s7 + $0x28] sm:$0xf]  ;;  %v382_v15 = vshrl.u32 %v261_v13, 16  ;;  %v822_v27 = vld [vmem:[%s5353_s7 + $0x24] sm:$0xe] }
  0x4f   : > { %1932 = vmatpush.bf16.msrb.mxu2 %v4927_v34  ;;  %2421 = vmatpush.bf16.msrb.mxu3 %v4839_v35  ;;  %v322_v34 = vsel %vm5496_vm4, %v317_v26, %v321_v21  ;;  %v360_v35 = vrot.slane %v358_v28, 4  ;;  %v327_v37 = vrot.slane %v326_v30, 4  ;;  %1091 = vst [vmem:[#allocation2 + $0x44] sm:$0xf] %v944_v8  ;;  %v385_v16 = vshll.u32 %v261_v13, 16  ;;  %v4988_v61 = vld [vmem:[%s6126_s1 + $0x1b0] sm:$0xff] }
  0x50   : > { %1843 = vmatpush.bf16.msrb.mxu1 %v4919_v38  ;;  %2510 = vmatpush.bf16.msrb.mxu0 %v4847_v41  ;;  %777 = vst [vmem:[#allocation2 + $0x4] sm:$0xf] %v322_v34  ;;  %v4989_v38 = vld [vmem:[%s6126_s1 + $0x1b8] sm:$0xff]  ;;  %v391_v17 = vshll.u32 %v262_v14, 16  ;;  %v384_v20 = vrot.slane %v382_v15, 4  ;;  %v4996_v62 = vld [vmem:[%s6126_s1 + $0x1f0] sm:$0xff] }
  0x51   : > { %v364_v41 = vor.u32 %v363_v36, %v360_v35  ;;  %v332_v44 = vsel %vm5496_vm4, %v327_v37, %v331_v31  ;;  %v387_v21 = vrot.slane %v385_v16, 5  ;;  %v823_v25 = vld [vmem:[%s5353_s7 + $0x28] sm:$0xf]  ;;  %v824_v28 = vld [vmem:[%s5353_s7 + $0x2c] sm:$0x1]  ;;  %v3808_v31 = vrot.slane %v822_v27, 9 }
  0x52   : > { %778 = vst [vmem:[#allocation2 + $0x10] sm:$0xf] %v332_v44  ;;  %v947_v33 = vrot.slane %v823_v25, 5  ;;  %v950_v34 = vrot.slane %v824_v28, 5  ;;  %v4862_v36 = vld [vmem:[#allocation2 + $0x1c] sm:$0xf] }
  0x53   : > { %1933 = vmatpush.bf16.msrb.mxu2 %v4926_v40  ;;  %2422 = vmatpush.bf16.msrb.mxu3 %v4838_v55  ;;  %v4861_v40 = vld [vmem:[%s6126_s1 + $0xb8] sm:$0xff]  ;;  %v365_v48 = vrot.slane %v364_v41, 4  ;;  %v375_v55 = vrot.slane %v374_v49, 4  ;;  %v388_v26 = vor.u32 %v387_v21, %v384_v20  ;;  %v3881_v41 = vld [vmem:[#allocation2 + $0x20] sm:$0xf] }
  0x54   : > { %1844 = vmatpush.bf16.msrb.mxu1 %v4918_v2  ;;  %2511 = vmatpush.bf16.msrb.mxu0 %v4846_v3  ;;  %v4896_v3 = vld [vmem:[#allocation2 + $0x128] sm:$0xf0]  ;;  %v266_v5 = vld [vmem:[%s5353_s7 + $0x38] sm:$0x1]  ;;  %v825_v7 = vld [vmem:[%s5353_s7 + $0x30] sm:$0xe] }
  0x55   : > { %1766 = vmatmul.bf16.gmra.mxu0 %v3898_v18  ;;  %1786 = vmatmul.bf16.gmra.mxu1 %v3946_v19  ;;  %v370_v54 = vsel %vm5496_vm4, %v365_v48, %v369_v42  ;;  %v380_v2 = vsel %vm5496_vm4, %v375_v55, %v379_v56  ;;  %v4006_v11 = vor.u32 %v4896_v3, %v4005_v1  ;;  %v395_v18 = vshrl.u32 %v262_v14, 16  ;;  %v263_v19 = vld [vmem:[%s5353_s7 + $0x2c] sm:$0x1]  ;;  %v4161_v42 = vld [vmem:[#allocation2] sm:$0xf]  ;;  %v4860_v1 = vld [vmem:[%s6126_s1 + $0xb0] sm:$0xff] }
  0x56   : > { %1806 = vmatmul.bf16.gmra.mxu2 %v3994_v22  ;;  %1826 = vmatmul.bf16.gmra.mxu3 %v4042_v23  ;;  %781 = vst [vmem:[#allocation2 + $0x34] sm:$0xf] %v370_v54  ;;  %v393_v22 = vrot.slane %v391_v17, 5  ;;  %v401_v24 = vshll.u32 %v263_v19, 16  ;;  %v389_v32 = vrot.slane %v388_v26, 4 }
  0x57   : > { %3196 = vmatpush.bf16.msra.mxu2 %v4989_v38  ;;  %3285 = vmatpush.bf16.msra.mxu3 %v4997_v39  ;;  %782 = vst [vmem:[#allocation2 + $0x40] sm:$0xf] %v380_v2  ;;  %v397_v23 = vrot.slane %v395_v18, 4  ;;  %v948_v38 = vsel %vm5510_vm5, %v3808_v31, %v947_v33  ;;  %v949_v39 = vrot.slane %v947_v33, 4  ;;  %v4790_v44 = vld [vmem:[#allocation2 + $0x4] sm:$0xf] }
  0x58   : > { %2593 = vmatpush.bf16.msra.mxu1 %v4861_v40  ;;  %3374 = vmatpush.bf16.msra.mxu0 %v5005_v45  ;;  %v403_v30 = vrot.slane %v401_v24, 5  ;;  %v394_v37 = vsel %vm5496_vm4, %v389_v32, %v393_v22  ;;  %v3875_v40 = vld [vmem:[#allocation2 + $0x24] sm:$0xf0]  ;;  %v4864_v48 = vld [vmem:[#allocation2 + $0x28] sm:$0xf0]  ;;  %v5004_v2 = vld [vmem:[%s6126_s1 + $0x230] sm:$0xff] }
  0x59   : > { %v398_v29 = vor.u32 %v397_v23, %v393_v22  ;;  %783 = vst [vmem:[#allocation2 + $0x4c] sm:$0xf] %v394_v37  ;;  %v4163_v45 = vld [vmem:[#allocation2 + $0xc] sm:$0xf0]  ;;  %v951_v47 = vsel %vm5510_vm5, %v949_v39, %v950_v34  ;;  %v4791_v49 = vld [vmem:[#allocation2 + $0x8] sm:$0xf0]  ;;  %v3878_v50 = vor.u32 %v4862_v36, %v3875_v40  ;;  %v3882_v52 = vor.u32 %v4864_v48, %v3881_v41 }
  0x5a   : > { %1092 = vst [vmem:[#allocation2 + $0x50] sm:$0xf] %v948_v38  ;;  %v4166_v51 = vor.u32 %v4790_v44, %v4163_v45  ;;  %v4162_v53 = vor.u32 %v4791_v49, %v4161_v42  ;;  %v264_v54 = vld [vmem:[%s5353_s7 + $0x30] sm:$0xf]  ;;  %v265_v55 = vld [vmem:[%s5353_s7 + $0x34] sm:$0xf] }
  0x5b   : > { %v399_v35 = vrot.slane %v398_v29, 4  ;;  %1093 = vst [vmem:[#allocation2 + $0x5c] sm:$0xf] %v951_v47  ;;  %v406_v56 = vshrl.u32 %v264_v54, 16  ;;  %v409_v57 = vshll.u32 %v264_v54, 16  ;;  %v415_v58 = vshll.u32 %v265_v55, 16  ;;  %3197 = vmatpush.bf16.msra.mxu2 %v4988_v61  ;;  %3286 = vmatpush.bf16.msra.mxu3 %v4996_v62 }
  0x5c   : > { %v419_v60 = vshrl.u32 %v265_v55, 16  ;;  %v826_v8 = vld [vmem:[%s5353_s7 + $0x34] sm:$0xf]  ;;  %2594 = vmatpush.bf16.msra.mxu1 %v4860_v1  ;;  %3375 = vmatpush.bf16.msra.mxu0 %v5004_v2  ;;  %v4173_v22 = vld [vmem:[#allocation2 + $0x18] sm:$0xf] }
  0x5d   : > { %v404_v43 = vsel %vm5496_vm4, %v399_v35, %v403_v30  ;;  %v408_v63 = vrot.slane %v406_v56, 4  ;;  %v411_v0 = vrot.slane %v409_v57, 5  ;;  %v417_v3 = vrot.slane %v415_v58, 5  ;;  %v4865_v20 = vld [vmem:[#allocation2 + $0x34] sm:$0xf] }
  0x5e   : > { %784 = vst [vmem:[#allocation2 + $0x58] sm:$0xf] %v404_v43  ;;  %v421_v4 = vrot.slane %v419_v60, 4  ;;  %v954_v13 = vrot.slane %v826_v8, 5  ;;  %v4794_v23 = vld [vmem:[#allocation2 + $0x20] sm:$0xf0] }
  0x5f   : > { %v412_v6 = vor.u32 %v411_v0, %v408_v63  ;;  %v4793_v24 = vld [vmem:[#allocation2 + $0x1c] sm:$0xf]  ;;  %v3887_v27 = vld [vmem:[#allocation2 + $0x3c] sm:$0xf0]  ;;  %v4175_v28 = vld [vmem:[#allocation2 + $0x24] sm:$0xf0]  ;;  %v4174_v34 = vor.u32 %v4794_v23, %v4173_v22 }
  0x60   : > { %v956_v19 = vrot.slane %v954_v13, 4  ;;  %v3893_v29 = vld [vmem:[#allocation2 + $0x38] sm:$0xf]  ;;  %v4867_v30 = vld [vmem:[#allocation2 + $0x40] sm:$0xf0]  ;;  %v3890_v31 = vor.u32 %v4865_v20, %v3887_v27  ;;  %v4178_v32 = vor.u32 %v4793_v24, %v4175_v28  ;;  %v4995_v20 = vld [vmem:[%s6126_s1 + $0x1e8] sm:$0xff] }
  0x61   : > { %v413_v14 = vrot.slane %v412_v6, 4  ;;  %v3894_v33 = vor.u32 %v4867_v30, %v3893_v29  ;;  %v267_v35 = vld [vmem:[%s5353_s7 + $0x3c] sm:$0xf]  ;;  %v268_v36 = vld [vmem:[%s5353_s7 + $0x40] sm:$0xf]  ;;  %3287 = vmatpush.bf16.msra.mxu3 %v4995_v20 }
  0x62   : > { %v430_v37 = vshrl.u32 %v267_v35, 16  ;;  %v433_v38 = vshll.u32 %v267_v35, 16  ;;  %v439_v39 = vshll.u32 %v268_v36, 16  ;;  %v269_v40 = vld [vmem:[%s5353_s7 + $0x44] sm:$0x1]  ;;  %v443_v41 = vshrl.u32 %v268_v36, 16 }
  0x63   : > { %v418_v21 = vsel %vm5496_vm4, %v413_v14, %v417_v3  ;;  %v829_v45 = vld [vmem:[%s5353_s7 + $0x40] sm:$0xf]  ;;  %v449_v48 = vshll.u32 %v269_v40, 16  ;;  %v828_v49 = vld [vmem:[%s5353_s7 + $0x3c] sm:$0xe]  ;;  %v5003_v35 = vld [vmem:[%s6126_s1 + $0x228] sm:$0xff] }
  0x64   : > { %785 = vst [vmem:[#allocation2 + $0x64] sm:$0xf] %v418_v21  ;;  %v432_v42 = vrot.slane %v430_v37, 4  ;;  %v435_v43 = vrot.slane %v433_v38, 5  ;;  %v441_v44 = vrot.slane %v439_v39, 5  ;;  %v445_v47 = vrot.slane %v443_v41, 4  ;;  %3376 = vmatpush.bf16.msra.mxu0 %v5003_v35 }
  0x65   : > { %1771 = vmatmul.bf16.gmra.mxu0 %v3910_v9  ;;  %1791 = vmatmul.bf16.gmra.mxu1 %v3958_v10  ;;  %v422_v9 = vor.u32 %v421_v4, %v417_v3  ;;  %v425_v10 = vshll.u32 %v266_v5, 16  ;;  %v451_v56 = vrot.slane %v449_v48, 5  ;;  %v4868_v62 = vld [vmem:[#allocation2 + $0x4c] sm:$0xf]  ;;  %v4185_v63 = vld [vmem:[#allocation2 + $0x30] sm:$0xf] }
  0x66   : > { %1811 = vmatmul.bf16.gmra.mxu2 %v4006_v11  ;;  %1831 = vmatmul.bf16.gmra.mxu3 %v4054_v12  ;;  %v827_v11 = vld [vmem:[%s5353_s7 + $0x38] sm:$0x1]  ;;  %v3809_v12 = vrot.slane %v825_v7, 9  ;;  %v446_v55 = vor.u32 %v445_v47, %v441_v44  ;;  %v4797_v0 = vld [vmem:[#allocation2 + $0x38] sm:$0xf0] }
  0x67   : > { %v957_v15 = vrot.slane %v827_v11, 5  ;;  %v423_v16 = vrot.slane %v422_v9, 4  ;;  %v427_v17 = vrot.slane %v425_v10, 5  ;;  %v4796_v1 = vld [vmem:[#allocation2 + $0x34] sm:$0xf] }
  0x68   : > { %v955_v18 = vsel %vm5510_vm5, %v3809_v12, %v954_v13  ;;  %v447_v61 = vrot.slane %v446_v55, 4  ;;  %v3899_v4 = vld [vmem:[#allocation2 + $0x54] sm:$0xf0]  ;;  %v4187_v5 = vld [vmem:[#allocation2 + $0x3c] sm:$0xf0]  ;;  %v4186_v12 = vor.u32 %v4797_v0, %v4185_v63 }
  0x69   : > { %1094 = vst [vmem:[#allocation2 + $0x68] sm:$0xf] %v955_v18  ;;  %v428_v25 = vsel %vm5496_vm4, %v423_v16, %v427_v17  ;;  %v958_v26 = vsel %vm5510_vm5, %v956_v19, %v957_v15  ;;  %v3905_v7 = vld [vmem:[#allocation2 + $0x50] sm:$0xf]  ;;  %v4870_v8 = vld [vmem:[#allocation2 + $0x58] sm:$0xf0]  ;;  %v3902_v9 = vor.u32 %v4868_v62, %v3899_v4  ;;  %v4190_v10 = vor.u32 %v4796_v1, %v4187_v5 }
  0x6a   : > { %786 = vst [vmem:[#allocation2 + $0x70] sm:$0xf] %v428_v25  ;;  %v452_v6 = vsel %vm5496_vm4, %v447_v61, %v451_v56  ;;  %v3906_v11 = vor.u32 %v4870_v8, %v3905_v7  ;;  %v270_v13 = vld [vmem:[%s5353_s7 + $0x48] sm:$0xf]  ;;  %v271_v14 = vld [vmem:[%s5353_s7 + $0x4c] sm:$0xf] }
  0x6b   : > { %1095 = vst [vmem:[#allocation2 + $0x74] sm:$0xf] %v958_v26  ;;  %v454_v15 = vshrl.u32 %v270_v13, 16  ;;  %v457_v16 = vshll.u32 %v270_v13, 16  ;;  %v463_v17 = vshll.u32 %v271_v14, 16  ;;  %v467_v18 = vshrl.u32 %v271_v14, 16 }
  0x6c   : > { %788 = vst [vmem:[#allocation2 + $0x88] sm:$0xf] %v452_v6  ;;  %v4987_v19 = vld [vmem:[%s6126_s1 + $0x1a8] sm:$0xff]  ;;  %v272_v23 = vld [vmem:[%s5353_s7 + $0x50] sm:$0x1] }
  0x6d   : > { %v456_v21 = vrot.slane %v454_v15, 4  ;;  %v459_v22 = vrot.slane %v457_v16, 5  ;;  %v465_v24 = vrot.slane %v463_v17, 5  ;;  %v469_v25 = vrot.slane %v467_v18, 4  ;;  %3198 = vmatpush.bf16.msra.mxu2 %v4987_v19  ;;  %v831_v28 = vld [vmem:[%s5353_s7 + $0x48] sm:$0xe] }
  0x6e   : > { %v473_v27 = vshll.u32 %v272_v23, 16  ;;  %v832_v29 = vld [vmem:[%s5353_s7 + $0x4c] sm:$0xf]  ;;  %v275_v0 = vld [vmem:[%s5353_s7 + $0x5c] sm:$0x1] }
  0x6f   : > { %v460_v26 = vor.u32 %v459_v22, %v456_v21  ;;  %v470_v30 = vor.u32 %v469_v25, %v465_v24  ;;  %v4799_v47 = vld [vmem:[#allocation2 + $0x4c] sm:$0xf]  ;;  %v835_v5 = vld [vmem:[%s5353_s7 + $0x58] sm:$0xf]  ;;  %v497_v7 = vshll.u32 %v275_v0, 16  ;;  %v4858_v0 = vld [vmem:[%s6126_s1 + $0xa0] sm:$0xff] }
  0x70   : > { %v475_v37 = vrot.slane %v473_v27, 5  ;;  %v834_v8 = vld [vmem:[%s5353_s7 + $0x54] sm:$0xe]  ;;  %v4209_v21 = vld [vmem:[#allocation2 + $0x60] sm:$0xf] }
  0x71   : > { %v461_v36 = vrot.slane %v460_v26, 4  ;;  %v471_v39 = vrot.slane %v470_v30, 4  ;;  %v499_v15 = vrot.slane %v497_v7, 5  ;;  %v4802_v22 = vld [vmem:[#allocation2 + $0x64] sm:$0xf] }
  0x72   : > { %v4211_v23 = vld [vmem:[#allocation2 + $0x6c] sm:$0xf0]  ;;  %v4803_v30 = vld [vmem:[#allocation2 + $0x68] sm:$0xf0] }
  0x73   : > { %v476_v48 = vsel %vm5496_vm4, %v471_v39, %v475_v37  ;;  %v3923_v27 = vld [vmem:[#allocation2 + $0x84] sm:$0xf0]  ;;  %v276_v37 = vld [vmem:[%s5353_s7 + $0x60] sm:$0xf] }
  0x74   : > { %790 = vst [vmem:[#allocation2 + $0xa0] sm:$0xf] %v476_v48  ;;  %v502_v39 = vshrl.u32 %v276_v37, 16  ;;  %v278_v48 = vld [vmem:[%s5353_s7 + $0x68] sm:$0x1] }
  0x75   : > { %1845 = vmatmul.bf16.vlgmr.msrb.gmra.mxu1 %v3878_v50  ;;  %2512 = vmatmul.bf16.vlgmr.msrb.gmra.mxu0 %v4166_v51  ;;  %v830_v50 = vld [vmem:[%s5353_s7 + $0x44] sm:$0x1]  ;;  %v436_v51 = vor.u32 %v435_v43, %v432_v42  ;;  %v466_v42 = vsel %vm5496_vm4, %v461_v36, %v465_v24  ;;  %v4210_v36 = vor.u32 %v4803_v30, %v4209_v21 }
  0x76   : > { %1934 = vmatmul.bf16.vlgmr.msrb.gmra.mxu2 %v3882_v52  ;;  %2423 = vmatmul.bf16.vlgmr.msrb.gmra.mxu3 %v4162_v53  ;;  %v3810_v52 = vrot.slane %v828_v49, 9  ;;  %v961_v53 = vrot.slane %v829_v45, 5  ;;  %v964_v54 = vrot.slane %v830_v50, 5  ;;  %v4871_v43 = vld [vmem:[#allocation2 + $0x64] sm:$0xf] }
  0x77   : > { %v437_v57 = vrot.slane %v436_v51, 4  ;;  %v4197_v45 = vld [vmem:[#allocation2 + $0x48] sm:$0xf]  ;;  %789 = vst [vmem:[#allocation2 + $0x94] sm:$0xf] %v466_v42 }
  0x78   : > { %v962_v58 = vsel %vm5510_vm5, %v3810_v52, %v961_v53  ;;  %v963_v60 = vrot.slane %v961_v53, 4  ;;  %v3911_v50 = vld [vmem:[#allocation2 + $0x6c] sm:$0xf0]  ;;  %v4199_v51 = vld [vmem:[#allocation2 + $0x54] sm:$0xf0] }
  0x79   : > { %1096 = vst [vmem:[#allocation2 + $0x80] sm:$0xf] %v962_v58  ;;  %v442_v2 = vsel %vm5496_vm4, %v437_v57, %v441_v44  ;;  %v3917_v44 = vld [vmem:[#allocation2 + $0x68] sm:$0xf]  ;;  %v4873_v52 = vld [vmem:[#allocation2 + $0x70] sm:$0xf0]  ;;  %v4202_v55 = vor.u32 %v4799_v47, %v4199_v51 }
  0x7a   : > { %v965_v3 = vsel %vm5510_vm5, %v963_v60, %v964_v54  ;;  %787 = vst [vmem:[#allocation2 + $0x7c] sm:$0xf] %v442_v2  ;;  %v4800_v53 = vld [vmem:[#allocation2 + $0x50] sm:$0xf0]  ;;  %v3914_v54 = vor.u32 %v4871_v43, %v3911_v50  ;;  %v3918_v56 = vor.u32 %v4873_v52, %v3917_v44  ;;  %v274_v60 = vld [vmem:[%s5353_s7 + $0x58] sm:$0xf] }
  0x7b   : > { %1097 = vst [vmem:[#allocation2 + $0x8c] sm:$0xf] %v965_v3  ;;  %v4198_v57 = vor.u32 %v4800_v53, %v4197_v45  ;;  %v273_v58 = vld [vmem:[%s5353_s7 + $0x54] sm:$0xf]  ;;  %v487_v63 = vshll.u32 %v274_v60, 16  ;;  %v491_v1 = vshrl.u32 %v274_v60, 16 }
  0x7c   : > { %v478_v61 = vshrl.u32 %v273_v58, 16  ;;  %v481_v62 = vshll.u32 %v273_v58, 16  ;;  %v4986_v43 = vld [vmem:[%s6126_s1 + $0x1a0] sm:$0xff]  ;;  %v504_v45 = vrot.slane %v502_v39, 4  ;;  %v521_v52 = vshll.u32 %v278_v48, 16 }
  0x7d   : > { %v489_v4 = vrot.slane %v487_v63, 5  ;;  %v493_v6 = vrot.slane %v491_v1, 4  ;;  %v4994_v44 = vld [vmem:[%s6126_s1 + $0x1e0] sm:$0xff]  ;;  %3199 = vmatpush.bf16.msra.mxu2 %v4986_v43  ;;  %v839_v58 = vld [vmem:[%s5353_s7 + $0x68] sm:$0x1] }
  0x7e   : > { %v480_v2 = vrot.slane %v478_v61, 4  ;;  %v483_v3 = vrot.slane %v481_v62, 5  ;;  %3288 = vmatpush.bf16.msra.mxu3 %v4994_v44  ;;  %v837_v53 = vld [vmem:[%s5353_s7 + $0x60] sm:$0xe]  ;;  %v841_v39 = vld [vmem:[%s5353_s7 + $0x70] sm:$0xf] }
  0x7f   : > { %v494_v14 = vor.u32 %v493_v6, %v489_v4  ;;  %v3813_v60 = vrot.slane %v837_v53, 9  ;;  %v5002_v1 = vld [vmem:[%s6126_s1 + $0x220] sm:$0xff]  ;;  %v842_v43 = vld [vmem:[%s5353_s7 + $0x74] sm:$0x1] }
  0x80   : > { %v3929_v20 = vld [vmem:[#allocation2 + $0x80] sm:$0xf]  ;;  %3377 = vmatpush.bf16.msra.mxu0 %v5002_v1  ;;  %v4233_v1 = vld [vmem:[#allocation2 + $0x90] sm:$0xf] }
  0x81   : > { %v495_v19 = vrot.slane %v494_v14, 4  ;;  %v4874_v26 = vld [vmem:[#allocation2 + $0x7c] sm:$0xf] }
  0x85   : > { %1850 = vmatmul.bf16.gmra.mxu1 %v3890_v31  ;;  %2517 = vmatmul.bf16.gmra.mxu0 %v4178_v32  ;;  %v833_v31 = vld [vmem:[%s5353_s7 + $0x50] sm:$0x1]  ;;  %v3811_v32 = vrot.slane %v831_v28, 9  ;;  %v500_v28 = vsel %vm5496_vm4, %v495_v19, %v499_v15  ;;  %v3935_v15 = vld [vmem:[#allocation2 + $0x9c] sm:$0xf0] }
  0x86   : > { %1939 = vmatmul.bf16.gmra.mxu2 %v3894_v33  ;;  %2428 = vmatmul.bf16.gmra.mxu3 %v4174_v34  ;;  %v968_v33 = vrot.slane %v832_v29, 5  ;;  %v4859_v34 = vld [vmem:[%s6126_s1 + $0xa8] sm:$0xff]  ;;  %v971_v38 = vrot.slane %v833_v31, 5  ;;  %792 = vst [vmem:[#allocation2 + $0xb8] sm:$0xf] %v500_v28  ;;  %v3926_v31 = vor.u32 %v4874_v26, %v3923_v27 }
  0x87   : > { %2595 = vmatpush.bf16.msra.mxu1 %v4859_v34  ;;  %v4876_v29 = vld [vmem:[#allocation2 + $0x88] sm:$0xf0]  ;;  %v280_v28 = vld [vmem:[%s5353_s7 + $0x70] sm:$0xf] }
  0x88   : > { %v969_v40 = vsel %vm5510_vm5, %v3811_v32, %v968_v33  ;;  %v970_v41 = vrot.slane %v968_v33, 4  ;;  %v4214_v32 = vor.u32 %v4802_v22, %v4211_v23  ;;  %v3930_v35 = vor.u32 %v4876_v29, %v3929_v20  ;;  %v279_v27 = vld [vmem:[%s5353_s7 + $0x6c] sm:$0xf] }
  0x89   : > { %1098 = vst [vmem:[#allocation2 + $0x98] sm:$0xf] %v969_v40  ;;  %v505_v40 = vshll.u32 %v276_v37, 16  ;;  %v526_v29 = vshrl.u32 %v279_v27, 16  ;;  %v529_v30 = vshll.u32 %v279_v27, 16 }
  0x8a   : > { %v972_v49 = vsel %vm5510_vm5, %v970_v41, %v971_v38  ;;  %v277_v38 = vld [vmem:[%s5353_s7 + $0x64] sm:$0xf] }
  0x8b   : > { %1099 = vst [vmem:[#allocation2 + $0xa4] sm:$0xf] %v972_v49  ;;  %v511_v41 = vshll.u32 %v277_v38, 16  ;;  %v515_v42 = vshrl.u32 %v277_v38, 16  ;;  %v507_v47 = vrot.slane %v505_v40, 5  ;;  %2596 = vmatpush.bf16.msra.mxu1 %v4858_v0  ;;  %v531_v37 = vrot.slane %v529_v30, 5 }
  0x8c   : > { %v4993_v30 = vld [vmem:[%s6126_s1 + $0x1d8] sm:$0xff] }
  0x8d   : > { %v513_v49 = vrot.slane %v511_v41, 5  ;;  %v517_v50 = vrot.slane %v515_v42, 4  ;;  %v508_v51 = vor.u32 %v507_v47, %v504_v45  ;;  %v840_v42 = vld [vmem:[%s5353_s7 + $0x6c] sm:$0xe]  ;;  %3289 = vmatpush.bf16.msra.mxu3 %v4993_v30 }
  0x8e   : > { %v3814_v48 = vrot.slane %v840_v42, 9 }
  0x95   : > { %1855 = vmatmul.bf16.gmra.mxu1 %v3902_v9  ;;  %2522 = vmatmul.bf16.gmra.mxu0 %v4190_v10  ;;  %v836_v9 = vld [vmem:[%s5353_s7 + $0x5c] sm:$0x1]  ;;  %v484_v10 = vor.u32 %v483_v3, %v480_v2  ;;  %v509_v2 = vrot.slane %v508_v51, 4  ;;  %v523_v3 = vrot.slane %v521_v52, 5 }
  0x96   : > { %1944 = vmatmul.bf16.gmra.mxu2 %v3906_v11  ;;  %2433 = vmatmul.bf16.gmra.mxu3 %v4186_v12  ;;  %v3812_v11 = vrot.slane %v834_v8, 9  ;;  %v975_v12 = vrot.slane %v835_v5, 5  ;;  %v978_v13 = vrot.slane %v836_v9, 5  ;;  %v4877_v9 = vld [vmem:[#allocation2 + $0x94] sm:$0xf] }
  0x97   : > { %v485_v16 = vrot.slane %v484_v10, 4  ;;  %v514_v8 = vsel %vm5496_vm4, %v509_v2, %v513_v49  ;;  %v3941_v10 = vld [vmem:[#allocation2 + $0x98] sm:$0xf]  ;;  %v3938_v21 = vor.u32 %v4877_v9, %v3935_v15  ;;  %v4808_v2 = vld [vmem:[#allocation2 + $0x94] sm:$0xf] }
  0x98   : > { %v976_v17 = vsel %vm5510_vm5, %v3812_v11, %v975_v12  ;;  %v977_v18 = vrot.slane %v975_v12, 4  ;;  %v4221_v11 = vld [vmem:[#allocation2 + $0x78] sm:$0xf]  ;;  %v4805_v12 = vld [vmem:[#allocation2 + $0x7c] sm:$0xf] }
  0x99   : > { %1100 = vst [vmem:[#allocation2 + $0xb0] sm:$0xf] %v976_v17  ;;  %v490_v24 = vsel %vm5496_vm4, %v485_v16, %v489_v4  ;;  %v985_v4 = vrot.slane %v839_v58, 5  ;;  %v4223_v16 = vld [vmem:[#allocation2 + $0x84] sm:$0xf0] }
  0x9a   : > { %v979_v25 = vsel %vm5510_vm5, %v977_v18, %v978_v13  ;;  %791 = vst [vmem:[#allocation2 + $0xac] sm:$0xf] %v490_v24  ;;  %v4879_v17 = vld [vmem:[#allocation2 + $0xa0] sm:$0xf0]  ;;  %v4226_v22 = vor.u32 %v4805_v12, %v4223_v16 }
  0x9b   : > { %1101 = vst [vmem:[#allocation2 + $0xbc] sm:$0xf] %v979_v25  ;;  %v4806_v18 = vld [vmem:[#allocation2 + $0x80] sm:$0xf0]  ;;  %v3942_v25 = vor.u32 %v4879_v17, %v3941_v10  ;;  %v4809_v10 = vld [vmem:[#allocation2 + $0x98] sm:$0xf0] }
  0x9c   : > { %793 = vst [vmem:[#allocation2 + $0xc4] sm:$0xf] %v514_v8  ;;  %v4222_v26 = vor.u32 %v4806_v18, %v4221_v11  ;;  %v4234_v18 = vor.u32 %v4809_v10, %v4233_v1 }
  0xa0   : > { %v3953_v0 = vld [vmem:[#allocation2 + $0xb0] sm:$0xf] }
  0xa2   : > { %v4882_v9 = vld [vmem:[#allocation2 + $0xb8] sm:$0xf0] }
  0xa3   : > { %v3954_v17 = vor.u32 %v4882_v9, %v3953_v0 }
  0xa5   : > { %1860 = vmatmul.bf16.gmra.mxu1 %v3914_v54  ;;  %2527 = vmatmul.bf16.gmra.mxu0 %v4202_v55  ;;  %v838_v54 = vld [vmem:[%s5353_s7 + $0x64] sm:$0xf] }
  0xa6   : > { %1949 = vmatmul.bf16.gmra.mxu2 %v3918_v56  ;;  %2438 = vmatmul.bf16.gmra.mxu3 %v4198_v57  ;;  %v518_v57 = vor.u32 %v517_v50, %v513_v49  ;;  %v982_v61 = vrot.slane %v838_v54, 5  ;;  %v989_v49 = vrot.slane %v841_v39, 5  ;;  %v992_v50 = vrot.slane %v842_v43, 5 }
  0xa8   : > { %v519_v5 = vrot.slane %v518_v57, 4  ;;  %v983_v6 = vsel %vm5510_vm5, %v3813_v60, %v982_v61  ;;  %v984_v7 = vrot.slane %v982_v61, 4  ;;  %v990_v58 = vsel %vm5510_vm5, %v3814_v48, %v989_v49  ;;  %v845_v48 = vld [vmem:[%s5353_s7 + $0x80] sm:$0x1] }
  0xa9   : > { %1102 = vst [vmem:[#allocation2 + $0xc8] sm:$0xf] %v983_v6  ;;  %v991_v60 = vrot.slane %v989_v49, 4  ;;  %v4880_v6 = vld [vmem:[#allocation2 + $0xac] sm:$0xf] }
  0xaa   : > { %v524_v13 = vsel %vm5496_vm4, %v519_v5, %v523_v3  ;;  %v986_v14 = vsel %vm5510_vm5, %v984_v7, %v985_v4  ;;  %1104 = vst [vmem:[#allocation2 + $0xe0] sm:$0xf] %v990_v58  ;;  %v4235_v3 = vld [vmem:[#allocation2 + $0x9c] sm:$0xf0]  ;;  %v3947_v7 = vld [vmem:[#allocation2 + $0xb4] sm:$0xf0] }
  0xab   : > { %794 = vst [vmem:[#allocation2 + $0xd0] sm:$0xf] %v524_v13  ;;  %v993_v5 = vsel %vm5510_vm5, %v991_v60, %v992_v50  ;;  %v3950_v13 = vor.u32 %v4880_v6, %v3947_v7  ;;  %v999_v60 = vrot.slane %v845_v48, 5  ;;  %v4245_v7 = vld [vmem:[#allocation2 + $0xa8] sm:$0xf] }
  0xac   : > { %1103 = vst [vmem:[#allocation2 + $0xd4] sm:$0xf] %v986_v14  ;;  %v4238_v14 = vor.u32 %v4808_v2, %v4235_v3  ;;  %v4857_v2 = vld [vmem:[%s6126_s1 + $0x98] sm:$0xff]  ;;  %v847_v48 = vld [vmem:[%s5353_s7 + $0x88] sm:$0xf] }
  0xad   : > { %1105 = vst [vmem:[#allocation2 + $0xec] sm:$0xf] %v993_v5  ;;  %v5001_v3 = vld [vmem:[%s6126_s1 + $0x218] sm:$0xff]  ;;  %v4883_v5 = vld [vmem:[#allocation2 + $0xc4] sm:$0xf]  ;;  %2597 = vmatpush.bf16.msra.mxu1 %v4857_v2  ;;  %v1003_v2 = vrot.slane %v847_v48, 5 }
  0xae   : > { %3378 = vmatpush.bf16.msra.mxu0 %v5001_v3 }
  0xb0   : > { %v3965_v6 = vld [vmem:[#allocation2 + $0xc8] sm:$0xf] }
  0xb2   : > { %v5653_v33 = vpop.f32.mrf.mxu0  ;;  %v5655_v34 = vpop.f32.mrf.mxu1 }
  0xb5   : > { %1865 = vmatmul.bf16.gmra.mxu1 %v3926_v31  ;;  %2532 = vmatmul.bf16.gmra.mxu0 %v4214_v32  ;;  %v535_v31 = vshll.u32 %v280_v28, 16  ;;  %v281_v32 = vld [vmem:[%s5353_s7 + $0x74] sm:$0x1] }
  0xb6   : > { %1954 = vmatmul.bf16.gmra.mxu2 %v3930_v35  ;;  %2443 = vmatmul.bf16.gmra.mxu3 %v4210_v36  ;;  %v539_v35 = vshrl.u32 %v280_v28, 16  ;;  %v528_v36 = vrot.slane %v526_v29, 4  ;;  %v545_v41 = vshll.u32 %v281_v32, 16  ;;  %v4985_v29 = vld [vmem:[%s6126_s1 + $0x198] sm:$0xff] }
  0xb7   : > { %v537_v38 = vrot.slane %v535_v31, 5  ;;  %3200 = vmatpush.bf16.msra.mxu2 %v4985_v29 }
  0xb8   : > { %v541_v40 = vrot.slane %v539_v35, 4  ;;  %v532_v47 = vor.u32 %v531_v37, %v528_v36  ;;  %v547_v54 = vrot.slane %v545_v41, 5  ;;  %v284_v35 = vld [vmem:[%s5353_s7 + $0x80] sm:$0x1]  ;;  %v844_v41 = vld [vmem:[%s5353_s7 + $0x7c] sm:$0xf] }
  0xb9   : > { %v5668_v55 = vpop.f32.mrf.mxu2  ;;  %v5670_v56 = vpop.f32.mrf.mxu3  ;;  %v569_v39 = vshll.u32 %v284_v35, 16  ;;  %v996_v50 = vrot.slane %v844_v41, 5 }
  0xba   : > { %v5673_v62 = vpop.f32.mrf.mxu0  ;;  %v5675_v63 = vpop.f32.mrf.mxu1  ;;  %v542_v53 = vor.u32 %v541_v40, %v537_v38  ;;  %v533_v57 = vrot.slane %v532_v47, 4  ;;  %v843_v40 = vld [vmem:[%s5353_s7 + $0x78] sm:$0xe] }
  0xbb   : > { %v3815_v49 = vrot.slane %v843_v40, 9  ;;  %v571_v58 = vrot.slane %v569_v39, 5  ;;  %v998_v1 = vrot.slane %v996_v50, 4 }
  0xbc   : > { %v543_v61 = vrot.slane %v542_v53, 4  ;;  %v538_v4 = vsel %vm5496_vm4, %v533_v57, %v537_v38 }
  0xbd   : > { %795 = vst [vmem:[#allocation2 + $0xdc] sm:$0xf] %v538_v4  ;;  %v997_v0 = vsel %vm5510_vm5, %v3815_v49, %v996_v50  ;;  %v1000_v10 = vsel %vm5510_vm5, %v998_v1, %v999_v60 }
  0xbe   : > { %v548_v8 = vsel %vm5496_vm4, %v543_v61, %v547_v54  ;;  %1106 = vst [vmem:[#allocation2 + $0xf8] sm:$0xf] %v997_v0 }
  0xbf   : > { %796 = vst [vmem:[#allocation2 + $0xe8] sm:$0xf] %v548_v8  ;;  %v4811_v8 = vld [vmem:[#allocation2 + $0xac] sm:$0xf] }
  0xc0   : > { %1107 = vst [vmem:[#allocation2 + $0x104] sm:$0xf] %v1000_v10  ;;  %v1005_v10 = vrot.slane %v1003_v2, 4 }
  0xc1   : > { %v5691_v19 = vpop.f32.mrf.mxu2  ;;  %v5693_v20 = vpop.f32.mrf.mxu3 }
  0xc2   : > { %v5695_v23 = vpop.f32.mrf.mxu0  ;;  %v5697_v24 = vpop.f32.mrf.mxu1 }
  0xc5   : > { %1870 = vmatmul.bf16.gmra.mxu1 %v3938_v21  ;;  %2537 = vmatmul.bf16.gmra.mxu0 %v4226_v22  ;;  %v282_v21 = vld [vmem:[%s5353_s7 + $0x78] sm:$0xf]  ;;  %v283_v22 = vld [vmem:[%s5353_s7 + $0x7c] sm:$0xf] }
  0xc6   : > { %1959 = vmatmul.bf16.gmra.mxu2 %v3942_v25  ;;  %2448 = vmatmul.bf16.gmra.mxu3 %v4222_v26  ;;  %v550_v25 = vshrl.u32 %v282_v21, 16  ;;  %v553_v26 = vshll.u32 %v282_v21, 16  ;;  %v559_v27 = vshll.u32 %v283_v22, 16  ;;  %v563_v28 = vshrl.u32 %v283_v22, 16 }
  0xc8   : > { %v552_v31 = vrot.slane %v550_v25, 4  ;;  %v555_v32 = vrot.slane %v553_v26, 5  ;;  %v561_v36 = vrot.slane %v559_v27, 5  ;;  %v565_v37 = vrot.slane %v563_v28, 4 }
  0xc9   : > { %v5705_v44 = vpop.f32.mrf.mxu2  ;;  %v5707_v45 = vpop.f32.mrf.mxu3 }
  0xca   : > { %v5709_v51 = vpop.f32.mrf.mxu0  ;;  %v5711_v52 = vpop.f32.mrf.mxu1  ;;  %v556_v38 = vor.u32 %v555_v32, %v552_v31  ;;  %v566_v47 = vor.u32 %v565_v37, %v561_v36  ;;  %v285_v31 = vld [vmem:[%s5353_s7 + $0x84] sm:$0xf]  ;;  %v286_v32 = vld [vmem:[%s5353_s7 + $0x88] sm:$0xf] }
  0xcb   : > { %v574_v35 = vshrl.u32 %v285_v31, 16  ;;  %v583_v37 = vshll.u32 %v286_v32, 16  ;;  %v587_v39 = vshrl.u32 %v286_v32, 16 }
  0xcc   : > { %v557_v57 = vrot.slane %v556_v38, 4  ;;  %v567_v61 = vrot.slane %v566_v47, 4  ;;  %v287_v38 = vld [vmem:[%s5353_s7 + $0x8c] sm:$0x1] }
  0xcd   : > { %v576_v40 = vrot.slane %v574_v35, 4  ;;  %v585_v47 = vrot.slane %v583_v37, 5  ;;  %v589_v49 = vrot.slane %v587_v39, 4  ;;  %v593_v50 = vshll.u32 %v287_v38, 16  ;;  %v4888_v35 = vld [vmem:[#allocation2 + $0xe8] sm:$0xf0] }
  0xce   : > { %v562_v4 = vsel %vm5496_vm4, %v557_v57, %v561_v36  ;;  %v572_v9 = vsel %vm5496_vm4, %v567_v61, %v571_v58  ;;  %v577_v36 = vshll.u32 %v285_v31, 16  ;;  %v846_v57 = vld [vmem:[%s5353_s7 + $0x84] sm:$0xe]  ;;  %v848_v58 = vld [vmem:[%s5353_s7 + $0x8c] sm:$0x1] }
  0xcf   : > { %797 = vst [vmem:[#allocation2 + $0xf4] sm:$0xf] %v562_v4  ;;  %v3816_v1 = vrot.slane %v846_v57, 9  ;;  %v1006_v3 = vrot.slane %v848_v58, 5  ;;  %v3971_v31 = vld [vmem:[#allocation2 + $0xe4] sm:$0xf0] }
  0xd0   : > { %798 = vst [vmem:[#allocation2 + $0x100] sm:$0xf] %v572_v9  ;;  %v579_v41 = vrot.slane %v577_v36, 5  ;;  %v4815_v36 = vld [vmem:[#allocation2 + $0xc8] sm:$0xf0] }
  0xd1   : > { %v5721_v11 = vpop.f32.mrf.mxu2  ;;  %v5723_v12 = vpop.f32.mrf.mxu3  ;;  %v1004_v9 = vsel %vm5510_vm5, %v3816_v1, %v1003_v2  ;;  %v289_v57 = vld [vmem:[%s5353_s7 + $0x94] sm:$0xf] }
  0xd2   : > { %v5725_v15 = vpop.f32.mrf.mxu0  ;;  %v5727_v16 = vpop.f32.mrf.mxu1  ;;  %v580_v0 = vor.u32 %v579_v41, %v576_v40  ;;  %1108 = vst [vmem:[#allocation2 + $0x110] sm:$0xf] %v1004_v9  ;;  %v607_v2 = vshll.u32 %v289_v57, 16  ;;  %v290_v9 = vld [vmem:[%s5353_s7 + $0x98] sm:$0x1] }
  0xd5   : > { %1875 = vmatmul.bf16.gmra.mxu1 %v3950_v13  ;;  %2542 = vmatmul.bf16.gmra.mxu0 %v4238_v14  ;;  %v3959_v13 = vld [vmem:[#allocation2 + $0xcc] sm:$0xf0]  ;;  %v4247_v14 = vld [vmem:[#allocation2 + $0xb4] sm:$0xf0] }
  0xd6   : > { %1964 = vmatmul.bf16.gmra.mxu2 %v3954_v17  ;;  %2453 = vmatmul.bf16.gmra.mxu3 %v4234_v18  ;;  %v4885_v17 = vld [vmem:[#allocation2 + $0xd0] sm:$0xf0]  ;;  %v3962_v25 = vor.u32 %v4883_v5, %v3959_v13  ;;  %v4250_v26 = vor.u32 %v4811_v8, %v4247_v14  ;;  %v581_v8 = vrot.slane %v580_v0, 4  ;;  %v3977_v14 = vld [vmem:[#allocation2 + $0xe0] sm:$0xf] }
  0xd7   : > { %v4812_v18 = vld [vmem:[#allocation2 + $0xb0] sm:$0xf0]  ;;  %v3966_v29 = vor.u32 %v4885_v17, %v3965_v6  ;;  %v590_v6 = vor.u32 %v589_v49, %v585_v47  ;;  %v4257_v17 = vld [vmem:[#allocation2 + $0xc0] sm:$0xf]  ;;  %v3978_v48 = vor.u32 %v4888_v35, %v3977_v14 }
  0xd8   : > { %v4246_v30 = vor.u32 %v4812_v18, %v4245_v7  ;;  %v595_v7 = vrot.slane %v593_v50, 5  ;;  %v4814_v18 = vld [vmem:[#allocation2 + $0xc4] sm:$0xf]  ;;  %v4258_v49 = vor.u32 %v4815_v36, %v4257_v17  ;;  %v288_v50 = vld [vmem:[%s5353_s7 + $0x90] sm:$0xf]  ;;  %v617_v17 = vshll.u32 %v290_v9, 16 }
  0xd9   : > { %v5740_v42 = vpop.f32.mrf.mxu2  ;;  %v5742_v43 = vpop.f32.mrf.mxu3  ;;  %v591_v13 = vrot.slane %v590_v6, 4  ;;  %v598_v0 = vshrl.u32 %v288_v50, 16  ;;  %v601_v1 = vshll.u32 %v288_v50, 16  ;;  %v4984_v6 = vld [vmem:[%s6126_s1 + $0x190] sm:$0xff] }
  0xda   : > { %v5745_v53 = vpop.f32.mrf.mxu0  ;;  %v5747_v54 = vpop.f32.mrf.mxu1  ;;  %3201 = vmatpush.bf16.msra.mxu2 %v4984_v6 }
  0xdb   : > { %v596_v32 = vsel %vm5496_vm4, %v591_v13, %v595_v7  ;;  %v4992_v7 = vld [vmem:[%s6126_s1 + $0x1d0] sm:$0xff] }
  0xdc   : > { %800 = vst [vmem:[#allocation2 + $0x118] sm:$0xf] %v596_v32  ;;  %3290 = vmatpush.bf16.msra.mxu3 %v4992_v7  ;;  %v4889_v7 = vld [vmem:[#allocation2 + $0xf4] sm:$0xf] }
  0xe1   : > { %v5763_v21 = vpop.f32.mrf.mxu2  ;;  %v5765_v22 = vpop.f32.mrf.mxu3 }
  0xe2   : > { %v5767_v27 = vpop.f32.mrf.mxu0  ;;  %v5769_v28 = vpop.f32.mrf.mxu1 }
  0xe5   : > { %1880 = vmatmul.bf16.gmra.mxu1 %v3962_v25  ;;  %2547 = vmatmul.bf16.gmra.mxu0 %v4250_v26  ;;  %v4259_v25 = vld [vmem:[#allocation2 + $0xcc] sm:$0xf0]  ;;  %v586_v26 = vsel %vm5496_vm4, %v581_v8, %v585_v47  ;;  %v603_v8 = vrot.slane %v601_v1, 5 }
  0xe6   : > { %1969 = vmatmul.bf16.gmra.mxu2 %v3966_v29  ;;  %2458 = vmatmul.bf16.gmra.mxu3 %v4246_v30  ;;  %v1007_v29 = vsel %vm5510_vm5, %v1005_v10, %v1006_v3  ;;  %v4886_v30 = vld [vmem:[#allocation2 + $0xdc] sm:$0xf]  ;;  %799 = vst [vmem:[#allocation2 + $0x10c] sm:$0xf] %v586_v26  ;;  %v4262_v40 = vor.u32 %v4814_v18, %v4259_v25  ;;  %v611_v3 = vshrl.u32 %v289_v57, 16  ;;  %v609_v10 = vrot.slane %v607_v2, 5 }
  0xe7   : > { %1109 = vst [vmem:[#allocation2 + $0x11c] sm:$0xf] %v1007_v29  ;;  %v3974_v39 = vor.u32 %v4886_v30, %v3971_v31  ;;  %v849_v18 = vld [vmem:[%s5353_s7 + $0x90] sm:$0xe]  ;;  %v850_v25 = vld [vmem:[%s5353_s7 + $0x94] sm:$0xf] }
  0xe8   : > { %v613_v13 = vrot.slane %v611_v3, 4  ;;  %v851_v31 = vld [vmem:[%s5353_s7 + $0x98] sm:$0x1]  ;;  %v3817_v32 = vrot.slane %v849_v18, 9  ;;  %v1010_v35 = vrot.slane %v850_v25, 5  ;;  %v4856_v3 = vld [vmem:[%s6126_s1 + $0x90] sm:$0xff] }
  0xe9   : > { %v5777_v60 = vpop.f32.mrf.mxu2  ;;  %v5779_v61 = vpop.f32.mrf.mxu3  ;;  %2598 = vmatpush.bf16.msra.mxu1 %v4856_v3  ;;  %v4891_v18 = vld [vmem:[#allocation2 + $0x100] sm:$0xf0] }
  0xea   : > { %v5781_v4 = vpop.f32.mrf.mxu0  ;;  %v5783_v5 = vpop.f32.mrf.mxu1  ;;  %v614_v30 = vor.u32 %v613_v13, %v609_v10  ;;  %v1012_v1 = vrot.slane %v1010_v35, 4  ;;  %v4818_v25 = vld [vmem:[#allocation2 + $0xe0] sm:$0xf0] }
  0xec   : > { %v615_v57 = vrot.slane %v614_v30, 4 }
  0xf1   : > { %v5793_v37 = vpop.f32.mrf.mxu2  ;;  %v5795_v38 = vpop.f32.mrf.mxu3 }
  0xf2   : > { %v1846_v41 = vpop.f32.mrf.mxu1  ;;  %v2513_v47 = vpop.f32.mrf.mxu0 }
  0xf3   : > { %v1847_v58 = vadd.f32 %v1846_v41, %v5653_v33  ;;  %v600_v33 = vrot.slane %v598_v0, 4  ;;  %v1011_v0 = vsel %vm5510_vm5, %v3817_v32, %v1010_v35 }
  0xf4   : > { %1110 = vst [vmem:[#allocation2 + $0x128] sm:$0xf] %v1011_v0 }
  0xf5   : > { %1885 = vmatmul.bf16.gmra.mxu1 %v3974_v39  ;;  %2552 = vmatmul.bf16.gmra.mxu0 %v4262_v40  ;;  %v604_v14 = vor.u32 %v603_v8, %v600_v33  ;;  %v4269_v33 = vld [vmem:[#allocation2 + $0xd8] sm:$0xf]  ;;  %v4817_v8 = vld [vmem:[#allocation2 + $0xdc] sm:$0xf] }
  0xf6   : > { %1974 = vmatmul.bf16.gmra.mxu2 %v3978_v48  ;;  %2463 = vmatmul.bf16.gmra.mxu3 %v4258_v49  ;;  %v619_v48 = vrot.slane %v617_v17, 5  ;;  %v1013_v49 = vrot.slane %v851_v31, 5  ;;  %v4271_v17 = vld [vmem:[#allocation2 + $0xe4] sm:$0xf0] }
  0xf7   : > { %v605_v41 = vrot.slane %v604_v14, 4  ;;  %v3983_v14 = vld [vmem:[#allocation2 + $0xfc] sm:$0xf0]  ;;  %v4274_v31 = vor.u32 %v4817_v8, %v4271_v17 }
  0xf8   : > { %v620_v9 = vsel %vm5496_vm4, %v615_v57, %v619_v48  ;;  %v1014_v13 = vsel %vm5510_vm5, %v1012_v1, %v1013_v49  ;;  %v3986_v30 = vor.u32 %v4889_v7, %v3983_v14  ;;  %v291_v48 = vld [vmem:[%s5353_s7 + $0x9c] sm:$0xf]  ;;  %v292_v49 = vld [vmem:[%s5353_s7 + $0xa0] sm:$0xf] }
  0xf9   : > { %v1935_v26 = vpop.f32.mrf.mxu2  ;;  %v2424_v29 = vpop.f32.mrf.mxu3  ;;  %v610_v6 = vsel %vm5496_vm4, %v605_v41, %v609_v10  ;;  %802 = vst [vmem:[#allocation2 + $0x130] sm:$0xf] %v620_v9  ;;  %v4270_v41 = vor.u32 %v4818_v25, %v4269_v33  ;;  %v622_v0 = vshrl.u32 %v291_v48, 16  ;;  %v625_v1 = vshll.u32 %v291_v48, 16  ;;  %v853_v33 = vld [vmem:[%s5353_s7 + $0xa0] sm:$0xf] }
  0xfa   : > { %v1936_v36 = vadd.f32 %v1935_v26, %v1847_v58  ;;  %v1848_v39 = vpop.f32.mrf.mxu1  ;;  %v2515_v40 = vpop.f32.mrf.mxu0  ;;  %v5000_v58 = vld [vmem:[%s6126_s1 + $0x210] sm:$0xff]  ;;  %801 = vst [vmem:[#allocation2 + $0x124] sm:$0xf] %v610_v6  ;;  %v635_v3 = vshrl.u32 %v292_v49, 16  ;;  %v852_v9 = vld [vmem:[%s5353_s7 + $0x9c] sm:$0xe] }
  0xfb   : > { %v1849_v50 = vadd.f32 %v1848_v39, %v5673_v62  ;;  %v3989_v62 = vld [vmem:[#allocation2 + $0xf8] sm:$0xf]  ;;  %3379 = vmatpush.bf16.msra.mxu0 %v5000_v58  ;;  %1111 = vst [vmem:[#allocation2 + $0x134] sm:$0xf] %v1014_v13  ;;  %v624_v6 = vrot.slane %v622_v0, 4  ;;  %v627_v7 = vrot.slane %v625_v1, 5 }
  0xfc   : > { %v2425_v2 = vadd.f32 %v2424_v29, %v1936_v36  ;;  %v3990_v39 = vor.u32 %v4891_v18, %v3989_v62  ;;  %v637_v8 = vrot.slane %v635_v3, 4  ;;  %v854_v13 = vld [vmem:[%s5353_s7 + $0xa4] sm:$0x1]  ;;  %v3818_v25 = vrot.slane %v852_v9, 9  ;;  %v4001_v1 = vld [vmem:[#allocation2 + $0x110] sm:$0xf] }
  0xfd   : > { %v628_v18 = vor.u32 %v627_v7, %v624_v6  ;;  %v4283_v3 = vld [vmem:[#allocation2 + $0xfc] sm:$0xf0]  ;;  %v4892_v7 = vld [vmem:[#allocation2 + $0x10c] sm:$0xf]  ;;  %v4821_v9 = vld [vmem:[#allocation2 + $0xf8] sm:$0xf0] }
  0xfe   : > { %v5825_v10 = vadd.f32 %v2513_v47, %v2425_v2  ;;  %v631_v2 = vshll.u32 %v292_v49, 16 }
 0x100   : > { %v633_v62 = vrot.slane %v631_v2, 5  ;;  %v4281_v2 = vld [vmem:[#allocation2 + $0xf0] sm:$0xf] }
 0x101   : > { %v1937_v26 = vpop.f32.mrf.mxu2  ;;  %v2426_v29 = vpop.f32.mrf.mxu3 }
 0x102   : > { %v1938_v32 = vadd.f32 %v1937_v26, %v1849_v50  ;;  %v1851_v35 = vpop.f32.mrf.mxu1  ;;  %v2518_v36 = vpop.f32.mrf.mxu0  ;;  %v293_v50 = vld [vmem:[%s5353_s7 + $0xa4] sm:$0x1]  ;;  %v1017_v26 = vrot.slane %v853_v33, 5 }
 0x103   : > { %v1852_v57 = vadd.f32 %v1851_v35, %v5695_v23  ;;  %v641_v23 = vshll.u32 %v293_v50, 16  ;;  %v638_v35 = vor.u32 %v637_v8, %v633_v62  ;;  %v4820_v50 = vld [vmem:[#allocation2 + $0xf4] sm:$0xf] }
 0x104   : > { %v2427_v47 = vadd.f32 %v2426_v29, %v1938_v32  ;;  %v1020_v29 = vrot.slane %v854_v13, 5  ;;  %v1018_v48 = vsel %vm5510_vm5, %v3818_v25, %v1017_v26  ;;  %v1019_v49 = vrot.slane %v1017_v26, 4 }
 0x105   : > { %1890 = vmatmul.bf16.gmra.mxu1 %v3986_v30  ;;  %2557 = vmatmul.bf16.gmra.mxu0 %v4274_v31  ;;  %v639_v0 = vrot.slane %v638_v35, 4  ;;  %1112 = vst [vmem:[#allocation2 + $0x140] sm:$0xf] %v1018_v48  ;;  %v295_v35 = vld [vmem:[%s5353_s7 + $0xac] sm:$0xf] }
 0x106   : > { %1979 = vmatmul.bf16.gmra.mxu2 %v3990_v39  ;;  %2468 = vmatmul.bf16.gmra.mxu3 %v4270_v41  ;;  %v5831_v58 = vadd.f32 %v2515_v40, %v2427_v47  ;;  %v643_v40 = vrot.slane %v641_v23, 5  ;;  %v629_v41 = vrot.slane %v628_v18, 4  ;;  %v1021_v6 = vsel %vm5510_vm5, %v1019_v49, %v1020_v29  ;;  %v4894_v23 = vld [vmem:[#allocation2 + $0x118] sm:$0xf0] }
 0x107   : > { %1113 = vst [vmem:[#allocation2 + $0x14c] sm:$0xf] %v1021_v6  ;;  %v4002_v29 = vor.u32 %v4894_v23, %v4001_v1  ;;  %v655_v49 = vshll.u32 %v295_v35, 16 }
 0x108   : > { %v644_v33 = vsel %vm5496_vm4, %v639_v0, %v643_v40  ;;  %v4991_v0 = vld [vmem:[%s6126_s1 + $0x1c8] sm:$0xff] }
 0x109   : > { %v1940_v14 = vpop.f32.mrf.mxu2  ;;  %v2429_v17 = vpop.f32.mrf.mxu3  ;;  %804 = vst [vmem:[#allocation2 + $0x148] sm:$0xf] %v644_v33  ;;  %3291 = vmatpush.bf16.msra.mxu3 %v4991_v0  ;;  %v856_v33 = vld [vmem:[%s5353_s7 + $0xac] sm:$0xf]  ;;  %v4895_v0 = vld [vmem:[#allocation2 + $0x124] sm:$0xf] }
 0x10a   : > { %v1941_v30 = vadd.f32 %v1940_v14, %v1852_v57  ;;  %v1853_v31 = vpop.f32.mrf.mxu1  ;;  %v2520_v32 = vpop.f32.mrf.mxu0  ;;  %v634_v57 = vsel %vm5496_vm4, %v629_v41, %v633_v62 }
 0x10b   : > { %v1854_v39 = vadd.f32 %v1853_v31, %v5709_v51  ;;  %v3995_v51 = vld [vmem:[#allocation2 + $0x114] sm:$0xf0]  ;;  %803 = vst [vmem:[#allocation2 + $0x13c] sm:$0xf] %v634_v57  ;;  %v294_v31 = vld [vmem:[%s5353_s7 + $0xa8] sm:$0xf] }
 0x10c   : > { %v2430_v47 = vadd.f32 %v2429_v17, %v1941_v30  ;;  %v3998_v62 = vor.u32 %v4892_v7, %v3995_v51  ;;  %v4286_v17 = vor.u32 %v4820_v50, %v4283_v3  ;;  %v4282_v30 = vor.u32 %v4821_v9, %v4281_v2  ;;  %v296_v50 = vld [vmem:[%s5353_s7 + $0xb0] sm:$0x1]  ;;  %v855_v51 = vld [vmem:[%s5353_s7 + $0xa8] sm:$0xe] }
 0x10d   : > { %v646_v41 = vshrl.u32 %v294_v31, 16  ;;  %v649_v48 = vshll.u32 %v294_v31, 16  ;;  %v657_v3 = vrot.slane %v655_v49, 5  ;;  %v665_v7 = vshll.u32 %v296_v50, 16 }
 0x10e   : > { %v5845_v8 = vadd.f32 %v2518_v36, %v2430_v47  ;;  %v659_v47 = vshrl.u32 %v295_v35, 16 }
 0x10f   : > { %v651_v1 = vrot.slane %v649_v48, 5 }
 0x110   : > { %v661_v57 = vrot.slane %v659_v47, 4  ;;  %v4855_v47 = vld [vmem:[%s6126_s1 + $0x88] sm:$0xff] }
 0x111   : > { %v1942_v13 = vpop.f32.mrf.mxu2  ;;  %v2431_v14 = vpop.f32.mrf.mxu3  ;;  %2599 = vmatpush.bf16.msra.mxu1 %v4855_v47 }
 0x112   : > { %v1943_v18 = vadd.f32 %v1942_v13, %v1854_v39  ;;  %v1856_v25 = vpop.f32.mrf.mxu1  ;;  %v2523_v26 = vpop.f32.mrf.mxu0  ;;  %v4983_v39 = vld [vmem:[%s6126_s1 + $0x188] sm:$0xff]  ;;  %v662_v13 = vor.u32 %v661_v57, %v657_v3 }
 0x113   : > { %v1857_v40 = vadd.f32 %v1856_v25, %v5725_v15  ;;  %v648_v15 = vrot.slane %v646_v41, 4  ;;  %3202 = vmatpush.bf16.msra.mxu2 %v4983_v39 }
 0x114   : > { %v2432_v36 = vadd.f32 %v2431_v14, %v1943_v18  ;;  %v857_v14 = vld [vmem:[%s5353_s7 + $0xb0] sm:$0x1] }
 0x115   : > { %1895 = vmatmul.bf16.gmra.mxu1 %v3998_v62  ;;  %2562 = vmatmul.bf16.gmra.mxu0 %v4286_v17  ;;  %v652_v6 = vor.u32 %v651_v1, %v648_v15  ;;  %v3819_v62 = vrot.slane %v855_v51, 9  ;;  %v1024_v17 = vrot.slane %v856_v33, 5  ;;  %v1027_v31 = vrot.slane %v857_v14, 5  ;;  %v4293_v15 = vld [vmem:[#allocation2 + $0x108] sm:$0xf] }
 0x116   : > { %1984 = vmatmul.bf16.gmra.mxu2 %v4002_v29  ;;  %2473 = vmatmul.bf16.gmra.mxu3 %v4282_v30  ;;  %v5856_v2 = vadd.f32 %v2520_v32, %v2432_v36  ;;  %v667_v30 = vrot.slane %v665_v7, 5  ;;  %v663_v36 = vrot.slane %v662_v13, 4  ;;  %v4823_v1 = vld [vmem:[#allocation2 + $0x10c] sm:$0xf]  ;;  %v4295_v7 = vld [vmem:[#allocation2 + $0x114] sm:$0xf0] }
 0x117   : > { %v653_v32 = vrot.slane %v652_v6, 4  ;;  %v1025_v41 = vsel %vm5510_vm5, %v3819_v62, %v1024_v17  ;;  %v1026_v48 = vrot.slane %v1024_v17, 4  ;;  %v4007_v6 = vld [vmem:[#allocation2 + $0x12c] sm:$0xf0]  ;;  %v4897_v51 = vld [vmem:[#allocation2 + $0x130] sm:$0xf0]  ;;  %v4298_v14 = vor.u32 %v4823_v1, %v4295_v7 }
 0x118   : > { %1114 = vst [vmem:[#allocation2 + $0x158] sm:$0xf] %v1025_v41  ;;  %v668_v50 = vsel %vm5496_vm4, %v663_v36, %v667_v30  ;;  %v4824_v33 = vld [vmem:[#allocation2 + $0x110] sm:$0xf0]  ;;  %v4010_v13 = vor.u32 %v4895_v0, %v4007_v6 }
 0x119   : > { %v1945_v23 = vpop.f32.mrf.mxu2  ;;  %v2434_v9 = vpop.f32.mrf.mxu3  ;;  %v658_v39 = vsel %vm5496_vm4, %v653_v32, %v657_v3  ;;  %v1028_v57 = vsel %vm5510_vm5, %v1026_v48, %v1027_v31  ;;  %806 = vst [vmem:[#allocation2 + $0x160] sm:$0xf] %v668_v50  ;;  %v4294_v32 = vor.u32 %v4824_v33, %v4293_v15  ;;  %v297_v30 = vld [vmem:[%s5353_s7 + $0xb4] sm:$0xf]  ;;  %v298_v31 = vld [vmem:[%s5353_s7 + $0xb8] sm:$0xf] }
 0x11a   : > { %v1946_v18 = vadd.f32 %v1945_v23, %v1857_v40  ;;  %v1858_v25 = vpop.f32.mrf.mxu1  ;;  %v2525_v29 = vpop.f32.mrf.mxu0  ;;  %v4999_v40 = vld [vmem:[%s6126_s1 + $0x208] sm:$0xff]  ;;  %805 = vst [vmem:[#allocation2 + $0x154] sm:$0xf] %v658_v39  ;;  %v670_v41 = vshrl.u32 %v297_v30, 16  ;;  %v673_v48 = vshll.u32 %v297_v30, 16  ;;  %v683_v47 = vshrl.u32 %v298_v31, 16 }
 0x11b   : > { %v1859_v35 = vadd.f32 %v1858_v25, %v5745_v53  ;;  %v4013_v53 = vld [vmem:[#allocation2 + $0x128] sm:$0xf]  ;;  %3380 = vmatpush.bf16.msra.mxu0 %v4999_v40  ;;  %1115 = vst [vmem:[#allocation2 + $0x164] sm:$0xf] %v1028_v57  ;;  %v859_v15 = vld [vmem:[%s5353_s7 + $0xb8] sm:$0xf] }
 0x11c   : > { %v2435_v49 = vadd.f32 %v2434_v9, %v1946_v18  ;;  %v4014_v25 = vor.u32 %v4897_v51, %v4013_v53  ;;  %v672_v39 = vrot.slane %v670_v41, 4  ;;  %v675_v0 = vrot.slane %v673_v48, 5  ;;  %v858_v50 = vld [vmem:[%s5353_s7 + $0xb4] sm:$0xe]  ;;  %v860_v57 = vld [vmem:[%s5353_s7 + $0xbc] sm:$0x1] }
 0x11d   : > { %v685_v1 = vrot.slane %v683_v47, 4  ;;  %v3820_v33 = vrot.slane %v858_v50, 9  ;;  %v4025_v48 = vld [vmem:[#allocation2 + $0x140] sm:$0xf]  ;;  %v4307_v47 = vld [vmem:[#allocation2 + $0x12c] sm:$0xf0] }
 0x11e   : > { %v5877_v3 = vadd.f32 %v2523_v26, %v2435_v49  ;;  %v679_v49 = vshll.u32 %v298_v31, 16  ;;  %v676_v51 = vor.u32 %v675_v0, %v672_v39  ;;  %v4898_v0 = vld [vmem:[#allocation2 + $0x13c] sm:$0xf]  ;;  %v4827_v50 = vld [vmem:[#allocation2 + $0x128] sm:$0xf0] }
 0x120   : > { %v681_v53 = vrot.slane %v679_v49, 5  ;;  %v4305_v49 = vld [vmem:[#allocation2 + $0x120] sm:$0xf] }
 0x121   : > { %v1947_v23 = vpop.f32.mrf.mxu2  ;;  %v2436_v9 = vpop.f32.mrf.mxu3 }
 0x122   : > { %v1948_v62 = vadd.f32 %v1947_v23, %v1859_v35  ;;  %v1861_v17 = vpop.f32.mrf.mxu1  ;;  %v2528_v18 = vpop.f32.mrf.mxu0  ;;  %v299_v35 = vld [vmem:[%s5353_s7 + $0xbc] sm:$0x1]  ;;  %v1031_v23 = vrot.slane %v859_v15, 5 }
 0x123   : > { %v1862_v36 = vadd.f32 %v1861_v17, %v5767_v27  ;;  %v689_v27 = vshll.u32 %v299_v35, 16  ;;  %v686_v17 = vor.u32 %v685_v1, %v681_v53  ;;  %v4826_v35 = vld [vmem:[#allocation2 + $0x124] sm:$0xf] }
 0x124   : > { %v2437_v26 = vadd.f32 %v2436_v9, %v1948_v62  ;;  %v1034_v9 = vrot.slane %v860_v57, 5  ;;  %v1032_v30 = vsel %vm5510_vm5, %v3820_v33, %v1031_v23  ;;  %v1033_v31 = vrot.slane %v1031_v23, 4 }
 0x125   : > { %1900 = vmatmul.bf16.gmra.mxu1 %v4010_v13  ;;  %2567 = vmatmul.bf16.gmra.mxu0 %v4298_v14  ;;  %v687_v41 = vrot.slane %v686_v17, 4  ;;  %1116 = vst [vmem:[#allocation2 + $0x170] sm:$0xf] %v1032_v30  ;;  %v301_v17 = vld [vmem:[%s5353_s7 + $0xc4] sm:$0xf] }
 0x126   : > { %1989 = vmatmul.bf16.gmra.mxu2 %v4014_v25  ;;  %2478 = vmatmul.bf16.gmra.mxu3 %v4294_v32  ;;  %v5883_v40 = vadd.f32 %v2525_v29, %v2437_v26  ;;  %v691_v29 = vrot.slane %v689_v27, 5  ;;  %v677_v32 = vrot.slane %v676_v51, 4  ;;  %v1035_v39 = vsel %vm5510_vm5, %v1033_v31, %v1034_v9  ;;  %v4900_v27 = vld [vmem:[#allocation2 + $0x148] sm:$0xf0] }
 0x127   : > { %1117 = vst [vmem:[#allocation2 + $0x17c] sm:$0xf] %v1035_v39  ;;  %v4026_v9 = vor.u32 %v4900_v27, %v4025_v48  ;;  %v703_v30 = vshll.u32 %v301_v17, 16  ;;  %v707_v31 = vshrl.u32 %v301_v17, 16  ;;  %v862_v27 = vld [vmem:[%s5353_s7 + $0xc4] sm:$0xf] }
 0x128   : > { %v692_v15 = vsel %vm5496_vm4, %v687_v41, %v691_v29 }
 0x129   : > { %v1950_v6 = vpop.f32.mrf.mxu2  ;;  %v2439_v7 = vpop.f32.mrf.mxu3  ;;  %808 = vst [vmem:[#allocation2 + $0x178] sm:$0xf] %v692_v15  ;;  %v861_v15 = vld [vmem:[%s5353_s7 + $0xc0] sm:$0xe] }
 0x12a   : > { %v1951_v13 = vadd.f32 %v1950_v6, %v1862_v36  ;;  %v1863_v14 = vpop.f32.mrf.mxu1  ;;  %v2530_v62 = vpop.f32.mrf.mxu0  ;;  %v682_v36 = vsel %vm5496_vm4, %v677_v32, %v681_v53 }
 0x12b   : > { %v1864_v25 = vadd.f32 %v1863_v14, %v5781_v4  ;;  %v4019_v4 = vld [vmem:[#allocation2 + $0x144] sm:$0xf0]  ;;  %807 = vst [vmem:[#allocation2 + $0x16c] sm:$0xf] %v682_v36  ;;  %v300_v14 = vld [vmem:[%s5353_s7 + $0xc0] sm:$0xf] }
 0x12c   : > { %v2440_v26 = vadd.f32 %v2439_v7, %v1951_v13  ;;  %v4022_v53 = vor.u32 %v4898_v0, %v4019_v4  ;;  %v4310_v7 = vor.u32 %v4826_v35, %v4307_v47  ;;  %v4306_v13 = vor.u32 %v4827_v50, %v4305_v49  ;;  %v302_v35 = vld [vmem:[%s5353_s7 + $0xc8] sm:$0x1] }
 0x12d   : > { %v694_v32 = vshrl.u32 %v300_v14, 16  ;;  %v705_v47 = vrot.slane %v703_v30, 5  ;;  %v709_v36 = vrot.slane %v707_v31, 4  ;;  %v713_v4 = vshll.u32 %v302_v35, 16  ;;  %v4854_v30 = vld [vmem:[%s6126_s1 + $0x80] sm:$0xff] }
 0x12e   : > { %v5897_v1 = vadd.f32 %v2528_v18, %v2440_v26  ;;  %v697_v18 = vshll.u32 %v300_v14, 16  ;;  %v4990_v26 = vld [vmem:[%s6126_s1 + $0x1c0] sm:$0xff]  ;;  %v4829_v35 = vld [vmem:[#allocation2 + $0x13c] sm:$0xf]  ;;  %2600 = vmatpush.bf16.msra.mxu1 %v4854_v30 }
 0x12f   : > { %v696_v41 = vrot.slane %v694_v32, 4  ;;  %3292 = vmatpush.bf16.msra.mxu3 %v4990_v26  ;;  %v715_v17 = vrot.slane %v713_v4, 5  ;;  %v4998_v31 = vld [vmem:[%s6126_s1 + $0x200] sm:$0xff]  ;;  %v4901_v26 = vld [vmem:[#allocation2 + $0x154] sm:$0xf] }
 0x130   : > { %v699_v48 = vrot.slane %v697_v18, 5  ;;  %v4319_v4 = vld [vmem:[#allocation2 + $0x144] sm:$0xf0]  ;;  %3381 = vmatpush.bf16.msra.mxu0 %v4998_v31 }
 0x131   : > { %v1952_v57 = vpop.f32.mrf.mxu2  ;;  %v2441_v6 = vpop.f32.mrf.mxu3 }
 0x132   : > { %v1953_v51 = vadd.f32 %v1952_v57, %v1864_v25  ;;  %v1866_v33 = vpop.f32.mrf.mxu1  ;;  %v2533_v23 = vpop.f32.mrf.mxu0  ;;  %v4982_v25 = vld [vmem:[%s6126_s1 + $0x180] sm:$0xff]  ;;  %v700_v0 = vor.u32 %v699_v48, %v696_v41  ;;  %v4037_v41 = vld [vmem:[#allocation2 + $0x158] sm:$0xf] }
 0x133   : > { %v1867_v39 = vadd.f32 %v1866_v33, %v5655_v34  ;;  %3203 = vmatpush.bf16.msra.mxu2 %v4982_v25  ;;  %v4317_v48 = vld [vmem:[#allocation2 + $0x138] sm:$0xf] }
 0x134   : > { %v2442_v29 = vadd.f32 %v2441_v6, %v1953_v51  ;;  %v710_v6 = vor.u32 %v709_v36, %v705_v47  ;;  %v1038_v51 = vrot.slane %v862_v27, 5  ;;  %v701_v14 = vrot.slane %v700_v0, 4  ;;  %v4031_v0 = vld [vmem:[#allocation2 + $0x15c] sm:$0xf0]  ;;  %v4830_v27 = vld [vmem:[#allocation2 + $0x140] sm:$0xf0] }
 0x135   : > { %1905 = vmatmul.bf16.gmra.mxu1 %v4022_v53  ;;  %2572 = vmatmul.bf16.gmra.mxu0 %v4310_v7  ;;  %v863_v53 = vld [vmem:[%s5353_s7 + $0xc8] sm:$0x1]  ;;  %v3821_v7 = vrot.slane %v861_v15, 9 }
 0x136   : > { %1994 = vmatmul.bf16.gmra.mxu2 %v4026_v9  ;;  %2483 = vmatmul.bf16.gmra.mxu3 %v4306_v13  ;;  %v5907_v49 = vadd.f32 %v2530_v62, %v2442_v29  ;;  %v1041_v29 = vrot.slane %v863_v53, 5  ;;  %v711_v32 = vrot.slane %v710_v6, 4  ;;  %v1040_v33 = vrot.slane %v1038_v51, 4 }
 0x137   : > { %v1039_v34 = vsel %vm5510_vm5, %v3821_v7, %v1038_v51  ;;  %v706_v25 = vsel %vm5496_vm4, %v701_v14, %v705_v47  ;;  %v4903_v47 = vld [vmem:[#allocation2 + $0x160] sm:$0xf0]  ;;  %v4034_v53 = vor.u32 %v4901_v26, %v4031_v0  ;;  %v4322_v7 = vor.u32 %v4829_v35, %v4319_v4  ;;  %v4049_v4 = vld [vmem:[#allocation2 + $0x170] sm:$0xf] }
 0x138   : > { %1118 = vst [vmem:[#allocation2 + $0x188] sm:$0xf] %v1039_v34  ;;  %v716_v36 = vsel %vm5496_vm4, %v711_v32, %v715_v17  ;;  %v4038_v17 = vor.u32 %v4903_v47, %v4037_v41  ;;  %v4904_v47 = vld [vmem:[#allocation2 + $0x16c] sm:$0xf] }
 0x139   : > { %v1955_v50 = vpop.f32.mrf.mxu2  ;;  %v2444_v57 = vpop.f32.mrf.mxu3  ;;  %809 = vst [vmem:[#allocation2 + $0x184] sm:$0xf] %v706_v25 }
 0x13a   : > { %v1956_v9 = vadd.f32 %v1955_v50, %v1867_v39  ;;  %v1868_v62 = vpop.f32.mrf.mxu1  ;;  %v2535_v13 = vpop.f32.mrf.mxu0  ;;  %v1042_v39 = vsel %vm5510_vm5, %v1040_v33, %v1041_v29  ;;  %810 = vst [vmem:[#allocation2 + $0x190] sm:$0xf] %v716_v36  ;;  %v4318_v29 = vor.u32 %v4830_v27, %v4317_v48  ;;  %v813_v33 = vld [vmem:[%s5353_s7] sm:$0xe]  ;;  %v4043_v27 = vld [vmem:[#allocation2 + $0x174] sm:$0xf0] }
 0x13b   : > { %1119 = vst [vmem:[#allocation2 + $0x194] sm:$0xf] %v1042_v39  ;;  %v1869_v50 = vadd.f32 %v1868_v62, %v5675_v63  ;;  %v3805_v25 = vrot.slane %v813_v33, 9 }
 0x13c   : > { %v2445_v18 = vadd.f32 %v2444_v57, %v1956_v9 }
 0x13e   : > { %v5928_v15 = vadd.f32 %v2533_v23, %v2445_v18  ;;  %v814_v23 = vld [vmem:[%s5353_s7 + $0x4] sm:$0xf]  ;;  %v815_v18 = vld [vmem:[%s5353_s7 + $0x8] sm:$0x1] }
 0x13f   : > { %v926_v63 = vrot.slane %v814_v23, 5  ;;  %v929_v35 = vrot.slane %v815_v18, 5 }
 0x141   : > { %v1957_v57 = vpop.f32.mrf.mxu2  ;;  %v2446_v6 = vpop.f32.mrf.mxu3  ;;  %v928_v26 = vrot.slane %v926_v63, 4  ;;  %v927_v39 = vsel %vm5510_vm5, %v3805_v25, %v926_v63 }
 0x142   : > { %v1958_v51 = vadd.f32 %v1957_v57, %v1869_v50  ;;  %v1871_v9 = vpop.f32.mrf.mxu1  ;;  %v2538_v14 = vpop.f32.mrf.mxu0  ;;  %1086 = vst [vmem:[#allocation2 + $0x8] sm:$0xf] %v927_v39  ;;  %v4331_v50 = vld [vmem:[#allocation2 + $0x15c] sm:$0xf0]  ;;  %v4907_v39 = vld [vmem:[#allocation2 + $0x184] sm:$0xf] }
 0x143   : > { %v1872_v62 = vadd.f32 %v1871_v9, %v5697_v24  ;;  %v4832_v24 = vld [vmem:[#allocation2 + $0x154] sm:$0xf] }
 0x144   : > { %v2447_v32 = vadd.f32 %v2446_v6, %v1958_v51  ;;  %v4906_v6 = vld [vmem:[#allocation2 + $0x178] sm:$0xf0] }
 0x145   : > { %1910 = vmatmul.bf16.gmra.mxu1 %v4034_v53  ;;  %2577 = vmatmul.bf16.gmra.mxu0 %v4322_v7  ;;  %v4329_v53 = vld [vmem:[#allocation2 + $0x150] sm:$0xf]  ;;  %v4833_v7 = vld [vmem:[#allocation2 + $0x158] sm:$0xf0]  ;;  %v4050_v33 = vor.u32 %v4906_v6, %v4049_v4  ;;  %v4835_v4 = vld [vmem:[#allocation2 + $0x16c] sm:$0xf] }
 0x146   : > { %1999 = vmatmul.bf16.gmra.mxu2 %v4038_v17  ;;  %2488 = vmatmul.bf16.gmra.mxu3 %v4318_v29  ;;  %v5932_v34 = vadd.f32 %v2535_v13, %v2447_v32  ;;  %v930_v13 = vsel %vm5510_vm5, %v928_v26, %v929_v35  ;;  %v4046_v29 = vor.u32 %v4904_v47, %v4043_v27  ;;  %v4909_v27 = vld [vmem:[#allocation2 + $0x190] sm:$0xf0] }
 0x147   : > { %1087 = vst [vmem:[#allocation2 + $0x14] sm:$0xf] %v930_v13  ;;  %v4334_v32 = vor.u32 %v4832_v24, %v4331_v50  ;;  %v4330_v18 = vor.u32 %v4833_v7, %v4329_v53  ;;  %v4061_v13 = vld [vmem:[#allocation2 + $0x188] sm:$0xf]  ;;  %v4343_v24 = vld [vmem:[#allocation2 + $0x174] sm:$0xf0] }
 0x148   : > { %v4341_v50 = vld [vmem:[#allocation2 + $0x168] sm:$0xf]  ;;  %v4836_v6 = vld [vmem:[#allocation2 + $0x170] sm:$0xf0] }
 0x149   : > { %v1960_v30 = vpop.f32.mrf.mxu2  ;;  %v2449_v31 = vpop.f32.mrf.mxu3 }
 0x14a   : > { %v1961_v41 = vadd.f32 %v1960_v30, %v1872_v62  ;;  %v1873_v48 = vpop.f32.mrf.mxu1  ;;  %v2540_v36 = vpop.f32.mrf.mxu0 }
 0x14b   : > { %v1874_v51 = vadd.f32 %v1873_v48, %v5711_v52 }
 0x14c   : > { %v2450_v0 = vadd.f32 %v2449_v31, %v1961_v41 }
 0x14e   : > { %v5941_v57 = vadd.f32 %v2538_v14, %v2450_v0  ;;  %v4055_v0 = vld [vmem:[#allocation2 + $0x18c] sm:$0xf0] }
 0x14f   : > { %v4058_v7 = vor.u32 %v4907_v39, %v4055_v0  ;;  %v4505_v39 = vld [vmem:[#allocation2 + $0x38] sm:$0xf] }
 0x151   : > { %v1962_v9 = vpop.f32.mrf.mxu2  ;;  %v2451_v17 = vpop.f32.mrf.mxu3 }
 0x152   : > { %v1963_v23 = vadd.f32 %v1962_v9, %v1874_v51  ;;  %v1876_v63 = vpop.f32.mrf.mxu1  ;;  %v2543_v62 = vpop.f32.mrf.mxu0  ;;  %v4346_v51 = vor.u32 %v4835_v4, %v4343_v24  ;;  %v4935_v4 = vld [vmem:[#allocation2 + $0x38] sm:$0xf0]  ;;  %v4934_v24 = vld [vmem:[#allocation2 + $0x34] sm:$0xf] }
 0x153   : > { %v1877_v31 = vadd.f32 %v1876_v63, %v5727_v16 }
 0x154   : > { %v2452_v30 = vadd.f32 %v2451_v17, %v1963_v23  ;;  %v4342_v23 = vor.u32 %v4836_v6, %v4341_v50 }
 0x155   : > { %1915 = vmatmul.bf16.gmra.mxu1 %v4046_v29  ;;  %2582 = vmatmul.bf16.gmra.mxu0 %v4334_v32  ;;  %v4062_v32 = vor.u32 %v4909_v27, %v4061_v13  ;;  %v4936_v13 = vld [vmem:[#allocation2 + $0x40] sm:$0xf0]  ;;  %v4499_v27 = vld [vmem:[#allocation2 + $0x3c] sm:$0xf0] }
 0x156   : > { %2004 = vmatmul.bf16.gmra.mxu2 %v4050_v33  ;;  %2493 = vmatmul.bf16.gmra.mxu3 %v4330_v18  ;;  %v5944_v14 = vadd.f32 %v2540_v36, %v2452_v30 }
 0x159   : > { %v1965_v25 = vpop.f32.mrf.mxu2  ;;  %v2454_v52 = vpop.f32.mrf.mxu3 }
 0x15a   : > { %v1966_v26 = vadd.f32 %v1965_v25, %v1877_v31  ;;  %v1878_v35 = vpop.f32.mrf.mxu1  ;;  %v2545_v41 = vpop.f32.mrf.mxu0 }
 0x15b   : > { %v1879_v36 = vadd.f32 %v1878_v35, %v5747_v54  ;;  %v4497_v35 = vld [vmem:[#allocation2 + $0x30] sm:$0xf] }
 0x15c   : > { %v2455_v48 = vadd.f32 %v2454_v52, %v1966_v26  ;;  %v4169_v26 = vld [vmem:[#allocation2 + $0x8] sm:$0xf] }
 0x15e   : > { %v5947_v47 = vadd.f32 %v2543_v62, %v2455_v48  ;;  %v4792_v48 = vld [vmem:[#allocation2 + $0x10] sm:$0xf0] }
 0x15f   : > { %v4170_v6 = vor.u32 %v4792_v48, %v4169_v26  ;;  %v4517_v26 = vld [vmem:[#allocation2 + $0x50] sm:$0xf] }
 0x161   : > { %v1967_v53 = vpop.f32.mrf.mxu2  ;;  %v2456_v16 = vpop.f32.mrf.mxu3 }
 0x162   : > { %v1968_v9 = vadd.f32 %v1967_v53, %v1879_v36  ;;  %v1881_v17 = vpop.f32.mrf.mxu1  ;;  %v2548_v29 = vpop.f32.mrf.mxu0  ;;  %v4506_v36 = vor.u32 %v4936_v13, %v4505_v39  ;;  %v4938_v39 = vld [vmem:[#allocation2 + $0x50] sm:$0xf0]  ;;  %v4937_v13 = vld [vmem:[#allocation2 + $0x4c] sm:$0xf] }
 0x163   : > { %v1882_v33 = vadd.f32 %v1881_v17, %v5769_v28 }
 0x164   : > { %v2457_v63 = vadd.f32 %v2456_v16, %v1968_v9  ;;  %v4502_v9 = vor.u32 %v4934_v24, %v4499_v27 }
 0x165   : > { %1920 = vmatmul.bf16.gmra.mxu1 %v4058_v7  ;;  %2587 = vmatmul.bf16.gmra.mxu0 %v4346_v51  ;;  %v4498_v51 = vor.u32 %v4935_v4, %v4497_v35  ;;  %v4939_v35 = vld [vmem:[#allocation2 + $0x58] sm:$0xf0]  ;;  %v4511_v4 = vld [vmem:[#allocation2 + $0x54] sm:$0xf0] }
 0x166   : > { %2009 = vmatmul.bf16.gmra.mxu2 %v4062_v32  ;;  %2498 = vmatmul.bf16.gmra.mxu3 %v4342_v23  ;;  %v5950_v62 = vadd.f32 %v2545_v41, %v2457_v63 }
 0x169   : > { %v1970_v18 = vpop.f32.mrf.mxu2  ;;  %v2459_v54 = vpop.f32.mrf.mxu3 }
 0x16a   : > { %v1971_v30 = vadd.f32 %v1970_v18, %v1882_v33  ;;  %v1883_v31 = vpop.f32.mrf.mxu1  ;;  %v2550_v25 = vpop.f32.mrf.mxu0 }
 0x16b   : > { %v1884_v41 = vadd.f32 %v1883_v31, %v5783_v5  ;;  %v4795_v31 = vld [vmem:[#allocation2 + $0x28] sm:$0xf0] }
 0x16c   : > { %v2460_v52 = vadd.f32 %v2459_v54, %v1971_v30  ;;  %v4181_v30 = vld [vmem:[#allocation2 + $0x20] sm:$0xf] }
 0x16d   : > { %v4182_v27 = vor.u32 %v4795_v31, %v4181_v30  ;;  %v4529_v30 = vld [vmem:[#allocation2 + $0x68] sm:$0xf]  ;;  %v4942_v31 = vld [vmem:[#allocation2 + $0x70] sm:$0xf0] }
 0x16e   : > { %v5953_v0 = vadd.f32 %v2548_v29, %v2460_v52  ;;  %v4509_v52 = vld [vmem:[#allocation2 + $0x48] sm:$0xf] }
 0x171   : > { %v1972_v50 = vpop.f32.mrf.mxu2  ;;  %v2461_v28 = vpop.f32.mrf.mxu3 }
 0x172   : > { %v1973_v53 = vadd.f32 %v1972_v50, %v1884_v41  ;;  %v1886_v16 = vpop.f32.mrf.mxu1  ;;  %v2553_v7 = vpop.f32.mrf.mxu0  ;;  %v4518_v41 = vor.u32 %v4939_v35, %v4517_v26  ;;  %v4941_v26 = vld [vmem:[#allocation2 + $0x68] sm:$0xf0]  ;;  %v4940_v35 = vld [vmem:[#allocation2 + $0x64] sm:$0xf] }
 0x173   : > { %v1887_v32 = vadd.f32 %v1886_v16, %v5668_v55 }
 0x174   : > { %v2462_v17 = vadd.f32 %v2461_v28, %v1973_v53  ;;  %v4514_v53 = vor.u32 %v4937_v13, %v4511_v4 }
 0x175   : > { %2601 = vmatmul.bf16.vlgmr.msra.gmra.mxu1 %v4170_v6  ;;  %3382 = vmatmul.bf16.vlgmr.msra.gmra.mxu0 %v4506_v36  ;;  %v4510_v36 = vor.u32 %v4938_v39, %v4509_v52  ;;  %v4523_v39 = vld [vmem:[#allocation2 + $0x6c] sm:$0xf0] }
 0x176   : > { %3204 = vmatmul.bf16.vlgmr.msra.gmra.mxu2 %v4498_v51  ;;  %3293 = vmatmul.bf16.vlgmr.msra.gmra.mxu3 %v4502_v9  ;;  %v5956_v29 = vadd.f32 %v2550_v25, %v2462_v17 }
 0x179   : > { %v1975_v23 = vpop.f32.mrf.mxu2  ;;  %v2464_v5 = vpop.f32.mrf.mxu3 }
 0x17a   : > { %v1976_v63 = vadd.f32 %v1975_v23, %v1887_v32  ;;  %v1888_v33 = vpop.f32.mrf.mxu1  ;;  %v2555_v18 = vpop.f32.mrf.mxu0 }
 0x17b   : > { %v1889_v25 = vadd.f32 %v1888_v33, %v5691_v19  ;;  %v4798_v33 = vld [vmem:[#allocation2 + $0x40] sm:$0xf0] }
 0x17c   : > { %v2465_v54 = vadd.f32 %v2464_v5, %v1976_v63  ;;  %v4193_v63 = vld [vmem:[#allocation2 + $0x38] sm:$0xf] }
 0x17d   : > { %v4194_v4 = vor.u32 %v4798_v33, %v4193_v63  ;;  %v4541_v63 = vld [vmem:[#allocation2 + $0x80] sm:$0xf]  ;;  %v4945_v33 = vld [vmem:[#allocation2 + $0x88] sm:$0xf0] }
 0x17e   : > { %v5959_v48 = vadd.f32 %v2553_v7, %v2465_v54  ;;  %v4521_v54 = vld [vmem:[#allocation2 + $0x60] sm:$0xf] }
 0x181   : > { %v1977_v24 = vpop.f32.mrf.mxu2  ;;  %v2466_v55 = vpop.f32.mrf.mxu3 }
 0x182   : > { %v1978_v50 = vadd.f32 %v1977_v24, %v1889_v25  ;;  %v1891_v28 = vpop.f32.mrf.mxu1  ;;  %v2558_v6 = vpop.f32.mrf.mxu0  ;;  %v4530_v25 = vor.u32 %v4942_v31, %v4529_v30  ;;  %v4944_v30 = vld [vmem:[#allocation2 + $0x80] sm:$0xf0]  ;;  %v4943_v31 = vld [vmem:[#allocation2 + $0x7c] sm:$0xf] }
 0x183   : > { %v1892_v51 = vadd.f32 %v1891_v28, %v5705_v44 }
 0x184   : > { %v2467_v16 = vadd.f32 %v2466_v55, %v1978_v50  ;;  %v4526_v50 = vor.u32 %v4940_v35, %v4523_v39 }
 0x185   : > { %2606 = vmatmul.bf16.gmra.mxu1 %v4182_v27  ;;  %3387 = vmatmul.bf16.gmra.mxu0 %v4518_v41  ;;  %v4522_v41 = vor.u32 %v4941_v26, %v4521_v54  ;;  %v4535_v26 = vld [vmem:[#allocation2 + $0x84] sm:$0xf0] }
 0x186   : > { %3209 = vmatmul.bf16.gmra.mxu2 %v4510_v36  ;;  %3298 = vmatmul.bf16.gmra.mxu3 %v4514_v53  ;;  %v5962_v7 = vadd.f32 %v2555_v18, %v2467_v16 }
 0x189   : > { %v1980_v9 = vpop.f32.mrf.mxu2  ;;  %v2469_v19 = vpop.f32.mrf.mxu3 }
 0x18a   : > { %v1981_v17 = vadd.f32 %v1980_v9, %v1892_v51  ;;  %v1893_v32 = vpop.f32.mrf.mxu1  ;;  %v2560_v23 = vpop.f32.mrf.mxu0 }
 0x18b   : > { %v1894_v18 = vadd.f32 %v1893_v32, %v5721_v11  ;;  %v4801_v32 = vld [vmem:[#allocation2 + $0x58] sm:$0xf0] }
 0x18c   : > { %v2470_v5 = vadd.f32 %v2469_v19, %v1981_v17  ;;  %v4205_v17 = vld [vmem:[#allocation2 + $0x50] sm:$0xf] }
 0x18d   : > { %v4206_v39 = vor.u32 %v4801_v32, %v4205_v17  ;;  %v4553_v17 = vld [vmem:[#allocation2 + $0x98] sm:$0xf]  ;;  %v4948_v32 = vld [vmem:[#allocation2 + $0xa0] sm:$0xf0] }
 0x18e   : > { %v5965_v52 = vadd.f32 %v2558_v6, %v2470_v5  ;;  %v4533_v5 = vld [vmem:[#allocation2 + $0x78] sm:$0xf] }
 0x191   : > { %v1982_v13 = vpop.f32.mrf.mxu2  ;;  %v2471_v44 = vpop.f32.mrf.mxu3 }
 0x192   : > { %v1983_v24 = vadd.f32 %v1982_v13, %v1894_v18  ;;  %v1896_v55 = vpop.f32.mrf.mxu1  ;;  %v2563_v27 = vpop.f32.mrf.mxu0  ;;  %v4542_v18 = vor.u32 %v4945_v33, %v4541_v63  ;;  %v4947_v63 = vld [vmem:[#allocation2 + $0x98] sm:$0xf0]  ;;  %v4946_v33 = vld [vmem:[#allocation2 + $0x94] sm:$0xf] }
 0x193   : > { %v1897_v36 = vadd.f32 %v1896_v55, %v5740_v42 }
 0x194   : > { %v2472_v28 = vadd.f32 %v2471_v44, %v1983_v24  ;;  %v4538_v24 = vor.u32 %v4943_v31, %v4535_v26 }
 0x195   : > { %2611 = vmatmul.bf16.gmra.mxu1 %v4194_v4  ;;  %3392 = vmatmul.bf16.gmra.mxu0 %v4530_v25  ;;  %v4534_v25 = vor.u32 %v4944_v30, %v4533_v5  ;;  %v4547_v30 = vld [vmem:[#allocation2 + $0x9c] sm:$0xf0] }
 0x196   : > { %3214 = vmatmul.bf16.gmra.mxu2 %v4522_v41  ;;  %3303 = vmatmul.bf16.gmra.mxu3 %v4526_v50  ;;  %v5968_v6 = vadd.f32 %v2560_v23, %v2472_v28 }
 0x199   : > { %v1985_v53 = vpop.f32.mrf.mxu2  ;;  %v2474_v11 = vpop.f32.mrf.mxu3 }
 0x19a   : > { %v1986_v16 = vadd.f32 %v1985_v53, %v1897_v36  ;;  %v1898_v51 = vpop.f32.mrf.mxu1  ;;  %v2565_v9 = vpop.f32.mrf.mxu0 }
 0x19b   : > { %v1899_v23 = vadd.f32 %v1898_v51, %v5763_v21  ;;  %v4804_v51 = vld [vmem:[#allocation2 + $0x70] sm:$0xf0] }
 0x19c   : > { %v2475_v19 = vadd.f32 %v2474_v11, %v1986_v16  ;;  %v4217_v16 = vld [vmem:[#allocation2 + $0x68] sm:$0xf] }
 0x19d   : > { %v4218_v26 = vor.u32 %v4804_v51, %v4217_v16  ;;  %v4565_v16 = vld [vmem:[#allocation2 + $0xb0] sm:$0xf]  ;;  %v4951_v51 = vld [vmem:[#allocation2 + $0xb8] sm:$0xf0] }
 0x19e   : > { %v5971_v54 = vadd.f32 %v2563_v27, %v2475_v19  ;;  %v4545_v19 = vld [vmem:[#allocation2 + $0x90] sm:$0xf] }
 0x1a1   : > { %v1987_v35 = vpop.f32.mrf.mxu2  ;;  %v2476_v42 = vpop.f32.mrf.mxu3 }
 0x1a2   : > { %v1988_v13 = vadd.f32 %v1987_v35, %v1899_v23  ;;  %v1901_v44 = vpop.f32.mrf.mxu1  ;;  %v2568_v4 = vpop.f32.mrf.mxu0  ;;  %v4554_v23 = vor.u32 %v4948_v32, %v4553_v17  ;;  %v4950_v17 = vld [vmem:[#allocation2 + $0xb0] sm:$0xf0]  ;;  %v4949_v32 = vld [vmem:[#allocation2 + $0xac] sm:$0xf] }
 0x1a3   : > { %v1902_v41 = vadd.f32 %v1901_v44, %v5777_v60 }
 0x1a4   : > { %v2477_v55 = vadd.f32 %v2476_v42, %v1988_v13  ;;  %v4550_v13 = vor.u32 %v4946_v33, %v4547_v30 }
 0x1a5   : > { %2616 = vmatmul.bf16.gmra.mxu1 %v4206_v39  ;;  %3397 = vmatmul.bf16.gmra.mxu0 %v4542_v18  ;;  %v4546_v18 = vor.u32 %v4947_v63, %v4545_v19  ;;  %v4559_v63 = vld [vmem:[#allocation2 + $0xb4] sm:$0xf0] }
 0x1a6   : > { %3219 = vmatmul.bf16.gmra.mxu2 %v4534_v25  ;;  %3308 = vmatmul.bf16.gmra.mxu3 %v4538_v24  ;;  %v5974_v27 = vadd.f32 %v2565_v9, %v2477_v55 }
 0x1a9   : > { %v1990_v50 = vpop.f32.mrf.mxu2  ;;  %v2479_v21 = vpop.f32.mrf.mxu3 }
 0x1aa   : > { %v1991_v28 = vadd.f32 %v1990_v50, %v1902_v41  ;;  %v1903_v36 = vpop.f32.mrf.mxu1  ;;  %v2570_v53 = vpop.f32.mrf.mxu0 }
 0x1ab   : > { %v1904_v9 = vadd.f32 %v1903_v36, %v5793_v37  ;;  %v4807_v36 = vld [vmem:[#allocation2 + $0x88] sm:$0xf0] }
 0x1ac   : > { %v2480_v11 = vadd.f32 %v2479_v21, %v1991_v28  ;;  %v4229_v28 = vld [vmem:[#allocation2 + $0x80] sm:$0xf] }
 0x1ad   : > { %v4230_v30 = vor.u32 %v4807_v36, %v4229_v28  ;;  %v4577_v28 = vld [vmem:[#allocation2 + $0xc8] sm:$0xf]  ;;  %v4954_v36 = vld [vmem:[#allocation2 + $0xd0] sm:$0xf0] }
 0x1ae   : > { %v5977_v5 = vadd.f32 %v2568_v4, %v2480_v11  ;;  %v4557_v11 = vld [vmem:[#allocation2 + $0xa8] sm:$0xf] }
 0x1b1   : > { %v1992_v31 = vpop.f32.mrf.mxu2  ;;  %v2481_v60 = vpop.f32.mrf.mxu3 }
 0x1b2   : > { %v1993_v35 = vadd.f32 %v1992_v31, %v1904_v9  ;;  %v1906_v42 = vpop.f32.mrf.mxu1  ;;  %v2573_v39 = vpop.f32.mrf.mxu0  ;;  %v4566_v9 = vor.u32 %v4951_v51, %v4565_v16  ;;  %v4953_v16 = vld [vmem:[#allocation2 + $0xc8] sm:$0xf0]  ;;  %v4952_v51 = vld [vmem:[#allocation2 + $0xc4] sm:$0xf] }
 0x1b3   : > { %v1907_v25 = vadd.f32 %v1906_v42, %v5670_v56 }
 0x1b4   : > { %v2482_v44 = vadd.f32 %v2481_v60, %v1993_v35  ;;  %v4562_v35 = vor.u32 %v4949_v32, %v4559_v63 }
 0x1b5   : > { %2621 = vmatmul.bf16.gmra.mxu1 %v4218_v26  ;;  %3402 = vmatmul.bf16.gmra.mxu0 %v4554_v23  ;;  %v4558_v23 = vor.u32 %v4950_v17, %v4557_v11  ;;  %v4571_v17 = vld [vmem:[#allocation2 + $0xcc] sm:$0xf0] }
 0x1b6   : > { %3224 = vmatmul.bf16.gmra.mxu2 %v4546_v18  ;;  %3313 = vmatmul.bf16.gmra.mxu3 %v4550_v13  ;;  %v5980_v4 = vadd.f32 %v2570_v53, %v2482_v44 }
 0x1b9   : > { %v1995_v24 = vpop.f32.mrf.mxu2  ;;  %v2484_v37 = vpop.f32.mrf.mxu3 }
 0x1ba   : > { %v1996_v55 = vadd.f32 %v1995_v24, %v1907_v25  ;;  %v1908_v41 = vpop.f32.mrf.mxu1  ;;  %v2575_v50 = vpop.f32.mrf.mxu0 }
 0x1bb   : > { %v1909_v53 = vadd.f32 %v1908_v41, %v5693_v20  ;;  %v4810_v41 = vld [vmem:[#allocation2 + $0xa0] sm:$0xf0] }
 0x1bc   : > { %v2485_v21 = vadd.f32 %v2484_v37, %v1996_v55  ;;  %v4241_v55 = vld [vmem:[#allocation2 + $0x98] sm:$0xf] }
 0x1bd   : > { %v4242_v63 = vor.u32 %v4810_v41, %v4241_v55  ;;  %v4589_v55 = vld [vmem:[#allocation2 + $0xe0] sm:$0xf]  ;;  %v4957_v41 = vld [vmem:[#allocation2 + $0xe8] sm:$0xf0] }
 0x1be   : > { %v5983_v19 = vadd.f32 %v2573_v39, %v2485_v21  ;;  %v4569_v21 = vld [vmem:[#allocation2 + $0xc0] sm:$0xf] }
 0x1c1   : > { %v1997_v33 = vpop.f32.mrf.mxu2  ;;  %v2486_v56 = vpop.f32.mrf.mxu3 }
 0x1c2   : > { %v1998_v31 = vadd.f32 %v1997_v33, %v1909_v53  ;;  %v1911_v60 = vpop.f32.mrf.mxu1  ;;  %v2578_v26 = vpop.f32.mrf.mxu0  ;;  %v4578_v53 = vor.u32 %v4954_v36, %v4577_v28  ;;  %v4956_v28 = vld [vmem:[#allocation2 + $0xe0] sm:$0xf0]  ;;  %v4955_v36 = vld [vmem:[#allocation2 + $0xdc] sm:$0xf] }
 0x1c3   : > { %v1912_v18 = vadd.f32 %v1911_v60, %v5707_v45 }
 0x1c4   : > { %v2487_v42 = vadd.f32 %v2486_v56, %v1998_v31  ;;  %v4574_v31 = vor.u32 %v4952_v51, %v4571_v17 }
 0x1c5   : > { %2626 = vmatmul.bf16.gmra.mxu1 %v4230_v30  ;;  %3407 = vmatmul.bf16.gmra.mxu0 %v4566_v9  ;;  %v4570_v9 = vor.u32 %v4953_v16, %v4569_v21  ;;  %v4583_v16 = vld [vmem:[#allocation2 + $0xe4] sm:$0xf0] }
 0x1c6   : > { %3229 = vmatmul.bf16.gmra.mxu2 %v4558_v23  ;;  %3318 = vmatmul.bf16.gmra.mxu3 %v4562_v35  ;;  %v5986_v39 = vadd.f32 %v2575_v50, %v2487_v42 }
 0x1c9   : > { %v2000_v13 = vpop.f32.mrf.mxu2  ;;  %v2489_v20 = vpop.f32.mrf.mxu3 }
 0x1ca   : > { %v2001_v44 = vadd.f32 %v2000_v13, %v1912_v18  ;;  %v1913_v25 = vpop.f32.mrf.mxu1  ;;  %v2580_v24 = vpop.f32.mrf.mxu0 }
 0x1cb   : > { %v1914_v50 = vadd.f32 %v1913_v25, %v5723_v12  ;;  %v4813_v25 = vld [vmem:[#allocation2 + $0xb8] sm:$0xf0] }
 0x1cc   : > { %v2490_v37 = vadd.f32 %v2489_v20, %v2001_v44  ;;  %v4253_v44 = vld [vmem:[#allocation2 + $0xb0] sm:$0xf] }
 0x1cd   : > { %v4254_v17 = vor.u32 %v4813_v25, %v4253_v44  ;;  %v4601_v44 = vld [vmem:[#allocation2 + $0xf8] sm:$0xf]  ;;  %v4960_v25 = vld [vmem:[#allocation2 + $0x100] sm:$0xf0] }
 0x1ce   : > { %v5989_v11 = vadd.f32 %v2578_v26, %v2490_v37  ;;  %v4581_v37 = vld [vmem:[#allocation2 + $0xd8] sm:$0xf] }
 0x1d1   : > { %v2002_v32 = vpop.f32.mrf.mxu2  ;;  %v2491_v45 = vpop.f32.mrf.mxu3 }
 0x1d2   : > { %v2003_v33 = vadd.f32 %v2002_v32, %v1914_v50  ;;  %v1916_v56 = vpop.f32.mrf.mxu1  ;;  %v2583_v30 = vpop.f32.mrf.mxu0  ;;  %v4590_v50 = vor.u32 %v4957_v41, %v4589_v55  ;;  %v4959_v55 = vld [vmem:[#allocation2 + $0xf8] sm:$0xf0]  ;;  %v4958_v41 = vld [vmem:[#allocation2 + $0xf4] sm:$0xf] }
 0x1d3   : > { %v1917_v23 = vadd.f32 %v1916_v56, %v5742_v43 }
 0x1d4   : > { %v2492_v60 = vadd.f32 %v2491_v45, %v2003_v33  ;;  %v4586_v33 = vor.u32 %v4955_v36, %v4583_v16 }
 0x1d5   : > { %2631 = vmatmul.bf16.gmra.mxu1 %v4242_v63  ;;  %3412 = vmatmul.bf16.gmra.mxu0 %v4578_v53  ;;  %v4582_v53 = vor.u32 %v4956_v28, %v4581_v37  ;;  %v4595_v28 = vld [vmem:[#allocation2 + $0xfc] sm:$0xf0] }
 0x1d6   : > { %3234 = vmatmul.bf16.gmra.mxu2 %v4570_v9  ;;  %3323 = vmatmul.bf16.gmra.mxu3 %v4574_v31  ;;  %v5992_v26 = vadd.f32 %v2580_v24, %v2492_v60 }
 0x1d9   : > { %v2005_v35 = vpop.f32.mrf.mxu2  ;;  %v2494_v12 = vpop.f32.mrf.mxu3 }
 0x1da   : > { %v2006_v42 = vadd.f32 %v2005_v35, %v1917_v23  ;;  %v1918_v18 = vpop.f32.mrf.mxu1  ;;  %v2585_v13 = vpop.f32.mrf.mxu0 }
 0x1db   : > { %v1919_v24 = vadd.f32 %v1918_v18, %v5765_v22  ;;  %v4816_v18 = vld [vmem:[#allocation2 + $0xd0] sm:$0xf0] }
 0x1dc   : > { %v2495_v20 = vadd.f32 %v2494_v12, %v2006_v42  ;;  %v4265_v42 = vld [vmem:[#allocation2 + $0xc8] sm:$0xf] }
 0x1dd   : > { %v4266_v16 = vor.u32 %v4816_v18, %v4265_v42  ;;  %v4962_v42 = vld [vmem:[#allocation2 + $0x110] sm:$0xf0]  ;;  %v4961_v18 = vld [vmem:[#allocation2 + $0x10c] sm:$0xf] }
 0x1de   : > { %v5995_v21 = vadd.f32 %v2583_v30, %v2495_v20  ;;  %v4593_v20 = vld [vmem:[#allocation2 + $0xf0] sm:$0xf] }
 0x1e1   : > { %v2007_v51 = vpop.f32.mrf.mxu2  ;;  %v2496_v43 = vpop.f32.mrf.mxu3 }
 0x1e2   : > { %v2008_v32 = vadd.f32 %v2007_v51, %v1919_v24  ;;  %v1921_v45 = vpop.f32.mrf.mxu1  ;;  %v2588_v63 = vpop.f32.mrf.mxu0  ;;  %v4602_v24 = vor.u32 %v4960_v25, %v4601_v44 }
 0x1e3   : > { %v1922_v9 = vadd.f32 %v1921_v45, %v5779_v61 }
 0x1e4   : > { %v2497_v56 = vadd.f32 %v2496_v43, %v2008_v32  ;;  %v4598_v32 = vor.u32 %v4958_v41, %v4595_v28 }
 0x1e5   : > { %2636 = vmatmul.bf16.gmra.mxu1 %v4254_v17  ;;  %3417 = vmatmul.bf16.gmra.mxu0 %v4590_v50  ;;  %v4594_v50 = vor.u32 %v4959_v55, %v4593_v20  ;;  %v4607_v20 = vld [vmem:[#allocation2 + $0x114] sm:$0xf0] }
 0x1e6   : > { %3239 = vmatmul.bf16.gmra.mxu2 %v4582_v53  ;;  %3328 = vmatmul.bf16.gmra.mxu3 %v4586_v33  ;;  %v5998_v30 = vadd.f32 %v2585_v13, %v2497_v56 }
 0x1e9   : > { %v2010_v31 = vpop.f32.mrf.mxu2  ;;  %v2499_v22 = vpop.f32.mrf.mxu3 }
 0x1ea   : > { %v2011_v60 = vadd.f32 %v2010_v31, %v1922_v9  ;;  %v1923_v23 = vpop.f32.mrf.mxu1  ;;  %v2590_v35 = vpop.f32.mrf.mxu0  ;;  %v4277_v31 = vld [vmem:[#allocation2 + $0xe0] sm:$0xf] }
 0x1eb   : > { %v1924_v13 = vadd.f32 %v1923_v23, %v5795_v38  ;;  %v4613_v23 = vld [vmem:[#allocation2 + $0x110] sm:$0xf] }
 0x1ec   : > { %v2500_v12 = vadd.f32 %v2499_v22, %v2011_v60  ;;  %v4819_v22 = vld [vmem:[#allocation2 + $0xe8] sm:$0xf0]  ;;  %v4605_v60 = vld [vmem:[#allocation2 + $0x108] sm:$0xf] }
 0x1ed   : > { %v4278_v55 = vor.u32 %v4819_v22, %v4277_v31 }
 0x1ee   : > { %v6001_v37 = vadd.f32 %v2588_v63, %v2500_v12  ;;  %v4963_v12 = vld [vmem:[#allocation2 + $0x118] sm:$0xf0] }
 0x1ef   : > { %v4614_v41 = vor.u32 %v4963_v12, %v4613_v23  ;;  %v4289_v23 = vld [vmem:[#allocation2 + $0xf8] sm:$0xf]  ;;  %v4822_v12 = vld [vmem:[#allocation2 + $0x100] sm:$0xf0] }
 0x1f1   : > { %v2012_v36 = vpop.f32.mrf.mxu2  ;;  %v2501_v61 = vpop.f32.mrf.mxu3 }
 0x1f2   : > { %v2013_v51 = vadd.f32 %v2012_v36, %v1924_v13  ;;  %v2602_v43 = vpop.f32.mrf.mxu1  ;;  %v3383_v17 = vpop.f32.mrf.mxu0 }
 0x1f3   : > { %v2603_v28 = vadd.f32 %v2602_v43, %v5825_v10 }
 0x1f4   : > { %v2502_v45 = vadd.f32 %v2501_v61, %v2013_v51 }
 0x1f5   : > { %2641 = vmatmul.bf16.gmra.mxu1 %v4266_v16  ;;  %3422 = vmatmul.bf16.gmra.mxu0 %v4602_v24  ;;  %v4606_v16 = vor.u32 %v4962_v42, %v4605_v60  ;;  %v4610_v24 = vor.u32 %v4961_v18, %v4607_v20  ;;  %v4617_v18 = vld [vmem:[#allocation2 + $0x120] sm:$0xf]  ;;  %v4625_v20 = vld [vmem:[#allocation2 + $0x128] sm:$0xf] }
 0x1f6   : > { %3244 = vmatmul.bf16.gmra.mxu2 %v4594_v50  ;;  %3333 = vmatmul.bf16.gmra.mxu3 %v4598_v32  ;;  %v6004_v63 = vadd.f32 %v2590_v35, %v2502_v45 }
 0x1f9   : > { %v3205_v53 = vpop.f32.mrf.mxu2  ;;  %v3294_v33 = vpop.f32.mrf.mxu3 }
 0x1fa   : > { %v2604_v38 = vpop.f32.mrf.mxu1  ;;  %v3385_v56 = vpop.f32.mrf.mxu0  ;;  %v3295_v9 = vadd.f32 %v3294_v33, %v3205_v53 }
 0x1fb   : > { %v2605_v50 = vadd.f32 %v2604_v38, %v5831_v58 }
 0x1fc   : > { %v3384_v44 = vadd.f32 %v3383_v17, %v3295_v9 }
 0x1fe   : > { %v3463_v51 = vadd.f32 %v3384_v44, %v2603_v28  ;;  %v4966_v44 = vld [vmem:[#allocation2 + $0x130] sm:$0xf0] }
 0x200   : > { %v3532_v45 = vmul.f32 %v3463_v51, %v3463_v51 }
 0x201   : > { %v3207_v25 = vpop.f32.mrf.mxu2  ;;  %v3296_v35 = vpop.f32.mrf.mxu3 }
 0x202   : > { %v3297_v13 = vadd.f32 %v3296_v35, %v3207_v25  ;;  %v2607_v36 = vpop.f32.mrf.mxu1  ;;  %v3388_v61 = vpop.f32.mrf.mxu0  ;;  %v4965_v25 = vld [vmem:[#allocation2 + $0x128] sm:$0xf0]  ;;  %v4964_v35 = vld [vmem:[#allocation2 + $0x124] sm:$0xf] }
 0x204   : > { %v3386_v32 = vadd.f32 %v3385_v56, %v3297_v13  ;;  %v2608_v56 = vadd.f32 %v2607_v36, %v5845_v8  ;;  %v4618_v36 = vor.u32 %v4965_v25, %v4617_v18  ;;  %v4637_v25 = vld [vmem:[#allocation2 + $0x140] sm:$0xf] }
 0x205   : > { %2646 = vmatmul.bf16.gmra.mxu1 %v4278_v55  ;;  %3427 = vmatmul.bf16.gmra.mxu0 %v4614_v41  ;;  %v4619_v55 = vld [vmem:[#allocation2 + $0x12c] sm:$0xf0] }
 0x206   : > { %v3464_v17 = vadd.f32 %v3386_v32, %v2605_v50  ;;  %3249 = vmatmul.bf16.gmra.mxu2 %v4606_v16  ;;  %3338 = vmatmul.bf16.gmra.mxu3 %v4610_v24  ;;  %v4290_v24 = vor.u32 %v4822_v12, %v4289_v23 }
 0x208   : > { %v3495_v53 = vadd.f32 %v3464_v17, %v3463_v51  ;;  %v3533_v33 = vmul.f32 %v3464_v17, %v3464_v17  ;;  %v5010_v9 = vpack.c.bf16 %v3464_v17, %v3463_v51  ;;  %v4626_v51 = vor.u32 %v4966_v44, %v4625_v20  ;;  %v4629_v44 = vld [vmem:[#allocation2 + $0x138] sm:$0xf] }
 0x209   : > { %v3210_v10 = vpop.f32.mrf.mxu2  ;;  %v3299_v43 = vpop.f32.mrf.mxu3 }
 0x20a   : > { %v3564_v31 = vadd.f32 %v3533_v33, %v3532_v45  ;;  %5011 = vst [vmem:[%s6012_s17] sm:$0xff] %v5010_v9   ;;  %v3300_v22 = vadd.f32 %v3299_v43, %v3210_v10  ;;  %v2609_v58 = vpop.f32.mrf.mxu1  ;;  %v3390_v38 = vpop.f32.mrf.mxu0 }
 0x20b   : > { %v2610_v45 = vadd.f32 %v2609_v58, %v5856_v2  ;;  %v4301_v2 = vld [vmem:[#allocation2 + $0x110] sm:$0xf]  ;;  %v4825_v58 = vld [vmem:[#allocation2 + $0x118] sm:$0xf0] }
 0x20c   : > { %v3389_v60 = vadd.f32 %v3388_v61, %v3300_v22  ;;  %v4622_v61 = vor.u32 %v4964_v35, %v4619_v55  ;;  %v4969_v35 = vld [vmem:[#allocation2 + $0x148] sm:$0xf0]  ;;  %v4968_v55 = vld [vmem:[#allocation2 + $0x140] sm:$0xf0] }
 0x20e   : > { %v3465_v42 = vadd.f32 %v3389_v60, %v2608_v56 }
 0x210   : > { %v3496_v41 = vadd.f32 %v3495_v53, %v3465_v42  ;;  %v3534_v28 = vmul.f32 %v3465_v42, %v3465_v42 }
 0x211   : > { %v3212_v13 = vpop.f32.mrf.mxu2  ;;  %v3301_v16 = vpop.f32.mrf.mxu3 }
 0x212   : > { %v3565_v50 = vadd.f32 %v3564_v31, %v3534_v28  ;;  %v3302_v32 = vadd.f32 %v3301_v16, %v3212_v13  ;;  %v2612_v17 = vpop.f32.mrf.mxu1  ;;  %v3393_v8 = vpop.f32.mrf.mxu0  ;;  %v4631_v28 = vld [vmem:[#allocation2 + $0x144] sm:$0xf0] }
 0x213   : > { %v2613_v18 = vadd.f32 %v2612_v17, %v5877_v3  ;;  %v4630_v17 = vor.u32 %v4968_v55, %v4629_v44  ;;  %v4641_v44 = vld [vmem:[#allocation2 + $0x150] sm:$0xf]  ;;  %v4971_v55 = vld [vmem:[#allocation2 + $0x158] sm:$0xf0] }
 0x214   : > { %v3391_v33 = vadd.f32 %v3390_v38, %v3302_v32 }
 0x215   : > { %2651 = vmatmul.bf16.gmra.mxu1 %v4290_v24  ;;  %3432 = vmatmul.bf16.gmra.mxu0 %v4626_v51  ;;  %v4302_v51 = vor.u32 %v4825_v58, %v4301_v2 }
 0x216   : > { %v3466_v9 = vadd.f32 %v3391_v33, %v2610_v45  ;;  %3254 = vmatmul.bf16.gmra.mxu2 %v4618_v36  ;;  %3343 = vmatmul.bf16.gmra.mxu3 %v4622_v61 }
 0x218   : > { %v3497_v53 = vadd.f32 %v3496_v41, %v3466_v9  ;;  %v3535_v10 = vmul.f32 %v3466_v9, %v3466_v9  ;;  %v5015_v43 = vpack.c.bf16 %v3466_v9, %v3465_v42  ;;  %v4967_v41 = vld [vmem:[#allocation2 + $0x13c] sm:$0xf] }
 0x219   : > { %v3215_v22 = vpop.f32.mrf.mxu2  ;;  %v3304_v56 = vpop.f32.mrf.mxu3 }
 0x21a   : > { %v3566_v31 = vadd.f32 %v3565_v50, %v3535_v10  ;;  %5087 = vst [vmem:[%s6012_s17 + $0x8] sm:$0xff] %v5015_v43   ;;  %v3305_v60 = vadd.f32 %v3304_v56, %v3215_v22  ;;  %v2614_v23 = vpop.f32.mrf.mxu1  ;;  %v3395_v12 = vpop.f32.mrf.mxu0  ;;  %v4638_v50 = vor.u32 %v4969_v35, %v4637_v25  ;;  %v4649_v25 = vld [vmem:[#allocation2 + $0x158] sm:$0xf]  ;;  %v4972_v35 = vld [vmem:[#allocation2 + $0x160] sm:$0xf0] }
 0x21b   : > { %v2615_v45 = vadd.f32 %v2614_v23, %v5883_v40  ;;  %v4313_v40 = vld [vmem:[#allocation2 + $0x128] sm:$0xf]  ;;  %v4828_v23 = vld [vmem:[#allocation2 + $0x130] sm:$0xf0] }
 0x21c   : > { %v3394_v20 = vadd.f32 %v3393_v8, %v3305_v60  ;;  %v4634_v8 = vor.u32 %v4967_v41, %v4631_v28  ;;  %v4643_v41 = vld [vmem:[#allocation2 + $0x15c] sm:$0xf0] }
 0x21e   : > { %v3467_v38 = vadd.f32 %v3394_v20, %v2613_v18 }
 0x220   : > { %v3498_v42 = vadd.f32 %v3497_v53, %v3467_v38  ;;  %v3536_v13 = vmul.f32 %v3467_v38, %v3467_v38 }
 0x221   : > { %v3217_v16 = vpop.f32.mrf.mxu2  ;;  %v3306_v24 = vpop.f32.mrf.mxu3 }
 0x222   : > { %v3567_v32 = vadd.f32 %v3566_v31, %v3536_v13  ;;  %v3307_v36 = vadd.f32 %v3306_v24, %v3217_v16  ;;  %v2617_v61 = vpop.f32.mrf.mxu1  ;;  %v3398_v3 = vpop.f32.mrf.mxu0  ;;  %v4314_v24 = vor.u32 %v4828_v23, %v4313_v40 }
 0x223   : > { %v2618_v2 = vadd.f32 %v2617_v61, %v5897_v1  ;;  %v4642_v61 = vor.u32 %v4971_v55, %v4641_v44  ;;  %v864_v44 = vld [vmem:[%s5353_s7 + $0xcc] sm:$0xe] }
 0x224   : > { %v3396_v33 = vadd.f32 %v3395_v12, %v3307_v36 }
 0x225   : > { %2656 = vmatmul.bf16.gmra.mxu1 %v4302_v51  ;;  %3437 = vmatmul.bf16.gmra.mxu0 %v4638_v50  ;;  %v4650_v51 = vor.u32 %v4972_v35, %v4649_v25  ;;  %v866_v25 = vld [vmem:[%s5353_s7 + $0xd4] sm:$0x1] }
 0x226   : > { %v3468_v9 = vadd.f32 %v3396_v33, %v2615_v45  ;;  %3259 = vmatmul.bf16.gmra.mxu2 %v4630_v17  ;;  %3348 = vmatmul.bf16.gmra.mxu3 %v4634_v8  ;;  %v303_v17 = vld [vmem:[%s5353_s7 + $0xcc] sm:$0xf]  ;;  %v304_v8 = vld [vmem:[%s5353_s7 + $0xd0] sm:$0xf] }
 0x228   : > { %v3499_v53 = vadd.f32 %v3498_v42, %v3468_v9  ;;  %v3537_v10 = vmul.f32 %v3468_v9, %v3468_v9  ;;  %v5020_v43 = vpack.c.bf16 %v3468_v9, %v3467_v38  ;;  %v4970_v38 = vld [vmem:[#allocation2 + $0x154] sm:$0xf]  ;;  %v718_v9 = vshrl.u32 %v303_v17, 16 }
 0x229   : > { %v3220_v22 = vpop.f32.mrf.mxu2  ;;  %v3309_v56 = vpop.f32.mrf.mxu3 }
 0x22a   : > { %v3568_v31 = vadd.f32 %v3567_v32, %v3537_v10  ;;  %5088 = vst [vmem:[%s6012_s17 + $0x10] sm:$0xff] %v5020_v43   ;;  %v3310_v60 = vadd.f32 %v3309_v56, %v3220_v22  ;;  %v2619_v18 = vpop.f32.mrf.mxu1  ;;  %v3400_v20 = vpop.f32.mrf.mxu0  ;;  %v305_v43 = vld [vmem:[%s5353_s7 + $0xd4] sm:$0x1]  ;;  %v727_v22 = vshll.u32 %v304_v8, 16  ;;  %v731_v56 = vshrl.u32 %v304_v8, 16 }
 0x22b   : > { %v2620_v45 = vadd.f32 %v2619_v18, %v5907_v49 }
 0x22c   : > { %v3399_v58 = vadd.f32 %v3398_v3, %v3310_v60  ;;  %v4646_v3 = vor.u32 %v4970_v38, %v4643_v41  ;;  %v720_v60 = vrot.slane %v718_v9, 4  ;;  %v729_v23 = vrot.slane %v727_v22, 5  ;;  %v4325_v9 = vld [vmem:[#allocation2 + $0x140] sm:$0xf] }
 0x22d   : > { %v733_v41 = vrot.slane %v731_v56, 4 }
 0x22e   : > { %v3469_v12 = vadd.f32 %v3399_v58, %v2618_v2  ;;  %v737_v58 = vshll.u32 %v305_v43, 16  ;;  %v4974_v43 = vld [vmem:[#allocation2 + $0x170] sm:$0xf0] }
 0x230   : > { %v3500_v28 = vadd.f32 %v3499_v53, %v3469_v12  ;;  %v3538_v42 = vmul.f32 %v3469_v12, %v3469_v12  ;;  %v721_v53 = vshll.u32 %v303_v17, 16  ;;  %v734_v17 = vor.u32 %v733_v41, %v729_v23 }
 0x231   : > { %v3222_v13 = vpop.f32.mrf.mxu2  ;;  %v3311_v16 = vpop.f32.mrf.mxu3  ;;  %v739_v8 = vrot.slane %v737_v58, 5 }
 0x232   : > { %v3569_v50 = vadd.f32 %v3568_v31, %v3538_v42  ;;  %v3312_v1 = vadd.f32 %v3311_v16, %v3222_v13  ;;  %v2622_v32 = vpop.f32.mrf.mxu1  ;;  %v3403_v36 = vpop.f32.mrf.mxu0  ;;  %v865_v31 = vld [vmem:[%s5353_s7 + $0xd0] sm:$0xf]  ;;  %v723_v2 = vrot.slane %v721_v53, 5  ;;  %v3822_v42 = vrot.slane %v864_v44, 9  ;;  %v4831_v53 = vld [vmem:[#allocation2 + $0x148] sm:$0xf0] }
 0x233   : > { %v1045_v40 = vrot.slane %v865_v31, 5  ;;  %v735_v56 = vrot.slane %v734_v17, 4 }
 0x234   : > { %v3401_v33 = vadd.f32 %v3400_v20, %v3312_v1  ;;  %v724_v38 = vor.u32 %v723_v2, %v720_v60  ;;  %v4661_v60 = vld [vmem:[#allocation2 + $0x170] sm:$0xf]  ;;  %v4975_v2 = vld [vmem:[#allocation2 + $0x178] sm:$0xf0] }
 0x235   : > { %2661 = vmatmul.bf16.gmra.mxu1 %v4314_v24  ;;  %3442 = vmatmul.bf16.gmra.mxu0 %v4650_v51  ;;  %v1047_v1 = vrot.slane %v1045_v40, 4  ;;  %v740_v58 = vsel %vm5496_vm4, %v735_v56, %v739_v8  ;;  %v4667_v56 = vld [vmem:[#allocation2 + $0x18c] sm:$0xf0] }
 0x236   : > { %v3470_v10 = vadd.f32 %v3401_v33, %v2620_v45  ;;  %3264 = vmatmul.bf16.gmra.mxu2 %v4642_v61  ;;  %3353 = vmatmul.bf16.gmra.mxu3 %v4646_v3  ;;  %v1048_v61 = vrot.slane %v866_v25, 5  ;;  %v215_v3 = vld [vmem:[%s5353_s7 + $0xd0] sm:$0xf]  ;;  %v2623_v45 = vadd.f32 %v2622_v32, %v5928_v15  ;;  %v4973_v32 = vld [vmem:[#allocation2 + $0x16c] sm:$0xf]  ;;  %v4662_v25 = vor.u32 %v4975_v2, %v4661_v60 }
 0x237   : > { %251 = vst [vmem:[#allocation2 + $0x1a4] sm:$0xf] %v215_v3 }
 0x238   : > { %v3501_v49 = vadd.f32 %v3500_v28, %v3470_v10  ;;  %v3539_v18 = vmul.f32 %v3470_v10, %v3470_v10  ;;  %v5025_v20 = vpack.c.bf16 %v3470_v10, %v3469_v12  ;;  %v214_v28 = vld [vmem:[%s5353_s7 + $0xcc] sm:$0xf]  ;;  %v725_v12 = vrot.slane %v724_v38, 4  ;;  %v4653_v10 = vld [vmem:[#allocation2 + $0x168] sm:$0xf]  ;;  %s5006_s7 = sshll.u32 %s5312_s16, 7 }
 0x239   : > { %v3225_v35 = vpop.f32.mrf.mxu2  ;;  %v3314_v55 = vpop.f32.mrf.mxu3  ;;  %250 = vst [vmem:[#allocation2 + $0x198] sm:$0xf] %v214_v28  ;;  %v1049_v15 = vsel %vm5510_vm5, %v1047_v1, %v1048_v61  ;;  %v4654_v59 = vor.u32 %v4974_v43, %v4653_v10  ;;  %v4978_v10 = vld [vmem:[#allocation2 + $0x190] sm:$0xf0]  ;;  %v4977_v43 = vld [vmem:[#allocation2 + $0x188] sm:$0xf0]  ;;  %s3685_s24 = scalar_lea.hbm %s6127_s2, %s5006_s7 }
 0x23a   : > { %v3570_v13 = vadd.f32 %v3569_v50, %v3539_v18  ;;  %5089 = vst [vmem:[%s6012_s17 + $0x18] sm:$0xff] %v5025_v20   ;;  %v3315_v16 = vadd.f32 %v3314_v55, %v3225_v35  ;;  %v2624_v24 = vpop.f32.mrf.mxu1  ;;  %v3405_v51 = vpop.f32.mrf.mxu0  ;;  %v1046_v50 = vsel %vm5510_vm5, %v3822_v42, %v1045_v40  ;;  %v730_v22 = vsel %vm5496_vm4, %v725_v12, %v729_v23  ;;  %s3688_s26 = sshll.u32 %s3685_s24, 4  ;;  %s3689_s26 = int_to_ptr.hbm [resolvable:$true] %s3688_s26 }
 0x23b   : > { %811 = vst [vmem:[#allocation2 + $0x19c] sm:$0xf] %v730_v22  ;;  %v4326_v23 = vor.u32 %v4831_v53, %v4325_v9  ;;  %v4665_v53 = vld [vmem:[#allocation2 + $0x180] sm:$0xf]  ;;  %v4976_v22 = vld [vmem:[#allocation2 + $0x184] sm:$0xf] }
 0x23c   : > { %v3404_v33 = vadd.f32 %v3403_v36, %v3315_v16  ;;  %v4655_v36 = vld [vmem:[#allocation2 + $0x174] sm:$0xf0]  ;;  %1120 = vst [vmem:[#allocation2 + $0x1a0] sm:$0xf] %v1046_v50  ;;  %v2625_v16 = vadd.f32 %v2624_v24, %v5932_v34  ;;  %v4834_v24 = vld [vmem:[#allocation2 + $0x160] sm:$0xf0] }
 0x23d   : > { %812 = vst [vmem:[#allocation2 + $0x1a8] sm:$0xf] %v740_v58  ;;  %v4658_v42 = vor.u32 %v4973_v32, %v4655_v36  ;;  %v4337_v34 = vld [vmem:[#allocation2 + $0x158] sm:$0xf]  ;;  %v4673_v50 = vld [vmem:[#allocation2 + $0x188] sm:$0xf] }
 0x23e   : > { %v3471_v31 = vadd.f32 %v3404_v33, %v2623_v45  ;;  %1121 = vst [vmem:[#allocation2 + $0x1ac] sm:$0xf] %v1049_v15  ;;  %v4338_v32 = vor.u32 %v4834_v24, %v4337_v34  ;;  %v4674_v36 = vor.u32 %v4978_v10, %v4673_v50  ;;  %s5187_s28 = sshra.s32 %s3689_s26, 4  ;;  %s5188_s28 = int_to_ptr.hbm [resolvable:$true] %s5187_s28 }
 0x23f   : > { %s5189_s29 = scalar_lea.hbm %s5188_s28, 128  ;;  %p5194_p0 = scmp.lt.s32.totalorder %s5188_s28, %s6127_s2 }
 0x240   : > { %v3502_v40 = vadd.f32 %v3501_v49, %v3471_v31  ;;  %v3540_v18 = vmul.f32 %v3471_v31, %v3471_v31  ;;  %p5190_p11 = scmp.ne.s32.totalorder %s5188_s28, %s5189_s29  ;;  %p5195_p1 = scmp.lt.s32.totalorder %s5193_s5, %s5189_s29 }
 0x241   : > { %v3227_v20 = vpop.f32.mrf.mxu2  ;;  %v3316_v44 = vpop.f32.mrf.mxu3 }
 0x242   : > { %v3571_v35 = vadd.f32 %v3570_v13, %v3540_v18  ;;  %v3317_v55 = vadd.f32 %v3316_v44, %v3227_v20  ;;  %v2627_v38 = vpop.f32.mrf.mxu1  ;;  %v3408_v41 = vpop.f32.mrf.mxu0  ;;  %v4666_v20 = vor.u32 %v4977_v43, %v4665_v53  ;;  %v4670_v44 = vor.u32 %v4976_v22, %v4667_v56  ;;  %p5191_p12 = pnand %p5190_p11, %p5329_p5  ;;  %p5196_p2 = por %p5195_p1, %p5194_p0 }
 0x243   : > { %v2628_v33 = vadd.f32 %v2627_v38, %v5941_v57 }
 0x244   : > { %v3406_v46 = vadd.f32 %v3405_v51, %v3317_v55  ;;  %p5192_p13 = pneg %p5191_p12 }
 0x245   : > { %2666 = vmatmul.bf16.gmra.mxu1 %v4326_v23  ;;  %3447 = vmatmul.bf16.gmra.mxu0 %v4662_v25 }
 0x246   : > { %v3472_v49 = vadd.f32 %v3406_v46, %v2625_v16  ;;  %3269 = vmatmul.bf16.gmra.mxu2 %v4654_v59  ;;  %3358 = vmatmul.bf16.gmra.mxu3 %v4658_v42  ;;  %p5197_p3 = pnand %p5196_p2, %p5192_p13 }
 0x248   : > { %v3503_v1 = vadd.f32 %v3502_v40, %v3472_v49  ;;  %v3541_v61 = vmul.f32 %v3472_v49, %v3472_v49  ;;  %v5030_v28 = vpack.c.bf16 %v3472_v49, %v3471_v31 }
 0x249   : > { %v3230_v3 = vpop.f32.mrf.mxu2  ;;  %v3319_v12 = vpop.f32.mrf.mxu3 }
 0x24a   : > { %v3572_v13 = vadd.f32 %v3571_v35, %v3541_v61  ;;  %5090 = vst [vmem:[%s6012_s17 + $0x20] sm:$0xff] %v5030_v28   ;;  %v3320_v17 = vadd.f32 %v3319_v12, %v3230_v3  ;;  %v2629_v8 = vpop.f32.mrf.mxu1  ;;  %v3410_v45 = vpop.f32.mrf.mxu0  ;;  %v4837_v3 = vld [vmem:[#allocation2 + $0x178] sm:$0xf0] }
 0x24b   : > { %v2630_v23 = vadd.f32 %v2629_v8, %v5944_v14  ;;  %v4349_v14 = vld [vmem:[#allocation2 + $0x170] sm:$0xf]  ;;  %v4981_v8 = vld [vmem:[#allocation2 + $0x1a8] sm:$0xf0] }
 0x24c   : > { %v3409_v9 = vadd.f32 %v3408_v41, %v3320_v17  ;;  %v4685_v17 = vld [vmem:[#allocation2 + $0x1a0] sm:$0xf]  ;;  %v4350_v50 = vor.u32 %v4837_v3, %v4349_v14 }
 0x24d   : > { %v4686_v10 = vor.u32 %v4981_v8, %v4685_v17 }
 0x24e   : > { %v3473_v51 = vadd.f32 %v3409_v9, %v2628_v33  ;;  %v4979_v33 = vld [vmem:[#allocation2 + $0x19c] sm:$0xf]  ;;  %v4679_v9 = vld [vmem:[#allocation2 + $0x1a4] sm:$0xf0] }
 0x250   : > { %v3504_v31 = vadd.f32 %v3503_v1, %v3473_v51  ;;  %v3542_v60 = vmul.f32 %v3473_v51, %v3473_v51 }
 0x251   : > { %v3232_v2 = vpop.f32.mrf.mxu2  ;;  %v3321_v15 = vpop.f32.mrf.mxu3 }
 0x252   : > { %v3573_v58 = vadd.f32 %v3572_v13, %v3542_v60  ;;  %v3322_v40 = vadd.f32 %v3321_v15, %v3232_v2  ;;  %v2632_v18 = vpop.f32.mrf.mxu1  ;;  %v3413_v57 = vpop.f32.mrf.mxu0  ;;  %v4677_v13 = vld [vmem:[#allocation2 + $0x198] sm:$0xf]  ;;  %v4682_v60 = vor.u32 %v4979_v33, %v4679_v9 }
 0x253   : > { %v2633_v61 = vadd.f32 %v2632_v18, %v5947_v47 }
 0x254   : > { %v3411_v25 = vadd.f32 %v3410_v45, %v3322_v40  ;;  %v4980_v45 = vld [vmem:[#allocation2 + $0x1a0] sm:$0xf0] }
 0x255   : > { %2671 = vmatmul.bf16.gmra.mxu1 %v4338_v32  ;;  %3452 = vmatmul.bf16.gmra.mxu0 %v4674_v36 }
 0x256   : > { %v3474_v35 = vadd.f32 %v3411_v25, %v2630_v23  ;;  %3274 = vmatmul.bf16.gmra.mxu2 %v4666_v20  ;;  %3363 = vmatmul.bf16.gmra.mxu3 %v4670_v44 }
 0x258   : > { %v3505_v55 = vadd.f32 %v3504_v31, %v3474_v35  ;;  %v3543_v38 = vmul.f32 %v3474_v35, %v3474_v35  ;;  %v5035_v41 = vpack.c.bf16 %v3474_v35, %v3473_v51  ;;  %v4678_v31 = vor.u32 %v4980_v45, %v4677_v13 }
 0x259   : > { %v3235_v59 = vpop.f32.mrf.mxu2  ;;  %v3324_v42 = vpop.f32.mrf.mxu3 }
 0x25a   : > { %v3574_v16 = vadd.f32 %v3573_v58, %v3543_v38  ;;  %5091 = vst [vmem:[%s6012_s17 + $0x28] sm:$0xff] %v5035_v41   ;;  %v3325_v46 = vadd.f32 %v3324_v42, %v3235_v59  ;;  %v2634_v49 = vpop.f32.mrf.mxu1  ;;  %v3415_v1 = vpop.f32.mrf.mxu0 }
 0x25b   : > { %v2635_v2 = vadd.f32 %v2634_v49, %v5950_v62 }
 0x25c   : > { %v3414_v28 = vadd.f32 %v3413_v57, %v3325_v46 }
 0x25e   : > { %v3475_v12 = vadd.f32 %v3414_v28, %v2633_v61 }
 0x260   : > { %v3506_v34 = vadd.f32 %v3505_v55, %v3475_v12  ;;  %v3544_v24 = vmul.f32 %v3475_v12, %v3475_v12 }
 0x261   : > { %v3237_v51 = vpop.f32.mrf.mxu2  ;;  %v3326_v53 = vpop.f32.mrf.mxu3 }
 0x262   : > { %v3575_v43 = vadd.f32 %v3574_v16, %v3544_v24  ;;  %v3327_v22 = vadd.f32 %v3326_v53, %v3237_v51  ;;  %v2637_v56 = vpop.f32.mrf.mxu1  ;;  %v3418_v47 = vpop.f32.mrf.mxu0 }
 0x263   : > { %v2638_v35 = vadd.f32 %v2637_v56, %v5953_v0 }
 0x264   : > { %v3416_v15 = vadd.f32 %v3415_v1, %v3327_v22 }
 0x265   : > { %2676 = vmatmul.bf16.gmra.mxu1 %v4350_v50  ;;  %3457 = vmatmul.bf16.gmra.mxu0 %v4686_v10 }
 0x266   : > { %v3476_v32 = vadd.f32 %v3416_v15, %v2635_v2  ;;  %3279 = vmatmul.bf16.gmra.mxu2 %v4678_v31  ;;  %3368 = vmatmul.bf16.gmra.mxu3 %v4682_v60 }
 0x268   : > { %v3507_v36 = vadd.f32 %v3506_v34, %v3476_v32  ;;  %v3545_v58 = vmul.f32 %v3476_v32, %v3476_v32  ;;  %v5040_v40 = vpack.c.bf16 %v3476_v32, %v3475_v12 }
 0x269   : > { %v3240_v18 = vpop.f32.mrf.mxu2  ;;  %v3329_v57 = vpop.f32.mrf.mxu3 }
 0x26a   : > { %v3576_v20 = vadd.f32 %v3575_v43, %v3545_v58  ;;  %5092 = vst [vmem:[%s6012_s17 + $0x30] sm:$0xff] %v5040_v40   ;;  %v3330_v44 = vadd.f32 %v3329_v57, %v3240_v18  ;;  %v2639_v23 = vpop.f32.mrf.mxu1  ;;  %v3420_v25 = vpop.f32.mrf.mxu0 }
 0x26b   : > { %v2640_v61 = vadd.f32 %v2639_v23, %v5956_v29 }
 0x26c   : > { %v3419_v55 = vadd.f32 %v3418_v47, %v3330_v44 }
 0x26e   : > { %v3477_v62 = vadd.f32 %v3419_v55, %v2638_v35 }
 0x270   : > { %v3508_v38 = vadd.f32 %v3507_v36, %v3477_v62  ;;  %v3546_v41 = vmul.f32 %v3477_v62, %v3477_v62 }
 0x271   : > { %v3242_v59 = vpop.f32.mrf.mxu2  ;;  %v3331_v42 = vpop.f32.mrf.mxu3 }
 0x272   : > { %v3577_v16 = vadd.f32 %v3576_v20, %v3546_v41  ;;  %v3332_v46 = vadd.f32 %v3331_v42, %v3242_v59  ;;  %v2642_v49 = vpop.f32.mrf.mxu1  ;;  %v3423_v1 = vpop.f32.mrf.mxu0 }
 0x273   : > { %v2643_v34 = vadd.f32 %v2642_v49, %v5959_v48 }
 0x274   : > { %v3421_v28 = vadd.f32 %v3420_v25, %v3332_v46 }
 0x276   : > { %v3478_v14 = vadd.f32 %v3421_v28, %v2640_v61 }
 0x278   : > { %v3509_v3 = vadd.f32 %v3508_v38, %v3478_v14  ;;  %v3547_v12 = vmul.f32 %v3478_v14, %v3478_v14  ;;  %v5045_v13 = vpack.c.bf16 %v3478_v14, %v3477_v62 }
 0x279   : > { %v3245_v17 = vpop.f32.mrf.mxu2  ;;  %v3334_v0 = vpop.f32.mrf.mxu3 }
 0x27a   : > { %v3578_v8 = vadd.f32 %v3577_v16, %v3547_v12  ;;  %5093 = vst [vmem:[%s6012_s17 + $0x38] sm:$0xff] %v5045_v13   ;;  %v3335_v45 = vadd.f32 %v3334_v0, %v3245_v17  ;;  %v2644_v33 = vpop.f32.mrf.mxu1  ;;  %v3425_v9 = vpop.f32.mrf.mxu0 }
 0x27b   : > { %v2645_v31 = vadd.f32 %v2644_v33, %v5962_v7 }
 0x27c   : > { %v3424_v24 = vadd.f32 %v3423_v1, %v3335_v45 }
 0x27e   : > { %v3479_v51 = vadd.f32 %v3424_v24, %v2643_v34 }
 0x280   : > { %v3510_v53 = vadd.f32 %v3509_v3, %v3479_v51  ;;  %v3548_v50 = vmul.f32 %v3479_v51, %v3479_v51 }
 0x281   : > { %v3247_v29 = vpop.f32.mrf.mxu2  ;;  %v3336_v10 = vpop.f32.mrf.mxu3 }
 0x282   : > { %v3579_v43 = vadd.f32 %v3578_v8, %v3548_v50  ;;  %v3337_v22 = vadd.f32 %v3336_v10, %v3247_v29  ;;  %v2647_v56 = vpop.f32.mrf.mxu1  ;;  %v3428_v47 = vpop.f32.mrf.mxu0 }
 0x283   : > { %v2648_v44 = vadd.f32 %v2647_v56, %v5965_v52 }
 0x284   : > { %v3426_v60 = vadd.f32 %v3425_v9, %v3337_v22 }
 0x286   : > { %v3480_v2 = vadd.f32 %v3426_v60, %v2645_v31 }
 0x288   : > { %v3511_v15 = vadd.f32 %v3510_v53, %v3480_v2  ;;  %v3549_v32 = vmul.f32 %v3480_v2, %v3480_v2  ;;  %v5050_v36 = vpack.c.bf16 %v3480_v2, %v3479_v51 }
 0x289   : > { %v3250_v58 = vpop.f32.mrf.mxu2  ;;  %v3339_v48 = vpop.f32.mrf.mxu3 }
 0x28a   : > { %v3580_v40 = vadd.f32 %v3579_v43, %v3549_v32  ;;  %5094 = vst [vmem:[%s6012_s17 + $0x40] sm:$0xff] %v5050_v36   ;;  %v3340_v18 = vadd.f32 %v3339_v48, %v3250_v58  ;;  %v2649_v57 = vpop.f32.mrf.mxu1  ;;  %v3430_v20 = vpop.f32.mrf.mxu0 }
 0x28b   : > { %v2650_v16 = vadd.f32 %v2649_v57, %v5968_v6 }
 0x28c   : > { %v3429_v23 = vadd.f32 %v3428_v47, %v3340_v18 }
 0x28e   : > { %v3481_v25 = vadd.f32 %v3429_v23, %v2648_v44 }
 0x290   : > { %v3512_v35 = vadd.f32 %v3511_v15, %v3481_v25  ;;  %v3550_v55 = vmul.f32 %v3481_v25, %v3481_v25 }
 0x291   : > { %v3252_v7 = vpop.f32.mrf.mxu2  ;;  %v3341_v62 = vpop.f32.mrf.mxu3 }
 0x292   : > { %v3581_v38 = vadd.f32 %v3580_v40, %v3550_v55  ;;  %v3342_v41 = vadd.f32 %v3341_v62, %v3252_v7  ;;  %v2652_v59 = vpop.f32.mrf.mxu1  ;;  %v3433_v42 = vpop.f32.mrf.mxu0 }
 0x293   : > { %v2653_v0 = vadd.f32 %v2652_v59, %v5971_v54 }
 0x294   : > { %v3431_v46 = vadd.f32 %v3430_v20, %v3342_v41 }
 0x296   : > { %v3482_v49 = vadd.f32 %v3431_v46, %v2650_v16 }
 0x298   : > { %v3513_v1 = vadd.f32 %v3512_v35, %v3482_v49  ;;  %v3551_v61 = vmul.f32 %v3482_v49, %v3482_v49  ;;  %v5055_v28 = vpack.c.bf16 %v3482_v49, %v3481_v25 }
 0x299   : > { %v3255_v14 = vpop.f32.mrf.mxu2  ;;  %v3344_v52 = vpop.f32.mrf.mxu3 }
 0x29a   : > { %v3582_v3 = vadd.f32 %v3581_v38, %v3551_v61  ;;  %5095 = vst [vmem:[%s6012_s17 + $0x48] sm:$0xff] %v5055_v28   ;;  %v3345_v12 = vadd.f32 %v3344_v52, %v3255_v14  ;;  %v2654_v13 = vpop.f32.mrf.mxu1  ;;  %v3435_v17 = vpop.f32.mrf.mxu0 }
 0x29b   : > { %v2655_v29 = vadd.f32 %v2654_v13, %v5974_v27 }
 0x29c   : > { %v3434_v8 = vadd.f32 %v3433_v42, %v3345_v12 }
 0x29e   : > { %v3483_v45 = vadd.f32 %v3434_v8, %v2653_v0 }
 0x2a0   : > { %v3514_v33 = vadd.f32 %v3513_v1, %v3483_v45  ;;  %v3552_v9 = vmul.f32 %v3483_v45, %v3483_v45 }
 0x2a1   : > { %v3257_v6 = vpop.f32.mrf.mxu2  ;;  %v3346_v34 = vpop.f32.mrf.mxu3 }
 0x2a2   : > { %v3583_v24 = vadd.f32 %v3582_v3, %v3552_v9  ;;  %v3347_v51 = vadd.f32 %v3346_v34, %v3257_v6  ;;  %v2657_v53 = vpop.f32.mrf.mxu1  ;;  %v3438_v50 = vpop.f32.mrf.mxu0 }
 0x2a3   : > { %v2658_v36 = vadd.f32 %v2657_v53, %v5977_v5 }
 0x2a4   : > { %v3436_v10 = vadd.f32 %v3435_v17, %v3347_v51 }
 0x2a6   : > { %v3484_v43 = vadd.f32 %v3436_v10, %v2655_v29 }
 0x2a8   : > { %v3515_v22 = vadd.f32 %v3514_v33, %v3484_v43  ;;  %v3553_v56 = vmul.f32 %v3484_v43, %v3484_v43  ;;  %v5060_v47 = vpack.c.bf16 %v3484_v43, %v3483_v45 }
 0x2a9   : > { %v3260_v31 = vpop.f32.mrf.mxu2  ;;  %v3349_v54 = vpop.f32.mrf.mxu3 }
 0x2aa   : > { %v3584_v60 = vadd.f32 %v3583_v24, %v3553_v56  ;;  %5096 = vst [vmem:[%s6012_s17 + $0x50] sm:$0xff] %v5060_v47   ;;  %v3350_v2 = vadd.f32 %v3349_v54, %v3260_v31  ;;  %v2659_v15 = vpop.f32.mrf.mxu1  ;;  %v3440_v32 = vpop.f32.mrf.mxu0 }
 0x2ab   : > { %v2660_v35 = vadd.f32 %v2659_v15, %v5980_v4 }
 0x2ac   : > { %v3439_v58 = vadd.f32 %v3438_v50, %v3350_v2 }
 0x2ae   : > { %v3485_v48 = vadd.f32 %v3439_v58, %v2658_v36 }
 0x2b0   : > { %v3516_v40 = vadd.f32 %v3515_v22, %v3485_v48  ;;  %v3554_v18 = vmul.f32 %v3485_v48, %v3485_v48 }
 0x2b1   : > { %v3262_v27 = vpop.f32.mrf.mxu2  ;;  %v3351_v57 = vpop.f32.mrf.mxu3 }
 0x2b2   : > { %v3585_v20 = vadd.f32 %v3584_v60, %v3554_v18  ;;  %v3352_v44 = vadd.f32 %v3351_v57, %v3262_v27  ;;  %v2662_v23 = vpop.f32.mrf.mxu1  ;;  %v3443_v25 = vpop.f32.mrf.mxu0 }
 0x2b3   : > { %v2663_v1 = vadd.f32 %v2662_v23, %v5983_v19 }
 0x2b4   : > { %v3441_v55 = vadd.f32 %v3440_v32, %v3352_v44 }
 0x2b6   : > { %v3486_v7 = vadd.f32 %v3441_v55, %v2660_v35 }
 0x2b8   : > { %v3517_v62 = vadd.f32 %v3516_v40, %v3486_v7  ;;  %v3555_v38 = vmul.f32 %v3486_v7, %v3486_v7  ;;  %v5065_v41 = vpack.c.bf16 %v3486_v7, %v3485_v48 }
 0x2b9   : > { %v3265_v59 = vpop.f32.mrf.mxu2  ;;  %v3354_v5 = vpop.f32.mrf.mxu3 }
 0x2ba   : > { %v3586_v42 = vadd.f32 %v3585_v20, %v3555_v38  ;;  %5097 = vst [vmem:[%s6012_s17 + $0x58] sm:$0xff] %v5065_v41   ;;  %v3355_v16 = vadd.f32 %v3354_v5, %v3265_v59  ;;  %v2664_v46 = vpop.f32.mrf.mxu1  ;;  %v3445_v49 = vpop.f32.mrf.mxu0 }
 0x2bb   : > { %v2665_v8 = vadd.f32 %v2664_v46, %v5986_v39 }
 0x2bc   : > { %v3444_v61 = vadd.f32 %v3443_v25, %v3355_v16 }
 0x2be   : > { %v3487_v28 = vadd.f32 %v3444_v61, %v2663_v1 }
 0x2c0   : > { %v3518_v14 = vadd.f32 %v3517_v62, %v3487_v28  ;;  %v3556_v52 = vmul.f32 %v3487_v28, %v3487_v28 }
 0x2c1   : > { %v3267_v4 = vpop.f32.mrf.mxu2  ;;  %v3356_v3 = vpop.f32.mrf.mxu3 }
 0x2c2   : > { %v3587_v12 = vadd.f32 %v3586_v42, %v3556_v52  ;;  %v3357_v13 = vadd.f32 %v3356_v3, %v3267_v4  ;;  %v2667_v17 = vpop.f32.mrf.mxu1  ;;  %v3448_v0 = vpop.f32.mrf.mxu0 }
 0x2c3   : > { %v2668_v10 = vadd.f32 %v2667_v17, %v5989_v11 }
 0x2c4   : > { %v3446_v45 = vadd.f32 %v3445_v49, %v3357_v13 }
 0x2c6   : > { %v3488_v33 = vadd.f32 %v3446_v45, %v2665_v8 }
 0x2c8   : > { %v3519_v9 = vadd.f32 %v3518_v14, %v3488_v33  ;;  %v3557_v6 = vmul.f32 %v3488_v33, %v3488_v33  ;;  %v5070_v34 = vpack.c.bf16 %v3488_v33, %v3487_v28 }
 0x2c9   : > { %v3270_v24 = vpop.f32.mrf.mxu2  ;;  %v3359_v19 = vpop.f32.mrf.mxu3 }
 0x2ca   : > { %v3588_v51 = vadd.f32 %v3587_v12, %v3557_v6  ;;  %5098 = vst [vmem:[%s6012_s17 + $0x60] sm:$0xff] %v5070_v34   ;;  %v3360_v53 = vadd.f32 %v3359_v19, %v3270_v24  ;;  %v2669_v50 = vpop.f32.mrf.mxu1  ;;  %v3450_v29 = vpop.f32.mrf.mxu0 }
 0x2cb   : > { %v2670_v15 = vadd.f32 %v2669_v50, %v5992_v26 }
 0x2cc   : > { %v3449_v43 = vadd.f32 %v3448_v0, %v3360_v53 }
 0x2ce   : > { %v3489_v22 = vadd.f32 %v3449_v43, %v2668_v10 }
 0x2d0   : > { %v3520_v56 = vadd.f32 %v3519_v9, %v3489_v22  ;;  %v3558_v47 = vmul.f32 %v3489_v22, %v3489_v22 }
 0x2d1   : > { %v3272_v39 = vpop.f32.mrf.mxu2  ;;  %v3361_v31 = vpop.f32.mrf.mxu3 }
 0x2d2   : > { %v3589_v54 = vadd.f32 %v3588_v51, %v3558_v47  ;;  %v3362_v60 = vadd.f32 %v3361_v31, %v3272_v39  ;;  %v2672_v2 = vpop.f32.mrf.mxu1  ;;  %v3453_v36 = vpop.f32.mrf.mxu0 }
 0x2d3   : > { %v2673_v44 = vadd.f32 %v2672_v2, %v5995_v21 }
 0x2d4   : > { %v3451_v32 = vadd.f32 %v3450_v29, %v3362_v60 }
 0x2d6   : > { %v3490_v58 = vadd.f32 %v3451_v32, %v2670_v15 }
 0x2d8   : > { %v3521_v48 = vadd.f32 %v3520_v56, %v3490_v58  ;;  %v3559_v40 = vmul.f32 %v3490_v58, %v3490_v58  ;;  %v5075_v18 = vpack.c.bf16 %v3490_v58, %v3489_v22 }
 0x2d9   : > { %v3275_v27 = vpop.f32.mrf.mxu2  ;;  %v3364_v11 = vpop.f32.mrf.mxu3 }
 0x2da   : > { %v3590_v57 = vadd.f32 %v3589_v54, %v3559_v40  ;;  %5099 = vst [vmem:[%s6012_s17 + $0x68] sm:$0xff] %v5075_v18   ;;  %v3365_v20 = vadd.f32 %v3364_v11, %v3275_v27  ;;  %v2674_v25 = vpop.f32.mrf.mxu1  ;;  %v3455_v55 = vpop.f32.mrf.mxu0 }
 0x2db   : > { %v2675_v5 = vadd.f32 %v2674_v25, %v5998_v30 }
 0x2dc   : > { %v3454_v23 = vadd.f32 %v3453_v36, %v3365_v20 }
 0x2de   : > { %v3491_v35 = vadd.f32 %v3454_v23, %v2673_v44 }
 0x2e0   : > { %v3522_v7 = vadd.f32 %v3521_v48, %v3491_v35  ;;  %v3560_v62 = vmul.f32 %v3491_v35, %v3491_v35 }
 0x2e1   : > { %v3277_v26 = vpop.f32.mrf.mxu2  ;;  %v3366_v38 = vpop.f32.mrf.mxu3 }
 0x2e2   : > { %v3591_v41 = vadd.f32 %v3590_v57, %v3560_v62  ;;  %v3367_v59 = vadd.f32 %v3366_v38, %v3277_v26  ;;  %v2677_v46 = vpop.f32.mrf.mxu1  ;;  %v3458_v61 = vpop.f32.mrf.mxu0 }
 0x2e3   : > { %v2678_v3 = vadd.f32 %v2677_v46, %v6001_v37 }
 0x2e4   : > { %v3456_v42 = vadd.f32 %v3455_v55, %v3367_v59 }
 0x2e6   : > { %v3492_v16 = vadd.f32 %v3456_v42, %v2675_v5 }
 0x2e8   : > { %v3523_v49 = vadd.f32 %v3522_v7, %v3492_v16  ;;  %v3561_v1 = vmul.f32 %v3492_v16, %v3492_v16  ;;  %v5080_v21 = vpack.c.bf16 %v3492_v16, %v3491_v35 }
 0x2e9   : > { %v3280_v28 = vpop.f32.mrf.mxu2  ;;  %v3369_v14 = vpop.f32.mrf.mxu3 }
 0x2ea   : > { %v3592_v52 = vadd.f32 %v3591_v41, %v3561_v1  ;;  %5100 = vst [vmem:[%s6012_s17 + $0x70] sm:$0xff] %v5080_v21   ;;  %v3370_v4 = vadd.f32 %v3369_v14, %v3280_v28  ;;  %v2679_v0 = vpop.f32.mrf.mxu1  ;;  %v3460_v6 = vpop.f32.mrf.mxu0 }
 0x2eb   : > { %v2680_v34 = vadd.f32 %v2679_v0, %v6004_v63 }
 0x2ec   : > { %v3459_v12 = vadd.f32 %v3458_v61, %v3370_v4 }
 0x2ee   : > { %v3493_v13 = vadd.f32 %v3459_v12, %v2678_v3 }
 0x2f0   : > { %v3524_v30 = vadd.f32 %v3523_v49, %v3493_v13  ;;  %v3562_v17 = vmul.f32 %v3493_v13, %v3493_v13 }
 0x2f1   : > { %v3282_v8 = vpop.f32.mrf.mxu2  ;;  %v3371_v45 = vpop.f32.mrf.mxu3 }
 0x2f2   : > { %v3593_v33 = vadd.f32 %v3592_v52, %v3562_v17  ;;  %v3372_v9 = vadd.f32 %v3371_v45, %v3282_v8 }
 0x2f4   : > { %v3461_v37 = vadd.f32 %v3460_v6, %v3372_v9 }
 0x2f6   : > { %v3494_v24 = vadd.f32 %v3461_v37, %v2680_v34 }
 0x2f8   : > { %v3525_v19 = vadd.f32 %v3524_v30, %v3494_v24  ;;  %v3563_v51 = vmul.f32 %v3494_v24, %v3494_v24  ;;  %v5085_v53 = vpack.c.bf16 %v3494_v24, %v3493_v13 }
 0x2fa   : > { %v3526_v50 = vrot.slane %v3525_v19, 4  ;;  %v3594_v29 = vadd.f32 %v3593_v33, %v3563_v51  ;;  %5101 = vst [vmem:[%s6012_s17 + $0x78] sm:$0xff] %v5085_v53  }
 0x2fb   : > { %5200 = shalt.err (!%p5197_p3)
}
 0x2fc   : > { %s5269_s9 = smov 64   ;;  %s5270_s11 = smov 4   ;;  %v3527_v63 = vadd.f32 %v3526_v50, %v3525_v19  ;;  %v3595_v10 = vrot.slane %v3594_v29, 4  ;;  %vm3601_vm6 = vcmask 1040384  }
 0x2fd   : > { %5127 = dma.vmem_to_hbm [thread:$0]  (%p5329_p5), %s3687_s25, 2048, %s3689_s26, %s3669_s27, %s5269_s9, %s5269_s9, %s5270_s11  }
 0x2fe   : > { %s3803_s17 = sshll.u32 %s6007_s10, 1  ;;  %v3528_v43 = vrot.slane %v3527_v63, 2  ;;  %v3596_v22 = vadd.f32 %v3595_v10, %v3594_v29  ;;  %s4787_s7 = sshll.u32 %s5312_s16, 1 }
 0x2ff   : > { %s3701_s24 = scalar_lea.hbm %s6128_s3, %s4787_s7  ;;  %s174_s28 = scalar_lea.vmem [#allocation5], %s3803_s17 }
 0x300   : > { %v3529_v56 = vadd.f32 %v3528_v43, %v3527_v63  ;;  %v3597_v47 = vrot.slane %v3596_v22, 2  ;;  %s3703_s29 = sshll.u32 %s174_s28, 4  ;;  %s3705_s25 = sshll.u32 %s3701_s24, 4  ;;  %s3704_s29 = int_to_ptr.vmem [resolvable:$true] %s3703_s29  ;;  %s3706_s25 = int_to_ptr.hbm [resolvable:$true] %s3705_s25 }
 0x301   : > { %s3674_s16 = scalar_lea.sflag [#allocation6], %s6007_s10  ;;  %s5215_s26 = sshra.s32 %s3706_s25, 4  ;;  %s5216_s26 = int_to_ptr.hbm [resolvable:$true] %s5215_s26 }
 0x302   : > { %v3530_v39 = vrot.slane %v3529_v56, 1  ;;  %v3598_v31 = vadd.f32 %v3597_v47, %v3596_v22  ;;  %s5217_s27 = scalar_lea.hbm %s5216_s26, 2  ;;  %s5221_s5 = scalar_lea.hbm %s6128_s3, 4 }
 0x303   : > { %p5218_p4 = scmp.ne.s32.totalorder %s5216_s26, %s5217_s27  ;;  %p5222_p9 = scmp.lt.s32.totalorder %s5216_s26, %s6128_s3 }
 0x304   : > { %v3599_v54 = vrot.slane %v3598_v31, 1  ;;  %v3531_v60 = vadd.f32 %v3530_v39, %v3529_v56  ;;  %p5223_p10 = scmp.lt.s32.totalorder %s5221_s5, %s5217_s27 }
 0x305   : > { %p5219_p7 = pnand %p5218_p4, %p5329_p5 }
 0x306   : > { %v3600_v2 = vadd.f32 %v3599_v54, %v3598_v31  ;;  %p5224_p11 = por %p5223_p10, %p5222_p9 }
 0x307   : > { %p5220_p8 = pneg %p5219_p7 }
 0x308   : > { %v3602_v15 = vsel %vm3601_vm6, %v3531_v60, %v3600_v2 }
 0x309   : > { %3603 = vst [vmem:[%s174_s28] sm:$0x3] %v3602_v15  ;;  %p5225_p12 = pnand %p5224_p11, %p5220_p8 }
 0x30b   : > { %5228 = shalt.err (!%p5225_p12)
}
 0x30c   : > { %5128 = dma.vmem_to_hbm [thread:$0]  (%p5329_p5), %s3704_s29, 32, %s3706_s25, %s3674_s16  }
 0x30d PF: > { %p5138_p13 = scmp.ge.s32.totalorder %s5267_s15, 2  ;;  %s3717_s10 = sand.u32 1, %s5255_s12  }
 0x30e   : > { %s3718_s9 = scalar_lea.sflag [#allocation4], %s3717_s10 }
 0x30f   : > { %p5132_p0 = pnand %p5138_p13, %p5333_p6 }
 0x311   : > { %p5133_p1 = pneg %p5132_p0 }
 0x313   : > { %5246 = dma.done.wait (%p5133_p1), %s3718_s9, 2048  }
 0x314   : > { %5248 = vsyncadd (%p5133_p1), %s3718_s9, 4294965248  ;;  %s3728_s11 = scalar_lea.sflag [#allocation6], %s3717_s10 }
 0x315   : > { %5250 = dma.done.wait (%p5133_p1), %s3728_s11, 32  }
 0x316   : > { %5252 = vsyncadd (%p5133_p1), %s3728_s11, 4294967264  ;;  %p17_p5 = scmp.ge.s32.totalorder %s5316_s18, 4   ;;  %s6135_s12 = smov %s5259_s13 }
 0x317   : > { %s6136_s13 = smov %s5263_s14  ;;  %s6137_s14 = smov %s5327_s21 }
 0x318   : > { %s6138_s15 = smov %s5316_s18  ;;  %19 = sbr.rel (!%p17_p5) target bundleno = 5 (0x5), region = 84 }
 0x31d   :  { %3734 = vsyncpa [#allocation4], 1 }
 0x31e   :  { %3736 = vsyncpa [#allocation4 + $0x1], 1 }
 0x31f   :  { %3737 = vsyncpa [#allocation6], 1 }
 0x320   :  { %3739 = vsyncpa [#allocation6 + $0x1], 1 }

</bundles_post_ra>
